<compile_context>
chip_gen: v5e
topology: v5e:2x2
jax: 0.10.0
libtpu: 0.0.40
codegen_flags: <defaults>
</compile_context>

<pallas_src>
import functools

import jax
import jax.numpy as jnp
import numpy as np
from jax.experimental import pallas as pl
from jax.experimental.pallas import tpu as pltpu


def _round_up(x, m):
    return ((x + m - 1) // m) * m


# ----------------------------- Pallas kernel -------------------------------

def resnet_pointnet_kernel(p_ref, wpos_ref, bpos_ref, ws0f_ref, bs0_ref,
                           w00_ref, b00_ref, w10_ref, b10_ref,
                           w0r_ref, b0r_ref, w1r_ref, b1r_ref, wsr_ref,
                           wc_ref, bc_ref, out_ref):
    BT, _ = p_ref.shape                 # BT = Bb * T rows of (padded) points
    Bb = out_ref.shape[0]
    T = BT // Bb
    H = w10_ref.shape[0]

    dot = functools.partial(jnp.dot, preferred_element_type=jnp.float32)
    relu = lambda v: jnp.maximum(v, 0.0)

    x = p_ref[...]                                         # (BT, Dp)

    # fc_pos and the block_0 shortcut, both straight from x (K = Dp = 8).
    net = dot(x, wpos_ref[...]) + bpos_ref[...]            # (BT, 2H)
    sc = dot(x, ws0f_ref[...]) + bs0_ref[...]              # (BT, H)

    # block_0 : plain ResnetBlockFC (shortcut already folded into fc_pos).
    h = dot(relu(net), w00_ref[...]) + b00_ref[...]        # (BT, H)
    dx = dot(relu(h), w10_ref[...]) + b10_ref[...]         # (BT, H)
    net = sc + dx                                          # (BT, H)

    # blocks 1..4 : concat([net, broadcast(maxpool(net))]) -> ResnetBlockFC.
    # K = 2H is a single MXU pass for H <= 64, so no weight splitting.
    for i in range(4):
        net3 = net.reshape(Bb, T, H)
        pooled = jnp.max(net3, axis=1, keepdims=True)      # (Bb, 1, H) per-batch
        cat = jnp.concatenate(
            [net3, jnp.broadcast_to(pooled, net3.shape)], axis=-1
        ).reshape(BT, 2 * H)                               # (BT, 2H)
        h = dot(relu(cat), w0r_ref[i]) + b0r_ref[i]        # (BT, H)
        dx = dot(relu(h), w1r_ref[i]) + b1r_ref[i]         # (BT, H)
        net = dot(cat, wsr_ref[i]) + dx                    # (BT, H)

    # final max-pool over points + fc_c(relu(.)) -- lane-dense (Cp = 128k) out.
    pooled = jnp.max(net.reshape(Bb, T, H), axis=1)        # (Bb, H)
    out_ref[...] = dot(relu(pooled), wc_ref[...]) + bc_ref[...]


# -------------------------------- wrapper -----------------------------------

def resnet_pointnet(p, params, *, block_b=256):
    """p: (B, T, D) float32.  params: dict of stacked weights (see make_params).

    block_b batch elements are processed per grid step (sweep 256..1024 for
    large B); it is auto-shrunk so the grid keeps >= 2 steps when possible so
    v7x can shard the batch axis across both TensorCores.
    """
    B, T, D = p.shape
    H = params["w1"].shape[-1]
    C = params["wc"].shape[-1]

    Dp = _round_up(max(D, 1), 8)          # MXU-friendly K for fc_pos
    Cp = _round_up(max(C, 1), 128)        # lane-dense output width

    B8 = _round_up(B, 8)
    Bb = min(_round_up(block_b, 8), B8)
    # Keep >= 2 grid steps when the batch spans more than one block (v7x
    # megacore sharding of the "parallel" batch axis).
    half = _round_up(pl.cdiv(B8, 2), 8)
    if B8 >= 16 and Bb > half:
        Bb = half
    B_pad = _round_up(B8, Bb)

    # Zero-pad batch and point-feature dims (exact for the matmuls; padded
    # batch rows only pollute their own outputs, which are sliced off).
    p_pad = jnp.pad(p, ((0, B_pad - B), (0, 0), (0, Dp - D)))
    p_flat = p_pad.reshape(B_pad * T, Dp)          # contiguous rows per block

    wpos = jnp.pad(params["wpos"], ((0, Dp - D), (0, 0)))   # (Dp, 2H)
    bpos = params["bpos"]                                    # (1, 2H)

    w0, b0, w1, b1, ws = (params[k] for k in ("w0", "b0", "w1", "b1", "ws"))

    # Fold block_0's shortcut into fc_pos:
    #   net @ ws0 = (x @ wpos + bpos) @ ws0 = x @ (wpos @ ws0) + bpos @ ws0.
    ws0f = wpos @ ws[0]                                      # (Dp, H)
    bs0 = bpos @ ws[0]                                       # (1, H)

    wc = jnp.pad(params["wc"], ((0, 0), (0, Cp - C)))        # (H, Cp)
    bc = jnp.pad(params["bc"], ((0, 0), (0, Cp - C)))        # (1, Cp)

    args = (
        p_flat, wpos, bpos, ws0f, bs0,
        w0[0], b0[0], w1[0], b1[0],                          # block 0
        w0[1:], b0[1:], w1[1:], b1[1:], ws[1:],              # blocks 1..4
        wc, bc,
    )

    def full_spec(a):
        nd = a.ndim
        return pl.BlockSpec(a.shape, lambda b, _n=nd: (0,) * _n)

    in_specs = [pl.BlockSpec((Bb * T, Dp), lambda b: (b, 0))]
    in_specs += [full_spec(a) for a in args[1:]]

    out = pl.pallas_call(
        resnet_pointnet_kernel,
        out_shape=jax.ShapeDtypeStruct((B_pad, Cp), jnp.float32),
        grid_spec=pltpu.PrefetchScalarGridSpec(
            num_scalar_prefetch=0,
            grid=(B_pad // Bb,),
            in_specs=in_specs,
            out_specs=pl.BlockSpec((Bb, Cp), lambda b: (b, 0)),
        ),
        compiler_params=pltpu.CompilerParams(
            dimension_semantics=("parallel",),     # batch axis: shard over TCs
            vmem_limit_bytes=48 * 1024 * 1024,     # headroom for big block_b
        ),
    )(*args)
    return out[:B, :C]


# --------------------------- parameter creation -----------------------------

def _linear_init(key, fan_in, fan_out, bias=True):
    # torch nn.Linear default: U(-1/sqrt(fan_in), 1/sqrt(fan_in))
    k_w, k_b = jax.random.split(key)
    bound = 1.0 / np.sqrt(fan_in)
    w = jax.random.uniform(k_w, (fan_in, fan_out), jnp.float32, -bound, bound)
    b = jax.random.uniform(k_b, (1, fan_out), jnp.float32, -bound, bound) if bias else None
    return w, b


def make_params(key, dim=3, hidden_dim=32, c_dim=32):
    H = hidden_dim
    keys = jax.random.split(key, 20)
    wpos, bpos = _linear_init(keys[0], dim, 2 * H)

    w0s, b0s, w1s, b1s, wss = [], [], [], [], []
    for i in range(5):
        w0, b0 = _linear_init(keys[1 + 3 * i], 2 * H, H)             # fc_0: 2H -> H
        w1, b1 = _linear_init(keys[2 + 3 * i], H, H)                 # fc_1: H -> H
        ws, _ = _linear_init(keys[3 + 3 * i], 2 * H, H, bias=False)  # shortcut: 2H -> H
        w0s.append(w0); b0s.append(b0); w1s.append(w1); b1s.append(b1); wss.append(ws)

    wc, bc = _linear_init(keys[16], H, c_dim)

    return {
        "wpos": wpos, "bpos": bpos,
        "w0": jnp.stack(w0s), "b0": jnp.stack(b0s),
        "w1": jnp.stack(w1s), "b1": jnp.stack(b1s),
        "ws": jnp.stack(wss),
        "wc": wc, "bc": bc,
    }


# ----------------------------- pure-JAX reference ---------------------------

def reference_forward(p, params):
    def resblock(x, w0, b0, w1, b1, ws):
        net = jnp.maximum(x, 0.0) @ w0 + b0
        dx = jnp.maximum(net, 0.0) @ w1 + b1
        return x @ ws + dx

    net = p @ params["wpos"] + params["bpos"]
    net = resblock(net, params["w0"][0], params["b0"][0],
                   params["w1"][0], params["b1"][0], params["ws"][0])
    for i in range(1, 5):
        pooled = jnp.max(net, axis=1, keepdims=True)
        pooled = jnp.broadcast_to(pooled, net.shape)
        net = jnp.concatenate([net, pooled], axis=2)
        net = resblock(net, params["w0"][i], params["b0"][i],
                       params["w1"][i], params["b1"][i], params["ws"][i])
    net = jnp.max(net, axis=1)
    return jnp.maximum(net, 0.0) @ params["wc"] + params["bc"]


# --------------------------------- main -------------------------------------

if __name__ == "__main__":
    B, T, D = 20, 8, 3       # batch (exercises padding + a 2-step grid), points, dim
    H, C = 32, 32            # hidden_dim, c_dim

    key = jax.random.PRNGKey(0)
    k_p, k_w = jax.random.split(key)
    p = jax.random.normal(k_p, (B, T, D), jnp.float32)
    params = make_params(k_w, dim=D, hidden_dim=H, c_dim=C)

    out = resnet_pointnet(p, params)           # auto block_b -> 16 here (2 grid steps)
    out = jax.block_until_ready(out)

    ref = reference_forward(p, params)
    np.testing.assert_allclose(np.asarray(out), np.asarray(ref), rtol=1e-4, atol=1e-4)

    print("KERNEL_OK")
</pallas_src>

<mosaic_0001>
module attributes {stable_mosaic.version = 11 : i64} {
  func.func @resnet_pointnet_kernel(%arg0: i32, %arg1: memref<128x8xf32, #tpu.memory_space<vmem>>, %arg2: memref<8x64xf32, #tpu.memory_space<vmem>>, %arg3: memref<1x64xf32, #tpu.memory_space<vmem>>, %arg4: memref<8x32xf32, #tpu.memory_space<vmem>>, %arg5: memref<1x32xf32, #tpu.memory_space<vmem>>, %arg6: memref<64x32xf32, #tpu.memory_space<vmem>>, %arg7: memref<1x32xf32, #tpu.memory_space<vmem>>, %arg8: memref<32x32xf32, #tpu.memory_space<vmem>>, %arg9: memref<1x32xf32, #tpu.memory_space<vmem>>, %arg10: memref<4x64x32xf32, #tpu.memory_space<vmem>>, %arg11: memref<4x1x32xf32, #tpu.memory_space<vmem>>, %arg12: memref<4x32x32xf32, #tpu.memory_space<vmem>>, %arg13: memref<4x1x32xf32, #tpu.memory_space<vmem>>, %arg14: memref<4x64x32xf32, #tpu.memory_space<vmem>>, %arg15: memref<32x128xf32, #tpu.memory_space<vmem>>, %arg16: memref<1x128xf32, #tpu.memory_space<vmem>>, %arg17: memref<16x128xf32, #tpu.memory_space<vmem>>) attributes {dimension_semantics = [#tpu.dimension_semantics<parallel>], iteration_bounds = array<i64: 2>, scalar_prefetch = 0 : i64, scratch_operands = 0 : i64, tpu.core_type = #tpu.core_type<tc>, window_params = [{transform_indices = @transform_0, window_bounds = array<i64: 128, 8>}, {pipeline_mode = #tpu.pipeline_mode<synchronous>, transform_indices = @transform_1, window_bounds = array<i64: 8, 64>}, {pipeline_mode = #tpu.pipeline_mode<synchronous>, transform_indices = @transform_2, window_bounds = array<i64: 1, 64>}, {pipeline_mode = #tpu.pipeline_mode<synchronous>, transform_indices = @transform_3, window_bounds = array<i64: 8, 32>}, {pipeline_mode = #tpu.pipeline_mode<synchronous>, transform_indices = @transform_4, window_bounds = array<i64: 1, 32>}, {pipeline_mode = #tpu.pipeline_mode<synchronous>, transform_indices = @transform_5, window_bounds = array<i64: 64, 32>}, {pipeline_mode = #tpu.pipeline_mode<synchronous>, transform_indices = @transform_6, window_bounds = array<i64: 1, 32>}, {pipeline_mode = #tpu.pipeline_mode<synchronous>, transform_indices = @transform_7, window_bounds = array<i64: 32, 32>}, {pipeline_mode = #tpu.pipeline_mode<synchronous>, transform_indices = @transform_8, window_bounds = array<i64: 1, 32>}, {pipeline_mode = #tpu.pipeline_mode<synchronous>, transform_indices = @transform_9, window_bounds = array<i64: 4, 64, 32>}, {pipeline_mode = #tpu.pipeline_mode<synchronous>, transform_indices = @transform_10, window_bounds = array<i64: 4, 1, 32>}, {pipeline_mode = #tpu.pipeline_mode<synchronous>, transform_indices = @transform_11, window_bounds = array<i64: 4, 32, 32>}, {pipeline_mode = #tpu.pipeline_mode<synchronous>, transform_indices = @transform_12, window_bounds = array<i64: 4, 1, 32>}, {pipeline_mode = #tpu.pipeline_mode<synchronous>, transform_indices = @transform_13, window_bounds = array<i64: 4, 64, 32>}, {pipeline_mode = #tpu.pipeline_mode<synchronous>, transform_indices = @transform_14, window_bounds = array<i64: 32, 128>}, {pipeline_mode = #tpu.pipeline_mode<synchronous>, transform_indices = @transform_15, window_bounds = array<i64: 1, 128>}, {transform_indices = @transform_16, window_bounds = array<i64: 16, 128>}]} {
    %c0 = arith.constant 0 : index
    %c0_0 = arith.constant 0 : index
    %0 = vector.load %arg1[%c0, %c0_0] : memref<128x8xf32, #tpu.memory_space<vmem>>, vector<128x8xf32>
    %c0_1 = arith.constant 0 : index
    %c0_2 = arith.constant 0 : index
    %1 = vector.load %arg2[%c0_1, %c0_2] : memref<8x64xf32, #tpu.memory_space<vmem>>, vector<8x64xf32>
    %cst = arith.constant dense<0.000000e+00> : vector<128x64xf32>
    %2 = tpu.matmul %0, %1, %cst {dimension_numbers = #tpu.dot_dimension_numbers<[1], [0], [0], [1], [0, 0, 1, 1], [], []>} : vector<128x8xf32>, vector<8x64xf32>, vector<128x64xf32> -> vector<128x64xf32>
    %c0_3 = arith.constant 0 : index
    %c0_4 = arith.constant 0 : index
    %3 = vector.load %arg3[%c0_3, %c0_4] : memref<1x64xf32, #tpu.memory_space<vmem>>, vector<1x64xf32>
    %4 = vector.broadcast %3 : vector<1x64xf32> to vector<128x64xf32>
    %5 = arith.addf %2, %4 : vector<128x64xf32>
    %c0_5 = arith.constant 0 : index
    %c0_6 = arith.constant 0 : index
    %6 = vector.load %arg4[%c0_5, %c0_6] : memref<8x32xf32, #tpu.memory_space<vmem>>, vector<8x32xf32>
    %cst_7 = arith.constant dense<0.000000e+00> : vector<128x32xf32>
    %7 = tpu.matmul %0, %6, %cst_7 {dimension_numbers = #tpu.dot_dimension_numbers<[1], [0], [0], [1], [0, 0, 1, 1], [], []>} : vector<128x8xf32>, vector<8x32xf32>, vector<128x32xf32> -> vector<128x32xf32>
    %c0_8 = arith.constant 0 : index
    %c0_9 = arith.constant 0 : index
    %8 = vector.load %arg5[%c0_8, %c0_9] : memref<1x32xf32, #tpu.memory_space<vmem>>, vector<1x32xf32>
    %9 = vector.broadcast %8 : vector<1x32xf32> to vector<128x32xf32>
    %10 = arith.addf %7, %9 : vector<128x32xf32>
    %cst_10 = arith.constant 0.000000e+00 : f32
    %11 = vector.broadcast %cst_10 : f32 to vector<128x64xf32>
    %12 = arith.maximumf %5, %11 : vector<128x64xf32>
    %c0_11 = arith.constant 0 : index
    %c0_12 = arith.constant 0 : index
    %13 = vector.load %arg6[%c0_11, %c0_12] : memref<64x32xf32, #tpu.memory_space<vmem>>, vector<64x32xf32>
    %cst_13 = arith.constant dense<0.000000e+00> : vector<128x32xf32>
    %14 = tpu.matmul %12, %13, %cst_13 {dimension_numbers = #tpu.dot_dimension_numbers<[1], [0], [0], [1], [0, 0, 1, 1], [], []>} : vector<128x64xf32>, vector<64x32xf32>, vector<128x32xf32> -> vector<128x32xf32>
    %c0_14 = arith.constant 0 : index
    %c0_15 = arith.constant 0 : index
    %15 = vector.load %arg7[%c0_14, %c0_15] : memref<1x32xf32, #tpu.memory_space<vmem>>, vector<1x32xf32>
    %16 = vector.broadcast %15 : vector<1x32xf32> to vector<128x32xf32>
    %17 = arith.addf %14, %16 : vector<128x32xf32>
    %cst_16 = arith.constant 0.000000e+00 : f32
    %18 = vector.broadcast %cst_16 : f32 to vector<128x32xf32>
    %19 = arith.maximumf %17, %18 : vector<128x32xf32>
    %c0_17 = arith.constant 0 : index
    %c0_18 = arith.constant 0 : index
    %20 = vector.load %arg8[%c0_17, %c0_18] : memref<32x32xf32, #tpu.memory_space<vmem>>, vector<32x32xf32>
    %cst_19 = arith.constant dense<0.000000e+00> : vector<128x32xf32>
    %21 = tpu.matmul %19, %20, %cst_19 {dimension_numbers = #tpu.dot_dimension_numbers<[1], [0], [0], [1], [0, 0, 1, 1], [], []>} : vector<128x32xf32>, vector<32x32xf32>, vector<128x32xf32> -> vector<128x32xf32>
    %c0_20 = arith.constant 0 : index
    %c0_21 = arith.constant 0 : index
    %22 = vector.load %arg9[%c0_20, %c0_21] : memref<1x32xf32, #tpu.memory_space<vmem>>, vector<1x32xf32>
    %23 = vector.broadcast %22 : vector<1x32xf32> to vector<128x32xf32>
    %24 = arith.addf %21, %23 : vector<128x32xf32>
    %25 = arith.addf %10, %24 : vector<128x32xf32>
    %26 = vector.shape_cast %25 : vector<128x32xf32> to vector<16x8x32xf32>
    %cst_22 = arith.constant dense<0xFF800000> : vector<16x32xf32>
    %27 = vector.multi_reduction <maximumf>, %26, %cst_22 [1] : vector<16x8x32xf32> to vector<16x32xf32>
    %28 = vector.shape_cast %27 : vector<16x32xf32> to vector<16x1x32xf32>
    %29 = vector.shape_cast %28 : vector<16x1x32xf32> to vector<16x1x32xf32>
    %30 = vector.broadcast %29 : vector<16x1x32xf32> to vector<16x8x32xf32>
    %31 = tpu.concatenate %26, %30 in 2 : vector<16x8x32xf32>, vector<16x8x32xf32> -> vector<16x8x64xf32>
    %32 = vector.shape_cast %31 : vector<16x8x64xf32> to vector<128x64xf32>
    %cst_23 = arith.constant 0.000000e+00 : f32
    %33 = vector.broadcast %cst_23 : f32 to vector<128x64xf32>
    %34 = arith.maximumf %32, %33 : vector<128x64xf32>
    %c0_24 = arith.constant 0 : index
    %c0_25 = arith.constant 0 : index
    %c0_26 = arith.constant 0 : index
    %35 = vector.load %arg10[%c0_24, %c0_25, %c0_26] : memref<4x64x32xf32, #tpu.memory_space<vmem>>, vector<1x64x32xf32>
    %36 = vector.shape_cast %35 : vector<1x64x32xf32> to vector<64x32xf32>
    %cst_27 = arith.constant dense<0.000000e+00> : vector<128x32xf32>
    %37 = tpu.matmul %34, %36, %cst_27 {dimension_numbers = #tpu.dot_dimension_numbers<[1], [0], [0], [1], [0, 0, 1, 1], [], []>} : vector<128x64xf32>, vector<64x32xf32>, vector<128x32xf32> -> vector<128x32xf32>
    %c0_28 = arith.constant 0 : index
    %c0_29 = arith.constant 0 : index
    %c0_30 = arith.constant 0 : index
    %38 = vector.load %arg11[%c0_28, %c0_29, %c0_30] : memref<4x1x32xf32, #tpu.memory_space<vmem>>, vector<1x1x32xf32>
    %39 = vector.shape_cast %38 : vector<1x1x32xf32> to vector<1x32xf32>
    %40 = vector.broadcast %39 : vector<1x32xf32> to vector<128x32xf32>
    %41 = arith.addf %37, %40 : vector<128x32xf32>
    %cst_31 = arith.constant 0.000000e+00 : f32
    %42 = vector.broadcast %cst_31 : f32 to vector<128x32xf32>
    %43 = arith.maximumf %41, %42 : vector<128x32xf32>
    %c0_32 = arith.constant 0 : index
    %c0_33 = arith.constant 0 : index
    %c0_34 = arith.constant 0 : index
    %44 = vector.load %arg12[%c0_32, %c0_33, %c0_34] : memref<4x32x32xf32, #tpu.memory_space<vmem>>, vector<1x32x32xf32>
    %45 = vector.shape_cast %44 : vector<1x32x32xf32> to vector<32x32xf32>
    %cst_35 = arith.constant dense<0.000000e+00> : vector<128x32xf32>
    %46 = tpu.matmul %43, %45, %cst_35 {dimension_numbers = #tpu.dot_dimension_numbers<[1], [0], [0], [1], [0, 0, 1, 1], [], []>} : vector<128x32xf32>, vector<32x32xf32>, vector<128x32xf32> -> vector<128x32xf32>
    %c0_36 = arith.constant 0 : index
    %c0_37 = arith.constant 0 : index
    %c0_38 = arith.constant 0 : index
    %47 = vector.load %arg13[%c0_36, %c0_37, %c0_38] : memref<4x1x32xf32, #tpu.memory_space<vmem>>, vector<1x1x32xf32>
    %48 = vector.shape_cast %47 : vector<1x1x32xf32> to vector<1x32xf32>
    %49 = vector.broadcast %48 : vector<1x32xf32> to vector<128x32xf32>
    %50 = arith.addf %46, %49 : vector<128x32xf32>
    %c0_39 = arith.constant 0 : index
    %c0_40 = arith.constant 0 : index
    %c0_41 = arith.constant 0 : index
    %51 = vector.load %arg14[%c0_39, %c0_40, %c0_41] : memref<4x64x32xf32, #tpu.memory_space<vmem>>, vector<1x64x32xf32>
    %52 = vector.shape_cast %51 : vector<1x64x32xf32> to vector<64x32xf32>
    %cst_42 = arith.constant dense<0.000000e+00> : vector<128x32xf32>
    %53 = tpu.matmul %32, %52, %cst_42 {dimension_numbers = #tpu.dot_dimension_numbers<[1], [0], [0], [1], [0, 0, 1, 1], [], []>} : vector<128x64xf32>, vector<64x32xf32>, vector<128x32xf32> -> vector<128x32xf32>
    %54 = arith.addf %53, %50 : vector<128x32xf32>
    %55 = vector.shape_cast %54 : vector<128x32xf32> to vector<16x8x32xf32>
    %cst_43 = arith.constant dense<0xFF800000> : vector<16x32xf32>
    %56 = vector.multi_reduction <maximumf>, %55, %cst_43 [1] : vector<16x8x32xf32> to vector<16x32xf32>
    %57 = vector.shape_cast %56 : vector<16x32xf32> to vector<16x1x32xf32>
    %58 = vector.shape_cast %57 : vector<16x1x32xf32> to vector<16x1x32xf32>
    %59 = vector.broadcast %58 : vector<16x1x32xf32> to vector<16x8x32xf32>
    %60 = tpu.concatenate %55, %59 in 2 : vector<16x8x32xf32>, vector<16x8x32xf32> -> vector<16x8x64xf32>
    %61 = vector.shape_cast %60 : vector<16x8x64xf32> to vector<128x64xf32>
    %cst_44 = arith.constant 0.000000e+00 : f32
    %62 = vector.broadcast %cst_44 : f32 to vector<128x64xf32>
    %63 = arith.maximumf %61, %62 : vector<128x64xf32>
    %c1 = arith.constant 1 : index
    %c0_45 = arith.constant 0 : index
    %c0_46 = arith.constant 0 : index
    %64 = vector.load %arg10[%c1, %c0_45, %c0_46] : memref<4x64x32xf32, #tpu.memory_space<vmem>>, vector<1x64x32xf32>
    %65 = vector.shape_cast %64 : vector<1x64x32xf32> to vector<64x32xf32>
    %cst_47 = arith.constant dense<0.000000e+00> : vector<128x32xf32>
    %66 = tpu.matmul %63, %65, %cst_47 {dimension_numbers = #tpu.dot_dimension_numbers<[1], [0], [0], [1], [0, 0, 1, 1], [], []>} : vector<128x64xf32>, vector<64x32xf32>, vector<128x32xf32> -> vector<128x32xf32>
    %c1_48 = arith.constant 1 : index
    %c0_49 = arith.constant 0 : index
    %c0_50 = arith.constant 0 : index
    %67 = vector.load %arg11[%c1_48, %c0_49, %c0_50] : memref<4x1x32xf32, #tpu.memory_space<vmem>>, vector<1x1x32xf32>
    %68 = vector.shape_cast %67 : vector<1x1x32xf32> to vector<1x32xf32>
    %69 = vector.broadcast %68 : vector<1x32xf32> to vector<128x32xf32>
    %70 = arith.addf %66, %69 : vector<128x32xf32>
    %cst_51 = arith.constant 0.000000e+00 : f32
    %71 = vector.broadcast %cst_51 : f32 to vector<128x32xf32>
    %72 = arith.maximumf %70, %71 : vector<128x32xf32>
    %c1_52 = arith.constant 1 : index
    %c0_53 = arith.constant 0 : index
    %c0_54 = arith.constant 0 : index
    %73 = vector.load %arg12[%c1_52, %c0_53, %c0_54] : memref<4x32x32xf32, #tpu.memory_space<vmem>>, vector<1x32x32xf32>
    %74 = vector.shape_cast %73 : vector<1x32x32xf32> to vector<32x32xf32>
    %cst_55 = arith.constant dense<0.000000e+00> : vector<128x32xf32>
    %75 = tpu.matmul %72, %74, %cst_55 {dimension_numbers = #tpu.dot_dimension_numbers<[1], [0], [0], [1], [0, 0, 1, 1], [], []>} : vector<128x32xf32>, vector<32x32xf32>, vector<128x32xf32> -> vector<128x32xf32>
    %c1_56 = arith.constant 1 : index
    %c0_57 = arith.constant 0 : index
    %c0_58 = arith.constant 0 : index
    %76 = vector.load %arg13[%c1_56, %c0_57, %c0_58] : memref<4x1x32xf32, #tpu.memory_space<vmem>>, vector<1x1x32xf32>
    %77 = vector.shape_cast %76 : vector<1x1x32xf32> to vector<1x32xf32>
    %78 = vector.broadcast %77 : vector<1x32xf32> to vector<128x32xf32>
    %79 = arith.addf %75, %78 : vector<128x32xf32>
    %c1_59 = arith.constant 1 : index
    %c0_60 = arith.constant 0 : index
    %c0_61 = arith.constant 0 : index
    %80 = vector.load %arg14[%c1_59, %c0_60, %c0_61] : memref<4x64x32xf32, #tpu.memory_space<vmem>>, vector<1x64x32xf32>
    %81 = vector.shape_cast %80 : vector<1x64x32xf32> to vector<64x32xf32>
    %cst_62 = arith.constant dense<0.000000e+00> : vector<128x32xf32>
    %82 = tpu.matmul %61, %81, %cst_62 {dimension_numbers = #tpu.dot_dimension_numbers<[1], [0], [0], [1], [0, 0, 1, 1], [], []>} : vector<128x64xf32>, vector<64x32xf32>, vector<128x32xf32> -> vector<128x32xf32>
    %83 = arith.addf %82, %79 : vector<128x32xf32>
    %84 = vector.shape_cast %83 : vector<128x32xf32> to vector<16x8x32xf32>
    %cst_63 = arith.constant dense<0xFF800000> : vector<16x32xf32>
    %85 = vector.multi_reduction <maximumf>, %84, %cst_63 [1] : vector<16x8x32xf32> to vector<16x32xf32>
    %86 = vector.shape_cast %85 : vector<16x32xf32> to vector<16x1x32xf32>
    %87 = vector.shape_cast %86 : vector<16x1x32xf32> to vector<16x1x32xf32>
    %88 = vector.broadcast %87 : vector<16x1x32xf32> to vector<16x8x32xf32>
    %89 = tpu.concatenate %84, %88 in 2 : vector<16x8x32xf32>, vector<16x8x32xf32> -> vector<16x8x64xf32>
    %90 = vector.shape_cast %89 : vector<16x8x64xf32> to vector<128x64xf32>
    %cst_64 = arith.constant 0.000000e+00 : f32
    %91 = vector.broadcast %cst_64 : f32 to vector<128x64xf32>
    %92 = arith.maximumf %90, %91 : vector<128x64xf32>
    %c2 = arith.constant 2 : index
    %c0_65 = arith.constant 0 : index
    %c0_66 = arith.constant 0 : index
    %93 = vector.load %arg10[%c2, %c0_65, %c0_66] : memref<4x64x32xf32, #tpu.memory_space<vmem>>, vector<1x64x32xf32>
    %94 = vector.shape_cast %93 : vector<1x64x32xf32> to vector<64x32xf32>
    %cst_67 = arith.constant dense<0.000000e+00> : vector<128x32xf32>
    %95 = tpu.matmul %92, %94, %cst_67 {dimension_numbers = #tpu.dot_dimension_numbers<[1], [0], [0], [1], [0, 0, 1, 1], [], []>} : vector<128x64xf32>, vector<64x32xf32>, vector<128x32xf32> -> vector<128x32xf32>
    %c2_68 = arith.constant 2 : index
    %c0_69 = arith.constant 0 : index
    %c0_70 = arith.constant 0 : index
    %96 = vector.load %arg11[%c2_68, %c0_69, %c0_70] : memref<4x1x32xf32, #tpu.memory_space<vmem>>, vector<1x1x32xf32>
    %97 = vector.shape_cast %96 : vector<1x1x32xf32> to vector<1x32xf32>
    %98 = vector.broadcast %97 : vector<1x32xf32> to vector<128x32xf32>
    %99 = arith.addf %95, %98 : vector<128x32xf32>
    %cst_71 = arith.constant 0.000000e+00 : f32
    %100 = vector.broadcast %cst_71 : f32 to vector<128x32xf32>
    %101 = arith.maximumf %99, %100 : vector<128x32xf32>
    %c2_72 = arith.constant 2 : index
    %c0_73 = arith.constant 0 : index
    %c0_74 = arith.constant 0 : index
    %102 = vector.load %arg12[%c2_72, %c0_73, %c0_74] : memref<4x32x32xf32, #tpu.memory_space<vmem>>, vector<1x32x32xf32>
    %103 = vector.shape_cast %102 : vector<1x32x32xf32> to vector<32x32xf32>
    %cst_75 = arith.constant dense<0.000000e+00> : vector<128x32xf32>
    %104 = tpu.matmul %101, %103, %cst_75 {dimension_numbers = #tpu.dot_dimension_numbers<[1], [0], [0], [1], [0, 0, 1, 1], [], []>} : vector<128x32xf32>, vector<32x32xf32>, vector<128x32xf32> -> vector<128x32xf32>
    %c2_76 = arith.constant 2 : index
    %c0_77 = arith.constant 0 : index
    %c0_78 = arith.constant 0 : index
    %105 = vector.load %arg13[%c2_76, %c0_77, %c0_78] : memref<4x1x32xf32, #tpu.memory_space<vmem>>, vector<1x1x32xf32>
    %106 = vector.shape_cast %105 : vector<1x1x32xf32> to vector<1x32xf32>
    %107 = vector.broadcast %106 : vector<1x32xf32> to vector<128x32xf32>
    %108 = arith.addf %104, %107 : vector<128x32xf32>
    %c2_79 = arith.constant 2 : index
    %c0_80 = arith.constant 0 : index
    %c0_81 = arith.constant 0 : index
    %109 = vector.load %arg14[%c2_79, %c0_80, %c0_81] : memref<4x64x32xf32, #tpu.memory_space<vmem>>, vector<1x64x32xf32>
    %110 = vector.shape_cast %109 : vector<1x64x32xf32> to vector<64x32xf32>
    %cst_82 = arith.constant dense<0.000000e+00> : vector<128x32xf32>
    %111 = tpu.matmul %90, %110, %cst_82 {dimension_numbers = #tpu.dot_dimension_numbers<[1], [0], [0], [1], [0, 0, 1, 1], [], []>} : vector<128x64xf32>, vector<64x32xf32>, vector<128x32xf32> -> vector<128x32xf32>
    %112 = arith.addf %111, %108 : vector<128x32xf32>
    %113 = vector.shape_cast %112 : vector<128x32xf32> to vector<16x8x32xf32>
    %cst_83 = arith.constant dense<0xFF800000> : vector<16x32xf32>
    %114 = vector.multi_reduction <maximumf>, %113, %cst_83 [1] : vector<16x8x32xf32> to vector<16x32xf32>
    %115 = vector.shape_cast %114 : vector<16x32xf32> to vector<16x1x32xf32>
    %116 = vector.shape_cast %115 : vector<16x1x32xf32> to vector<16x1x32xf32>
    %117 = vector.broadcast %116 : vector<16x1x32xf32> to vector<16x8x32xf32>
    %118 = tpu.concatenate %113, %117 in 2 : vector<16x8x32xf32>, vector<16x8x32xf32> -> vector<16x8x64xf32>
    %119 = vector.shape_cast %118 : vector<16x8x64xf32> to vector<128x64xf32>
    %cst_84 = arith.constant 0.000000e+00 : f32
    %120 = vector.broadcast %cst_84 : f32 to vector<128x64xf32>
    %121 = arith.maximumf %119, %120 : vector<128x64xf32>
    %c3 = arith.constant 3 : index
    %c0_85 = arith.constant 0 : index
    %c0_86 = arith.constant 0 : index
    %122 = vector.load %arg10[%c3, %c0_85, %c0_86] : memref<4x64x32xf32, #tpu.memory_space<vmem>>, vector<1x64x32xf32>
    %123 = vector.shape_cast %122 : vector<1x64x32xf32> to vector<64x32xf32>
    %cst_87 = arith.constant dense<0.000000e+00> : vector<128x32xf32>
    %124 = tpu.matmul %121, %123, %cst_87 {dimension_numbers = #tpu.dot_dimension_numbers<[1], [0], [0], [1], [0, 0, 1, 1], [], []>} : vector<128x64xf32>, vector<64x32xf32>, vector<128x32xf32> -> vector<128x32xf32>
    %c3_88 = arith.constant 3 : index
    %c0_89 = arith.constant 0 : index
    %c0_90 = arith.constant 0 : index
    %125 = vector.load %arg11[%c3_88, %c0_89, %c0_90] : memref<4x1x32xf32, #tpu.memory_space<vmem>>, vector<1x1x32xf32>
    %126 = vector.shape_cast %125 : vector<1x1x32xf32> to vector<1x32xf32>
    %127 = vector.broadcast %126 : vector<1x32xf32> to vector<128x32xf32>
    %128 = arith.addf %124, %127 : vector<128x32xf32>
    %cst_91 = arith.constant 0.000000e+00 : f32
    %129 = vector.broadcast %cst_91 : f32 to vector<128x32xf32>
    %130 = arith.maximumf %128, %129 : vector<128x32xf32>
    %c3_92 = arith.constant 3 : index
    %c0_93 = arith.constant 0 : index
    %c0_94 = arith.constant 0 : index
    %131 = vector.load %arg12[%c3_92, %c0_93, %c0_94] : memref<4x32x32xf32, #tpu.memory_space<vmem>>, vector<1x32x32xf32>
    %132 = vector.shape_cast %131 : vector<1x32x32xf32> to vector<32x32xf32>
    %cst_95 = arith.constant dense<0.000000e+00> : vector<128x32xf32>
    %133 = tpu.matmul %130, %132, %cst_95 {dimension_numbers = #tpu.dot_dimension_numbers<[1], [0], [0], [1], [0, 0, 1, 1], [], []>} : vector<128x32xf32>, vector<32x32xf32>, vector<128x32xf32> -> vector<128x32xf32>
    %c3_96 = arith.constant 3 : index
    %c0_97 = arith.constant 0 : index
    %c0_98 = arith.constant 0 : index
    %134 = vector.load %arg13[%c3_96, %c0_97, %c0_98] : memref<4x1x32xf32, #tpu.memory_space<vmem>>, vector<1x1x32xf32>
    %135 = vector.shape_cast %134 : vector<1x1x32xf32> to vector<1x32xf32>
    %136 = vector.broadcast %135 : vector<1x32xf32> to vector<128x32xf32>
    %137 = arith.addf %133, %136 : vector<128x32xf32>
    %c3_99 = arith.constant 3 : index
    %c0_100 = arith.constant 0 : index
    %c0_101 = arith.constant 0 : index
    %138 = vector.load %arg14[%c3_99, %c0_100, %c0_101] : memref<4x64x32xf32, #tpu.memory_space<vmem>>, vector<1x64x32xf32>
    %139 = vector.shape_cast %138 : vector<1x64x32xf32> to vector<64x32xf32>
    %cst_102 = arith.constant dense<0.000000e+00> : vector<128x32xf32>
    %140 = tpu.matmul %119, %139, %cst_102 {dimension_numbers = #tpu.dot_dimension_numbers<[1], [0], [0], [1], [0, 0, 1, 1], [], []>} : vector<128x64xf32>, vector<64x32xf32>, vector<128x32xf32> -> vector<128x32xf32>
    %141 = arith.addf %140, %137 : vector<128x32xf32>
    %142 = vector.shape_cast %141 : vector<128x32xf32> to vector<16x8x32xf32>
    %cst_103 = arith.constant dense<0xFF800000> : vector<16x32xf32>
    %143 = vector.multi_reduction <maximumf>, %142, %cst_103 [1] : vector<16x8x32xf32> to vector<16x32xf32>
    %cst_104 = arith.constant 0.000000e+00 : f32
    %144 = vector.broadcast %cst_104 : f32 to vector<16x32xf32>
    %145 = arith.maximumf %143, %144 : vector<16x32xf32>
    %c0_105 = arith.constant 0 : index
    %c0_106 = arith.constant 0 : index
    %146 = vector.load %arg15[%c0_105, %c0_106] : memref<32x128xf32, #tpu.memory_space<vmem>>, vector<32x128xf32>
    %cst_107 = arith.constant dense<0.000000e+00> : vector<16x128xf32>
    %147 = tpu.matmul %145, %146, %cst_107 {dimension_numbers = #tpu.dot_dimension_numbers<[1], [0], [0], [1], [0, 0, 1, 1], [], []>} : vector<16x32xf32>, vector<32x128xf32>, vector<16x128xf32> -> vector<16x128xf32>
    %c0_108 = arith.constant 0 : index
    %c0_109 = arith.constant 0 : index
    %148 = vector.load %arg16[%c0_108, %c0_109] : memref<1x128xf32, #tpu.memory_space<vmem>>, vector<1x128xf32>
    %149 = vector.broadcast %148 : vector<1x128xf32> to vector<16x128xf32>
    %150 = arith.addf %147, %149 : vector<16x128xf32>
    %c0_110 = arith.constant 0 : index
    %c0_111 = arith.constant 0 : index
    %151 = vector.load %arg17[%c0_110, %c0_111] : memref<16x128xf32, #tpu.memory_space<vmem>>, vector<16x128xf32>
    tpu.vector_store %arg17[%c0_110, %c0_111], %150 {strides = array<i32>} : memref<16x128xf32, #tpu.memory_space<vmem>>, vector<16x128xf32>,
    return
  }
  func.func @transform_0(%arg0: i32) -> (i32, i32) {
    %c0_i32 = arith.constant 0 : i32
    %c0_i32_0 = arith.constant 0 : i32
    return %arg0, %c0_i32 : i32, i32
  }
  func.func @transform_1(%arg0: i32) -> (i32, i32) {
    %c0_i32 = arith.constant 0 : i32
    %c0_i32_0 = arith.constant 0 : i32
    %c0_i32_1 = arith.constant 0 : i32
    return %c0_i32, %c0_i32_0 : i32, i32
  }
  func.func @transform_2(%arg0: i32) -> (i32, i32) {
    %c0_i32 = arith.constant 0 : i32
    %c0_i32_0 = arith.constant 0 : i32
    %c0_i32_1 = arith.constant 0 : i32
    return %c0_i32, %c0_i32_0 : i32, i32
  }
  func.func @transform_3(%arg0: i32) -> (i32, i32) {
    %c0_i32 = arith.constant 0 : i32
    %c0_i32_0 = arith.constant 0 : i32
    %c0_i32_1 = arith.constant 0 : i32
    return %c0_i32, %c0_i32_0 : i32, i32
  }
  func.func @transform_4(%arg0: i32) -> (i32, i32) {
    %c0_i32 = arith.constant 0 : i32
    %c0_i32_0 = arith.constant 0 : i32
    %c0_i32_1 = arith.constant 0 : i32
    return %c0_i32, %c0_i32_0 : i32, i32
  }
  func.func @transform_5(%arg0: i32) -> (i32, i32) {
    %c0_i32 = arith.constant 0 : i32
    %c0_i32_0 = arith.constant 0 : i32
    %c0_i32_1 = arith.constant 0 : i32
    return %c0_i32, %c0_i32_0 : i32, i32
  }
  func.func @transform_6(%arg0: i32) -> (i32, i32) {
    %c0_i32 = arith.constant 0 : i32
    %c0_i32_0 = arith.constant 0 : i32
    %c0_i32_1 = arith.constant 0 : i32
    return %c0_i32, %c0_i32_0 : i32, i32
  }
  func.func @transform_7(%arg0: i32) -> (i32, i32) {
    %c0_i32 = arith.constant 0 : i32
    %c0_i32_0 = arith.constant 0 : i32
    %c0_i32_1 = arith.constant 0 : i32
    return %c0_i32, %c0_i32_0 : i32, i32
  }
  func.func @transform_8(%arg0: i32) -> (i32, i32) {
    %c0_i32 = arith.constant 0 : i32
    %c0_i32_0 = arith.constant 0 : i32
    %c0_i32_1 = arith.constant 0 : i32
    return %c0_i32, %c0_i32_0 : i32, i32
  }
  func.func @transform_9(%arg0: i32) -> (i32, i32, i32) {
    %c0_i32 = arith.constant 0 : i32
    %c0_i32_0 = arith.constant 0 : i32
    %c0_i32_1 = arith.constant 0 : i32
    %c0_i32_2 = arith.constant 0 : i32
    return %c0_i32, %c0_i32_0, %c0_i32_1 : i32, i32, i32
  }
  func.func @transform_10(%arg0: i32) -> (i32, i32, i32) {
    %c0_i32 = arith.constant 0 : i32
    %c0_i32_0 = arith.constant 0 : i32
    %c0_i32_1 = arith.constant 0 : i32
    %c0_i32_2 = arith.constant 0 : i32
    return %c0_i32, %c0_i32_0, %c0_i32_1 : i32, i32, i32
  }
  func.func @transform_11(%arg0: i32) -> (i32, i32, i32) {
    %c0_i32 = arith.constant 0 : i32
    %c0_i32_0 = arith.constant 0 : i32
    %c0_i32_1 = arith.constant 0 : i32
    %c0_i32_2 = arith.constant 0 : i32
    return %c0_i32, %c0_i32_0, %c0_i32_1 : i32, i32, i32
  }
  func.func @transform_12(%arg0: i32) -> (i32, i32, i32) {
    %c0_i32 = arith.constant 0 : i32
    %c0_i32_0 = arith.constant 0 : i32
    %c0_i32_1 = arith.constant 0 : i32
    %c0_i32_2 = arith.constant 0 : i32
    return %c0_i32, %c0_i32_0, %c0_i32_1 : i32, i32, i32
  }
  func.func @transform_13(%arg0: i32) -> (i32, i32, i32) {
    %c0_i32 = arith.constant 0 : i32
    %c0_i32_0 = arith.constant 0 : i32
    %c0_i32_1 = arith.constant 0 : i32
    %c0_i32_2 = arith.constant 0 : i32
    return %c0_i32, %c0_i32_0, %c0_i32_1 : i32, i32, i32
  }
  func.func @transform_14(%arg0: i32) -> (i32, i32) {
    %c0_i32 = arith.constant 0 : i32
    %c0_i32_0 = arith.constant 0 : i32
    %c0_i32_1 = arith.constant 0 : i32
    return %c0_i32, %c0_i32_0 : i32, i32
  }
  func.func @transform_15(%arg0: i32) -> (i32, i32) {
    %c0_i32 = arith.constant 0 : i32
    %c0_i32_0 = arith.constant 0 : i32
    %c0_i32_1 = arith.constant 0 : i32
    return %c0_i32, %c0_i32_0 : i32, i32
  }
  func.func @transform_16(%arg0: i32) -> (i32, i32) {
    %c0_i32 = arith.constant 0 : i32
    %c0_i32_0 = arith.constant 0 : i32
    return %arg0, %c0_i32 : i32, i32
  }
}

</mosaic_0001>

<bundles_post_ra>
// kernel: tpu_custom_call.1
= control target key start
LH: loop header
LB: loop body
LE: loop exit
PB: predicated region body
PF: predicated region fallthrough
CT: control target
= control target key end

     0   :  { %s5682_s0 = inlined_call_operand.vmem [shape: f32[256,8], index: 0, kind: input, shape index: {}]   ;;  %s5683_s1 = inlined_call_operand.vmem [shape: f32[8,64], index: 1, kind: input, shape index: {}]   ;;  %s5684_s2 = inlined_call_operand.vmem [shape: f32[1,64], index: 2, kind: input, shape index: {}]   ;;  %s5685_s3 = inlined_call_operand.vmem [shape: f32[8,32], index: 3, kind: input, shape index: {}]   ;;  %s5686_s4 = inlined_call_operand.vmem [shape: f32[1,32], index: 4, kind: input, shape index: {}]   ;;  %s5687_s5 = inlined_call_operand.vmem [shape: f32[64,32], index: 5, kind: input, shape index: {}]   ;;  %s5688_s6 = inlined_call_operand.vmem [shape: f32[1,32], index: 6, kind: input, shape index: {}]   ;;  %s5689_s7 = inlined_call_operand.vmem [shape: f32[32,32], index: 7, kind: input, shape index: {}]   ;;  %s5690_s8 = inlined_call_operand.vmem [shape: f32[1,32], index: 8, kind: input, shape index: {}]   ;;  %s5691_s9 = inlined_call_operand.vmem [shape: f32[4,64,32], index: 9, kind: input, shape index: {}]   ;;  %s5692_s10 = inlined_call_operand.vmem [shape: f32[4,1,32], index: 10, kind: input, shape index: {}]   ;;  %s5693_s11 = inlined_call_operand.vmem [shape: f32[4,32,32], index: 11, kind: input, shape index: {}]   ;;  %s5694_s12 = inlined_call_operand.vmem [shape: f32[4,1,32], index: 12, kind: input, shape index: {}]   ;;  %s5695_s13 = inlined_call_operand.vmem [shape: f32[4,64,32], index: 13, kind: input, shape index: {}]   ;;  %s5696_s14 = inlined_call_operand.vmem [shape: f32[32,128], index: 14, kind: input, shape index: {}]   ;;  %s5697_s15 = inlined_call_operand.vmem [shape: f32[1,128], index: 15, kind: input, shape index: {}]   ;;  %s5698_s16 = inlined_call_operand.hbm [shape: f32[32,128], index: 16, kind: output, shape index: {}]  }
   0x1   :  { %5702 = sst [smem:[#allocation8_spill]] %s5682_s0 }
   0x2   :  { %5703 = sst [smem:[#allocation9_spill]] %s5683_s1 }
   0x3   :  { %5704 = sst [smem:[#allocation10_spill]] %s5684_s2 }
   0x4   :  { %5705 = sst [smem:[#allocation11_spill]] %s5685_s3 }
   0x5   :  { %21 = vsyncpa [#allocation3], 0 }
   0x6   :  { %23 = vsyncpa [#allocation3 + $0x1], 0  ;;  %s4231_s21 = smov 0   ;;  %s4233_s22 = smov 0  }
   0x7   :  { %s4235_s23 = smov 0   ;;  %s4237_s24 = smov 0  }
   0x8 LB: > { %5706 = sst [smem:[#allocation5_spill]] %s4137_s23  ;;  %s3682_s25 = sadd.s32 4294967295, %s4141_s24   ;;  %s4141_s24 = sphi %s4237_s24, %s5715_s24   ;;  %s4137_s23 = sphi %s4235_s23, %s5717_s23   ;;  %s4133_s22 = sphi %s4233_s22, %s5719_s22   ;;  %s4129_s21 = sphi %s4231_s21, %s5718_s21  }
   0x9   : > { %s3683_s26 = sadd.s32 4294967294, %s4141_s24   ;;  %s4254_s27 = sadd.s32 1, %s4141_s24  }
   0xa   : > { %5707 = sst [smem:[#allocation6_spill]] %s4254_s27  ;;  %s377_s28 = sadd.s32 1, %s4137_s23 }
   0xb   : > { %s374_s29 = ssub.s32 %s4141_s24, %s4254_s27  ;;  %p387_p0 = scmp.ne.s32.totalorder %s4137_s23, %s4133_s22 }
   0xc   : > { %p375_p1 = scmp.eq.s32.totalorder %s374_s29, 0  ;;  %p388_p2 = scmp.eq.s32.totalorder %s3682_s25, 1 }
   0xd   : > { %p393_p3 = scmp.ne.s32.totalorder %s4133_s22, %s4129_s21  ;;  %p394_p4 = scmp.eq.s32.totalorder %s3683_s26, 1 }
   0xe   : > { %s4264_s30 = scalar_select %p375_p1, %s4137_s23, %s377_s28  }
   0xf   : > { %p4266_p5 = por %p388_p2, %p387_p0  ;;  %p4270_p6 = por %p394_p4, %p393_p3 }
  0x10   : > { %5708 = sst [smem:[#allocation7_spill]] %s4264_s30  ;;  %p3686_p7 = scmp.ge.s32.totalorder %s4141_s24, 1 }
  0x11   : > { %p466_p8 = scmp.lt.s32.totalorder %s4141_s24, 3 }
  0x13   : > { %p467_p9 = pnand %p3686_p7, %p466_p8 }
  0x14   : > { %s5711_s1 = sld [smem:[#allocation9_spill]] (!%p467_p9)  ;;  %s4279_s20 = sshll.u32 (!%p467_p9), %s3682_s25, 4 }
  0x15   : > { %470 = sbr.rel (%p467_p9) target bundleno = 2289 (0x8f1), region = 84  ;;  %p517_p10 = scmp.lt.s32.totalorder (!%p467_p9), %s4279_s20, 31 }
  0x16   : > { %s5712_s23 = sld [smem:[#allocation8_spill]] (!%p467_p9)  ;;  %s3617_s18 = scalar_lea.hbm (!%p467_p9), %s5698_s16, %s4279_s20 }
  0x17   : > { %s5713_s2 = sld [smem:[#allocation10_spill]] (!%p467_p9) }
  0x18   : > { %s5714_s3 = sld [smem:[#allocation11_spill]] (!%p467_p9) }
  0x1a   : > { %v539_v0 = vld [vmem:[%s5711_s1] sm:$0xff]  ;;  %s518_s26 = scalar_select %p517_p10, %s4279_s20, 31  ;;  %vm544_vm0 = vcmask 64512   ;;  %v751_v12 = vld [vmem:[%s5687_s5 + $0x38] sm:$0xff]  ;;  %v750_v13 = vld [vmem:[%s5687_s5 + $0x30] sm:$0xff]  ;;  %vm756_vm1 = vcmask 523264  }
  0x1b   : > { %608 = vmatpush.msra.mxu0 %v539_v0  ;;  %813 = vmatpush.msra.mxu2 %v751_v12  ;;  %v749_v14 = vld [vmem:[%s5687_s5 + $0x28] sm:$0xff]  ;;  %v748_v16 = vld [vmem:[%s5687_s5 + $0x20] sm:$0xff]  ;;  %v747_v17 = vld [vmem:[%s5687_s5 + $0x18] sm:$0xff]  ;;  %vm894_vm2 = vcmask 261120   ;;  %vm3555_vm3 = vcmask 1041409   ;;  %vm3557_vm4 = vcmask 1042434  }
  0x1c   : > { %s3689_s28 = sshll.u32 %s518_s26, 3  ;;  %v746_v18 = vld [vmem:[%s5687_s5 + $0x10] sm:$0xff]  ;;  %v745_v20 = vld [vmem:[%s5687_s5 + $0x8] sm:$0xff]  ;;  %v744_v21 = vld [vmem:[%s5687_s5] sm:$0xff]  ;;  %s4143_s26 = smov 32   ;;  %vm3559_vm5 = vcmask 1043459  }
  0x1d   : > { %s4286_s27 = scalar_lea.vmem %s5712_s23, %s3689_s28  ;;  %814 = vmatpush.msra.mxu2 %v750_v13  ;;  %v4395_v25 = vld [vmem:[%s5713_s2] ss:$0 sm:$0xff]  ;;  %v889_v62 = vld [vmem:[%s5689_s7 + $0x18] sm:$0xff]  ;;  %v888_v13 = vld [vmem:[%s5689_s7 + $0x10] sm:$0xff]  ;;  %vm3561_vm6 = vcmask 1044484   ;;  %vm3563_vm7 = vcmask 1045509  }
  0x1e   : > { %v4289_v1 = vld [vmem:[%s4286_s27] sm:$0xff]  ;;  %v4294_v2 = vld [vmem:[%s4286_s27 + $0x8] sm:$0xff]  ;;  %v4299_v3 = vld [vmem:[%s4286_s27 + $0x10] sm:$0xff]  ;;  %955 = vmatpush.msra.mxu3 %v889_v62  ;;  %vm3565_vm8 = vcmask 1046534   ;;  %vm3567_vm9 = vcmask 1047559   ;;  %s513_s28 = sand.u32 1, %s4133_s22  }
  0x1f   : > { %3690 = vmatmul.msk.f32.vlgmr.msra.gmra.mxu0 %vm544_vm0, %v4289_v1  ;;  %v4304_v4 = vld [vmem:[%s4286_s27 + $0x18] sm:$0xff]  ;;  %v4309_v5 = vld [vmem:[%s4286_s27 + $0x20] sm:$0xff]  ;;  %v4314_v6 = vld [vmem:[%s4286_s27 + $0x28] sm:$0xff]  ;;  %815 = vmatpush.msra.mxu2 %v749_v14  ;;  %s3687_s29 = sshll.u32 %s513_s28, 4  ;;  %s3620_s1 = sshll.u32 %s3617_s18, 4  ;;  %s3621_s1 = int_to_ptr.hbm [resolvable:$true] %s3620_s1 }
  0x20   : > { %v4319_v7 = vld [vmem:[%s4286_s27 + $0x30] sm:$0xff]  ;;  %v4324_v8 = vld [vmem:[%s4286_s27 + $0x38] sm:$0xff]  ;;  %v4329_v9 = vld [vmem:[%s4286_s27 + $0x40] sm:$0xff]  ;;  %956 = vmatpush.msra.mxu3 %v888_v13  ;;  %s515_s25 = scalar_lea.vmem [#allocation2], %s3687_s29  ;;  %s3606_s2 = scalar_lea.sflag [#allocation3], %s513_s28 }
  0x21   : > { %v4334_v10 = vld [vmem:[%s4286_s27 + $0x48] sm:$0xff]  ;;  %v4339_v11 = vld [vmem:[%s4286_s27 + $0x50] sm:$0xff]  ;;  %v4353_v15 = vld [vmem:[%s4286_s27 + $0x58] sm:$0xff]  ;;  %816 = vmatpush.msra.mxu2 %v748_v16  ;;  %s3618_s19 = sshll.u32 %s515_s25, 4  ;;  %s3619_s19 = int_to_ptr.vmem [resolvable:$true] %s3618_s19 }
  0x22   : > { %v4367_v19 = vld [vmem:[%s4286_s27 + $0x60] sm:$0xff]  ;;  %v4378_v22 = vld [vmem:[%s4286_s27 + $0x68] sm:$0xff]  ;;  %v4383_v23 = vld [vmem:[%s4286_s27 + $0x70] sm:$0xff] }
  0x23   : > { %817 = vmatpush.msra.mxu2 %v747_v17  ;;  %v4388_v24 = vld [vmem:[%s4286_s27 + $0x78] sm:$0xff]  ;;  %v887_v17 = vld [vmem:[%s5689_s7 + $0x8] sm:$0xff]  ;;  %s4099_s27 = scalar_lea.hbm %s5698_s16, 32 }
  0x24   : > { %957 = vmatpush.msra.mxu3 %v887_v17 }
  0x25   : > { %818 = vmatpush.msra.mxu2 %v746_v18 }
  0x27   : > { %3691 = vmatmul.msk.f32.gmra.mxu0 %vm544_vm0, %v4294_v2  ;;  %819 = vmatpush.msra.mxu2 %v745_v20  ;;  %v886_v20 = vld [vmem:[%s5689_s7] sm:$0xff] }
  0x28   : > { %958 = vmatpush.msra.mxu3 %v886_v20 }
  0x29   : > { %820 = vmatpush.msra.mxu2 %v744_v21 }
  0x2f   : > { %3692 = vmatmul.msk.f32.gmra.mxu0 %vm544_vm0, %v4299_v3 }
  0x37   : > { %3693 = vmatmul.msk.f32.gmra.mxu0 %vm544_vm0, %v4304_v4 }
  0x3f   : > { %3694 = vmatmul.msk.f32.gmra.mxu0 %vm544_vm0, %v4309_v5 }
  0x47   : > { %3695 = vmatmul.msk.f32.gmra.mxu0 %vm544_vm0, %v4314_v6 }
  0x4f   : > { %3696 = vmatmul.msk.f32.gmra.mxu0 %vm544_vm0, %v4319_v7 }
  0x57   : > { %3697 = vmatmul.msk.f32.gmra.mxu0 %vm544_vm0, %v4324_v8 }
  0x5f   : > { %3698 = vmatmul.msk.f32.gmra.mxu0 %vm544_vm0, %v4329_v9 }
  0x67   : > { %3699 = vmatmul.msk.f32.gmra.mxu0 %vm544_vm0, %v4334_v10 }
  0x6f   : > { %3700 = vmatmul.msk.f32.gmra.mxu0 %vm544_vm0, %v4339_v11 }
  0x77   : > { %3701 = vmatmul.msk.f32.gmra.mxu0 %vm544_vm0, %v4353_v15 }
  0x7f   : > { %3702 = vmatmul.msk.f32.gmra.mxu0 %vm544_vm0, %v4367_v19 }
  0x87   : > { %3703 = vmatmul.msk.f32.gmra.mxu0 %vm544_vm0, %v4378_v22 }
  0x8f   : > { %3704 = vmatmul.msk.f32.gmra.mxu0 %vm544_vm0, %v4383_v23 }
  0x97   : > { %3705 = vmatmul.msk.f32.gmra.mxu0 %vm544_vm0, %v4388_v24 }
  0x9c   : > { %v610_v26 = vpop.f32.mrf.mxu0 }
  0x9d   : > { %v611_v27 = vadd.f32 %v4395_v25, %v610_v26 }
  0x9f   : > { %v728_v28 = vmax.f32 %v611_v27, 0.0  ;;  %v658_v27 = vld [vmem:[%s5714_s3] sm:$0xff]  ;;  %s4093_s3 = sshra.s32 %s3621_s1, 4  ;;  %s4094_s3 = int_to_ptr.hbm [resolvable:$true] %s4093_s3 }
  0xa0   : > { %678 = vmatpush.msra.mxu1 %v658_v27  ;;  %p4100_p0 = scmp.lt.s32.totalorder %s4094_s3, %s5698_s16 }
  0xa1   : > { %3722 = vmatmul.msk.f32.vlgmr.msra.gmra.mxu2 %vm756_vm1, %v728_v28  ;;  %3706 = vmatmul.msk.f32.vlgmr.msra.gmra.mxu1 %vm544_vm0, %v4289_v1 }
  0xa4   : > { %v613_v29 = vpop.f32.mrf.mxu0 }
  0xa5   : > { %v614_v30 = vadd.f32 %v4395_v25, %v613_v29 }
  0xa7   : > { %v729_v31 = vmax.f32 %v614_v30, 0.0 }
  0xa9   : > { %3723 = vmatmul.msk.f32.gmra.mxu2 %vm756_vm1, %v729_v31  ;;  %3707 = vmatmul.msk.f32.gmra.mxu1 %vm544_vm0, %v4294_v2 }
  0xac   : > { %v616_v32 = vpop.f32.mrf.mxu0 }
  0xad   : > { %v617_v33 = vadd.f32 %v4395_v25, %v616_v32  ;;  %v4453_v32 = vld [vmem:[%s5688_s6] ss:$0 sm:$0xff] }
  0xaf   : > { %v730_v34 = vmax.f32 %v617_v33, 0.0 }
  0xb1   : > { %3724 = vmatmul.msk.f32.gmra.mxu2 %vm756_vm1, %v730_v34  ;;  %3708 = vmatmul.msk.f32.gmra.mxu1 %vm544_vm0, %v4299_v3 }
  0xb4   : > { %v619_v35 = vpop.f32.mrf.mxu0 }
  0xb5   : > { %v620_v36 = vadd.f32 %v4395_v25, %v619_v35 }
  0xb7   : > { %v731_v37 = vmax.f32 %v620_v36, 0.0 }
  0xb9   : > { %3725 = vmatmul.msk.f32.gmra.mxu2 %vm756_vm1, %v731_v37  ;;  %3709 = vmatmul.msk.f32.gmra.mxu1 %vm544_vm0, %v4304_v4 }
  0xbc   : > { %v622_v38 = vpop.f32.mrf.mxu0 }
  0xbd   : > { %v623_v39 = vadd.f32 %v4395_v25, %v622_v38 }
  0xbf   : > { %v732_v40 = vmax.f32 %v623_v39, 0.0 }
  0xc1   : > { %3726 = vmatmul.msk.f32.gmra.mxu2 %vm756_vm1, %v732_v40  ;;  %3710 = vmatmul.msk.f32.gmra.mxu1 %vm544_vm0, %v4309_v5 }
  0xc4   : > { %v625_v41 = vpop.f32.mrf.mxu0 }
  0xc5   : > { %v626_v42 = vadd.f32 %v4395_v25, %v625_v41 }
  0xc7   : > { %v733_v43 = vmax.f32 %v626_v42, 0.0 }
  0xc9   : > { %3727 = vmatmul.msk.f32.gmra.mxu2 %vm756_vm1, %v733_v43  ;;  %3711 = vmatmul.msk.f32.gmra.mxu1 %vm544_vm0, %v4314_v6 }
  0xcc   : > { %v628_v44 = vpop.f32.mrf.mxu0 }
  0xcd   : > { %v629_v45 = vadd.f32 %v4395_v25, %v628_v44 }
  0xcf   : > { %v734_v46 = vmax.f32 %v629_v45, 0.0 }
  0xd1   : > { %3728 = vmatmul.msk.f32.gmra.mxu2 %vm756_vm1, %v734_v46  ;;  %3712 = vmatmul.msk.f32.gmra.mxu1 %vm544_vm0, %v4319_v7 }
  0xd4   : > { %v631_v47 = vpop.f32.mrf.mxu0 }
  0xd5   : > { %v632_v48 = vadd.f32 %v4395_v25, %v631_v47 }
  0xd7   : > { %v735_v49 = vmax.f32 %v632_v48, 0.0 }
  0xd9   : > { %3729 = vmatmul.msk.f32.gmra.mxu2 %vm756_vm1, %v735_v49  ;;  %3713 = vmatmul.msk.f32.gmra.mxu1 %vm544_vm0, %v4324_v8 }
  0xdc   : > { %v634_v50 = vpop.f32.mrf.mxu0 }
  0xdd   : > { %v635_v51 = vadd.f32 %v4395_v25, %v634_v50 }
  0xdf   : > { %v736_v52 = vmax.f32 %v635_v51, 0.0 }
  0xe1   : > { %3730 = vmatmul.msk.f32.gmra.mxu2 %vm756_vm1, %v736_v52  ;;  %3714 = vmatmul.msk.f32.gmra.mxu1 %vm544_vm0, %v4329_v9 }
  0xe4   : > { %v637_v53 = vpop.f32.mrf.mxu0 }
  0xe5   : > { %v638_v54 = vadd.f32 %v4395_v25, %v637_v53 }
  0xe7   : > { %v737_v55 = vmax.f32 %v638_v54, 0.0 }
  0xe9   : > { %3731 = vmatmul.msk.f32.gmra.mxu2 %vm756_vm1, %v737_v55  ;;  %3715 = vmatmul.msk.f32.gmra.mxu1 %vm544_vm0, %v4334_v10 }
  0xec   : > { %v640_v56 = vpop.f32.mrf.mxu0 }
  0xed   : > { %v641_v57 = vadd.f32 %v4395_v25, %v640_v56 }
  0xef   : > { %v738_v58 = vmax.f32 %v641_v57, 0.0 }
  0xf1   : > { %3732 = vmatmul.msk.f32.gmra.mxu2 %vm756_vm1, %v738_v58  ;;  %3716 = vmatmul.msk.f32.gmra.mxu1 %vm544_vm0, %v4339_v11 }
  0xf4   : > { %v643_v59 = vpop.f32.mrf.mxu0 }
  0xf5   : > { %v644_v60 = vadd.f32 %v4395_v25, %v643_v59 }
  0xf7   : > { %v739_v61 = vmax.f32 %v644_v60, 0.0 }
  0xf9   : > { %3733 = vmatmul.msk.f32.gmra.mxu2 %vm756_vm1, %v739_v61  ;;  %3717 = vmatmul.msk.f32.gmra.mxu1 %vm544_vm0, %v4353_v15 }
  0xfc   : > { %v646_v63 = vpop.f32.mrf.mxu0 }
  0xfd   : > { %v647_v0 = vadd.f32 %v4395_v25, %v646_v63 }
  0xff   : > { %v740_v12 = vmax.f32 %v647_v0, 0.0 }
 0x101   : > { %3734 = vmatmul.msk.f32.gmra.mxu2 %vm756_vm1, %v740_v12  ;;  %3718 = vmatmul.msk.f32.gmra.mxu1 %vm544_vm0, %v4367_v19 }
 0x104   : > { %v649_v14 = vpop.f32.mrf.mxu0 }
 0x105   : > { %v650_v16 = vadd.f32 %v4395_v25, %v649_v14 }
 0x107   : > { %v741_v18 = vmax.f32 %v650_v16, 0.0  ;;  %v4519_v16 = vld [vmem:[%s5686_s4] ss:$0 sm:$0xff] }
 0x109   : > { %3735 = vmatmul.msk.f32.gmra.mxu2 %vm756_vm1, %v741_v18  ;;  %3719 = vmatmul.msk.f32.gmra.mxu1 %vm544_vm0, %v4378_v22  ;;  %v4524_v18 = vld [vmem:[%s5690_s8] ss:$0 sm:$0xff] }
 0x10c   : > { %v652_v21 = vpop.f32.mrf.mxu0 }
 0x10d   : > { %v653_v26 = vadd.f32 %v4395_v25, %v652_v21 }
 0x10f   : > { %v742_v28 = vmax.f32 %v653_v26, 0.0  ;;  %v1238_v26 = vld [vmem:[%s5691_s9 + $0x30] sm:$0xff] }
 0x111   : > { %3736 = vmatmul.msk.f32.gmra.mxu2 %vm756_vm1, %v742_v28  ;;  %3720 = vmatmul.msk.f32.gmra.mxu1 %vm544_vm0, %v4383_v23 }
 0x114   : > { %v655_v29 = vpop.f32.mrf.mxu0 }
 0x115   : > { %v656_v30 = vadd.f32 %v4395_v25, %v655_v29 }
 0x117   : > { %v743_v31 = vmax.f32 %v656_v30, 0.0 }
 0x119   : > { %3737 = vmatmul.msk.f32.gmra.mxu2 %vm756_vm1, %v743_v31  ;;  %3721 = vmatmul.msk.f32.gmra.mxu1 %vm544_vm0, %v4388_v24  ;;  %v1239_v24 = vld [vmem:[%s5691_s9 + $0x38] sm:$0xff] }
 0x11a   : > { %1300 = vmatpush.msrb.mxu0 %v1239_v24 }
 0x11c   : > { %1301 = vmatpush.msrb.mxu0 %v1238_v26 }
 0x11e   : > { %v680_v58 = vpop.f32.mrf.mxu1 }
 0x11f   : > { %v681_v20 = vadd.f32 %v4519_v16, %v680_v58 }
 0x124   : > { %v822_v1 = vpop.f32.mrf.mxu2 }
 0x125   : > { %v823_v33 = vadd.f32 %v4453_v32, %v822_v1 }
 0x126   : > { %v683_v23 = vpop.f32.mrf.mxu1 }
 0x127   : > { %v870_v34 = vmax.f32 %v823_v33, 0.0 }
 0x129   : > { %3738 = vmatmul.msk.f32.vlgmr.msra.gmra.mxu3 %vm894_vm2, %v870_v34 }
 0x12c   : > { %v825_v2 = vpop.f32.mrf.mxu2 }
 0x12d   : > { %v826_v25 = vadd.f32 %v4453_v32, %v825_v2 }
 0x12e   : > { %v686_v13 = vpop.f32.mrf.mxu1 }
 0x12f   : > { %v871_v35 = vmax.f32 %v826_v25, 0.0 }
 0x131   : > { %3739 = vmatmul.msk.f32.gmra.mxu3 %vm894_vm2, %v871_v35 }
 0x134   : > { %v828_v3 = vpop.f32.mrf.mxu2 }
 0x135   : > { %v829_v36 = vadd.f32 %v4453_v32, %v828_v3 }
 0x136   : > { %v689_v17 = vpop.f32.mrf.mxu1 }
 0x137   : > { %v872_v37 = vmax.f32 %v829_v36, 0.0 }
 0x139   : > { %3740 = vmatmul.msk.f32.gmra.mxu3 %vm894_vm2, %v872_v37 }
 0x13c   : > { %v831_v4 = vpop.f32.mrf.mxu2 }
 0x13d   : > { %v832_v38 = vadd.f32 %v4453_v32, %v831_v4  ;;  %v687_v4 = vadd.f32 %v4519_v16, %v686_v13 }
 0x13e   : > { %v692_v31 = vpop.f32.mrf.mxu1 }
 0x13f   : > { %v873_v39 = vmax.f32 %v832_v38, 0.0 }
 0x141   : > { %3741 = vmatmul.msk.f32.gmra.mxu3 %vm894_vm2, %v873_v39 }
 0x144   : > { %v834_v5 = vpop.f32.mrf.mxu2 }
 0x145   : > { %v835_v40 = vadd.f32 %v4453_v32, %v834_v5 }
 0x147   : > { %v874_v41 = vmax.f32 %v835_v40, 0.0  ;;  %v695_v40 = vpop.f32.mrf.mxu1 }
 0x149   : > { %3742 = vmatmul.msk.f32.gmra.mxu3 %vm894_vm2, %v874_v41  ;;  %v1237_v41 = vld [vmem:[%s5691_s9 + $0x28] sm:$0xff] }
 0x14a   : > { %1302 = vmatpush.msrb.mxu0 %v1237_v41 }
 0x14c   : > { %v837_v6 = vpop.f32.mrf.mxu2 }
 0x14d   : > { %v838_v42 = vadd.f32 %v4453_v32, %v837_v6 }
 0x14f   : > { %v875_v43 = vmax.f32 %v838_v42, 0.0 }
 0x151   : > { %3743 = vmatmul.msk.f32.gmra.mxu3 %vm894_vm2, %v875_v43 }
 0x154   : > { %v840_v7 = vpop.f32.mrf.mxu2 }
 0x155   : > { %v841_v44 = vadd.f32 %v4453_v32, %v840_v7 }
 0x157   : > { %v876_v45 = vmax.f32 %v841_v44, 0.0 }
 0x159   : > { %3744 = vmatmul.msk.f32.gmra.mxu3 %vm894_vm2, %v876_v45 }
 0x15c   : > { %v843_v8 = vpop.f32.mrf.mxu2 }
 0x15d   : > { %v844_v46 = vadd.f32 %v4453_v32, %v843_v8 }
 0x15f   : > { %v877_v47 = vmax.f32 %v844_v46, 0.0  ;;  %v690_v46 = vadd.f32 %v4519_v16, %v689_v17 }
 0x161   : > { %3745 = vmatmul.msk.f32.gmra.mxu3 %vm894_vm2, %v877_v47 }
 0x164   : > { %v846_v9 = vpop.f32.mrf.mxu2 }
 0x165   : > { %v847_v48 = vadd.f32 %v4453_v32, %v846_v9 }
 0x167   : > { %v878_v49 = vmax.f32 %v847_v48, 0.0 }
 0x169   : > { %3746 = vmatmul.msk.f32.gmra.mxu3 %vm894_vm2, %v878_v49 }
 0x16c   : > { %v849_v10 = vpop.f32.mrf.mxu2 }
 0x16d   : > { %v850_v50 = vadd.f32 %v4453_v32, %v849_v10 }
 0x16f   : > { %v879_v51 = vmax.f32 %v850_v50, 0.0  ;;  %v698_v50 = vpop.f32.mrf.mxu1 }
 0x171   : > { %3747 = vmatmul.msk.f32.gmra.mxu3 %vm894_vm2, %v879_v51 }
 0x174   : > { %v852_v11 = vpop.f32.mrf.mxu2 }
 0x175   : > { %v853_v52 = vadd.f32 %v4453_v32, %v852_v11 }
 0x177   : > { %v880_v53 = vmax.f32 %v853_v52, 0.0 }
 0x179   : > { %3748 = vmatmul.msk.f32.gmra.mxu3 %vm894_vm2, %v880_v53 }
 0x17c   : > { %v855_v15 = vpop.f32.mrf.mxu2 }
 0x17d   : > { %v856_v54 = vadd.f32 %v4453_v32, %v855_v15 }
 0x17f   : > { %v881_v55 = vmax.f32 %v856_v54, 0.0  ;;  %v693_v54 = vadd.f32 %v4519_v16, %v692_v31  ;;  %v699_v31 = vadd.f32 %v4519_v16, %v698_v50  ;;  %v1234_v50 = vld [vmem:[%s5691_s9 + $0x10] sm:$0xff] }
 0x181   : > { %3749 = vmatmul.msk.f32.gmra.mxu3 %vm894_vm2, %v881_v55 }
 0x184   : > { %v858_v19 = vpop.f32.mrf.mxu2 }
 0x185   : > { %v859_v56 = vadd.f32 %v4453_v32, %v858_v19 }
 0x187   : > { %v882_v57 = vmax.f32 %v859_v56, 0.0 }
 0x189   : > { %3750 = vmatmul.msk.f32.gmra.mxu3 %vm894_vm2, %v882_v57  ;;  %v1236_v57 = vld [vmem:[%s5691_s9 + $0x20] sm:$0xff] }
 0x18a   : > { %1303 = vmatpush.msrb.mxu0 %v1236_v57 }
 0x18c   : > { %v861_v22 = vpop.f32.mrf.mxu2 }
 0x18d   : > { %v862_v59 = vadd.f32 %v4453_v32, %v861_v22 }
 0x18f   : > { %v883_v60 = vmax.f32 %v862_v59, 0.0 }
 0x191   : > { %3751 = vmatmul.msk.f32.gmra.mxu3 %vm894_vm2, %v883_v60 }
 0x194   : > { %v864_v61 = vpop.f32.mrf.mxu2 }
 0x195   : > { %v865_v62 = vadd.f32 %v4453_v32, %v864_v61  ;;  %v701_v61 = vpop.f32.mrf.mxu1 }
 0x197   : > { %v884_v63 = vmax.f32 %v865_v62, 0.0 }
 0x199   : > { %3752 = vmatmul.msk.f32.gmra.mxu3 %vm894_vm2, %v884_v63 }
 0x19c   : > { %v867_v0 = vpop.f32.mrf.mxu2 }
 0x19d   : > { %v868_v12 = vadd.f32 %v4453_v32, %v867_v0  ;;  %v684_v32 = vadd.f32 %v4519_v16, %v683_v23  ;;  %v696_v0 = vadd.f32 %v4519_v16, %v695_v40 }
 0x19f   : > { %v885_v14 = vmax.f32 %v868_v12, 0.0 }
 0x1a1   : > { %3753 = vmatmul.msk.f32.gmra.mxu3 %vm894_vm2, %v885_v14 }
 0x1ac   : > { %v960_v21 = vpop.f32.mrf.mxu3 }
 0x1ad   : > { %v961_v27 = vadd.f32 %v4524_v18, %v960_v21 }
 0x1af   : > { %v4531_v28 = vadd.f32 %v961_v27, %v681_v20 }
 0x1b1   : > { %v1024_v29 = vsel %vm894_vm2, %v4531_v28, -inf }
 0x1b2   : > { %v1025_v30 = vrot.slane %v1024_v29, 4 }
 0x1b4   : > { %v963_v1 = vpop.f32.mrf.mxu3  ;;  %v1026_v33 = vmax.f32 %v1024_v29, %v1025_v30  ;;  %v704_v30 = vpop.f32.mrf.mxu1 }
 0x1b5   : > { %v964_v34 = vadd.f32 %v4524_v18, %v963_v1 }
 0x1b6   : > { %v1027_v2 = vrot.slane %v1026_v33, 2 }
 0x1b7   : > { %v4537_v25 = vadd.f32 %v964_v34, %v684_v32  ;;  %v1235_v34 = vld [vmem:[%s5691_s9 + $0x18] sm:$0xff] }
 0x1b8   : > { %v1028_v35 = vmax.f32 %v1026_v33, %v1027_v2  ;;  %1304 = vmatpush.msrb.mxu0 %v1235_v34 }
 0x1b9   : > { %v1031_v3 = vsel %vm894_vm2, %v4537_v25, -inf }
 0x1ba   : > { %v1032_v36 = vrot.slane %v1031_v3, 4  ;;  %v1029_v37 = vrot.slane %v1028_v35, 1  ;;  %1305 = vmatpush.msrb.mxu0 %v1234_v50 }
 0x1bc   : > { %v1033_v38 = vmax.f32 %v1031_v3, %v1032_v36  ;;  %v966_v39 = vpop.f32.mrf.mxu3  ;;  %v1030_v5 = vmax.f32 %v1028_v35, %v1029_v37 }
 0x1bd   : > { %v967_v6 = vadd.f32 %v4524_v18, %v966_v39  ;;  %v702_v39 = vadd.f32 %v4519_v16, %v701_v61 }
 0x1be   : > { %1152 = vrot.lane.b32.xlu0 %v1030_v5, %s4143_s26  ;;  %v1034_v42 = vrot.slane %v1033_v38, 2 }
 0x1bf   : > { %v4547_v43 = vadd.f32 %v967_v6, %v687_v4  ;;  %v707_v6 = vpop.f32.mrf.mxu1 }
 0x1c0   : > { %v1035_v7 = vmax.f32 %v1033_v38, %v1034_v42  ;;  %v708_v57 = vadd.f32 %v4519_v16, %v707_v6 }
 0x1c1   : > { %v1038_v44 = vsel %vm894_vm2, %v4547_v43, -inf }
 0x1c2   : > { %v1039_v45 = vrot.slane %v1038_v44, 4  ;;  %v1036_v8 = vrot.slane %v1035_v7, 1 }
 0x1c4   : > { %v969_v47 = vpop.f32.mrf.mxu3  ;;  %v1037_v9 = vmax.f32 %v1035_v7, %v1036_v8  ;;  %v1040_v48 = vmax.f32 %v1038_v44, %v1039_v45 }
 0x1c5   : > { %v970_v49 = vadd.f32 %v4524_v18, %v969_v47 }
 0x1c6   : > { %1154 = vrot.lane.b32.xlu0 %v1037_v9, %s4143_s26  ;;  %v1041_v10 = vrot.slane %v1040_v48, 2  ;;  %v705_v9 = vadd.f32 %v4519_v16, %v704_v30 }
 0x1c7   : > { %v4554_v51 = vadd.f32 %v970_v49, %v690_v46 }
 0x1c8   : > { %v1042_v11 = vmax.f32 %v1040_v48, %v1041_v10 }
 0x1c9   : > { %v1045_v52 = vsel %vm894_vm2, %v4554_v51, -inf }
 0x1ca   : > { %v1046_v53 = vrot.slane %v1045_v52, 4  ;;  %v1043_v15 = vrot.slane %v1042_v11, 1 }
 0x1cc   : > { %v1047_v55 = vmax.f32 %v1045_v52, %v1046_v53  ;;  %v972_v19 = vpop.f32.mrf.mxu3  ;;  %v1044_v56 = vmax.f32 %v1042_v11, %v1043_v15  ;;  %v710_v53 = vpop.f32.mrf.mxu1 }
 0x1cd   : > { %v973_v22 = vadd.f32 %v4524_v18, %v972_v19 }
 0x1ce   : > { %1156 = vrot.lane.b32.xlu1 %v1044_v56, %s4143_s26  ;;  %v1048_v58 = vrot.slane %v1047_v55, 2 }
 0x1cf   : > { %v4564_v59 = vadd.f32 %v973_v22, %v693_v54 }
 0x1d0   : > { %v1049_v60 = vmax.f32 %v1047_v55, %v1048_v58 }
 0x1d1   : > { %v1052_v23 = vsel %vm894_vm2, %v4564_v59, -inf }
 0x1d2   : > { %v1053_v62 = vrot.slane %v1052_v23, 4  ;;  %v1050_v63 = vrot.slane %v1049_v60, 1 }
 0x1d4   : > { %v975_v24 = vpop.f32.mrf.mxu3  ;;  %v1051_v12 = vmax.f32 %v1049_v60, %v1050_v63  ;;  %v1054_v13 = vmax.f32 %v1052_v23, %v1053_v62 }
 0x1d5   : > { %v976_v14 = vadd.f32 %v4524_v18, %v975_v24 }
 0x1d6   : > { %1158 = vrot.lane.b32.xlu1 %v1051_v12, %s4143_s26  ;;  %v1055_v17 = vrot.slane %v1054_v13, 2 }
 0x1d7   : > { %v4571_v20 = vadd.f32 %v976_v14, %v696_v0  ;;  %v713_v0 = vpop.f32.mrf.mxu1  ;;  %v711_v14 = vadd.f32 %v4519_v16, %v710_v53 }
 0x1d8   : > { %v1056_v21 = vmax.f32 %v1054_v13, %v1055_v17 }
 0x1d9   : > { %v1059_v26 = vsel %vm894_vm2, %v4571_v20, -inf }
 0x1da   : > { %v1060_v27 = vrot.slane %v1059_v26, 4  ;;  %v1057_v29 = vrot.slane %v1056_v21, 1 }
 0x1dc   : > { %v1061_v32 = vmax.f32 %v1059_v26, %v1060_v27  ;;  %v978_v1 = vpop.f32.mrf.mxu3  ;;  %v1058_v33 = vmax.f32 %v1056_v21, %v1057_v29  ;;  %v1233_v27 = vld [vmem:[%s5691_s9 + $0x8] sm:$0xff] }
 0x1dd   : > { %v979_v2 = vadd.f32 %v4524_v18, %v978_v1  ;;  %1306 = vmatpush.msrb.mxu0 %v1233_v27 }
 0x1de   : > { %1160 = vrot.lane.b32.xlu2 %v1058_v33, %s4143_s26  ;;  %v1062_v35 = vrot.slane %v1061_v32, 2 }
 0x1df   : > { %v4581_v3 = vadd.f32 %v979_v2, %v699_v31  ;;  %v716_v2 = vpop.f32.mrf.mxu1 }
 0x1e0   : > { %v1063_v36 = vmax.f32 %v1061_v32, %v1062_v35  ;;  %v1501_v35 = vld [vmem:[%s5695_s13 + $0x38] sm:$0xff] }
 0x1e1   : > { %v1066_v37 = vsel %vm894_vm2, %v4581_v3, -inf  ;;  %1558 = vmatpush.msrb.mxu3 %v1501_v35 }
 0x1e2   : > { %v1067_v4 = vrot.slane %v1066_v37, 4  ;;  %v1064_v38 = vrot.slane %v1063_v36, 1 }
 0x1e4   : > { %v1068_v5 = vmax.f32 %v1066_v37, %v1067_v4  ;;  %v981_v40 = vpop.f32.mrf.mxu3  ;;  %v1065_v41 = vmax.f32 %v1063_v36, %v1064_v38  ;;  %v714_v36 = vadd.f32 %v4519_v16, %v713_v0 }
 0x1e5   : > { %v982_v42 = vadd.f32 %v4524_v18, %v981_v40 }
 0x1e6   : > { %1162 = vrot.lane.b32.xlu2 %v1065_v41, %s4143_s26  ;;  %v1069_v7 = vrot.slane %v1068_v5, 2  ;;  %v1499_v41 = vld [vmem:[%s5695_s13 + $0x28] sm:$0xff] }
 0x1e7   : > { %v4588_v44 = vadd.f32 %v982_v42, %v702_v39  ;;  %v1500_v39 = vld [vmem:[%s5695_s13 + $0x30] sm:$0xff]  ;;  %v719_v50 = vpop.f32.mrf.mxu1 }
 0x1e8   : > { %v1070_v45 = vmax.f32 %v1068_v5, %v1069_v7  ;;  %1559 = vmatpush.msrb.mxu3 %v1500_v39  ;;  %v1498_v7 = vld [vmem:[%s5695_s13 + $0x20] sm:$0xff] }
 0x1e9   : > { %v1073_v8 = vsel %vm894_vm2, %v4588_v44, -inf }
 0x1ea   : > { %v1074_v46 = vrot.slane %v1073_v8, 4  ;;  %v1071_v47 = vrot.slane %v1070_v45, 1  ;;  %1560 = vmatpush.msrb.mxu3 %v1499_v41 }
 0x1ec   : > { %v1075_v48 = vmax.f32 %v1073_v8, %v1074_v46  ;;  %v984_v49 = vpop.f32.mrf.mxu3  ;;  %v1072_v10 = vmax.f32 %v1070_v45, %v1071_v47  ;;  %1561 = vmatpush.msrb.mxu3 %v1498_v7  ;;  %v1497_v47 = vld [vmem:[%s5695_s13 + $0x18] sm:$0xff] }
 0x1ed   : > { %v985_v11 = vadd.f32 %v4524_v18, %v984_v49 }
 0x1ee   : > { %1164 = vrot.lane.b32.xlu0 %v1072_v10, %s4143_s26  ;;  %v1076_v52 = vrot.slane %v1075_v48, 2  ;;  %1562 = vmatpush.msrb.mxu3 %v1497_v47 }
 0x1ef   : > { %v4598_v15 = vadd.f32 %v985_v11, %v705_v9  ;;  %v717_v9 = vadd.f32 %v4519_v16, %v716_v2  ;;  %v1232_v11 = vld [vmem:[%s5691_s9] sm:$0xff] }
 0x1f0   : > { %v1077_v54 = vmax.f32 %v1075_v48, %v1076_v52  ;;  %v1496_v52 = vld [vmem:[%s5695_s13 + $0x10] sm:$0xff]  ;;  %1307 = vmatpush.msrb.mxu0 %v1232_v11 }
 0x1f1   : > { %v1080_v55 = vsel %vm894_vm2, %v4598_v15, -inf  ;;  %1563 = vmatpush.msrb.mxu3 %v1496_v52 }
 0x1f2   : > { %v1081_v19 = vrot.slane %v1080_v55, 4  ;;  %v1078_v56 = vrot.slane %v1077_v54, 1 }
 0x1f4   : > { %v1082_v22 = vmax.f32 %v1080_v55, %v1081_v19  ;;  %v987_v58 = vpop.f32.mrf.mxu3  ;;  %v1079_v60 = vmax.f32 %v1077_v54, %v1078_v56  ;;  %v1495_v55 = vld [vmem:[%s5695_s13 + $0x8] sm:$0xff] }
 0x1f5   : > { %v988_v61 = vadd.f32 %v4524_v18, %v987_v58  ;;  %1564 = vmatpush.msrb.mxu3 %v1495_v55  ;;  %v1375_v55 = vld [vmem:[%s5693_s11 + $0x10] sm:$0xff] }
 0x1f6   : > { %1166 = vrot.lane.b32.xlu1 %v1079_v60, %s4143_s26  ;;  %v1083_v23 = vrot.slane %v1082_v22, 2 }
 0x1f7   : > { %v4605_v62 = vadd.f32 %v988_v61, %v708_v57  ;;  %v1494_v57 = vld [vmem:[%s5695_s13] sm:$0xff]  ;;  %v720_v61 = vadd.f32 %v4519_v16, %v719_v50 }
 0x1f8   : > { %v1084_v63 = vmax.f32 %v1082_v22, %v1083_v23  ;;  %1565 = vmatpush.msrb.mxu3 %v1494_v57 }
 0x1f9   : > { %v1087_v24 = vsel %vm894_vm2, %v4605_v62, -inf }
 0x1fa   : > { %v1088_v12 = vrot.slane %v1087_v24, 4  ;;  %v1085_v13 = vrot.slane %v1084_v63, 1 }
 0x1fc   : > { %v1089_v17 = vmax.f32 %v1087_v24, %v1088_v12  ;;  %v990_v21 = vpop.f32.mrf.mxu3  ;;  %v1086_v26 = vmax.f32 %v1084_v63, %v1085_v13  ;;  %v1376_v24 = vld [vmem:[%s5693_s11 + $0x18] sm:$0xff]  ;;  %v722_v13 = vpop.f32.mrf.mxu1 }
 0x1fd   : > { %v991_v29 = vadd.f32 %v4524_v18, %v990_v21  ;;  %1441 = vmatpush.msrb.mxu1 %v1376_v24 }
 0x1fe   : > { %1168 = vrot.lane.b32.xlu2 %v1086_v26, %s4143_s26  ;;  %v1090_v30 = vrot.slane %v1089_v17, 2 }
 0x1ff   : > { %v4615_v31 = vadd.f32 %v991_v29, %v711_v14  ;;  %1442 = vmatpush.msrb.mxu1 %v1375_v55 }
 0x200   : > { %v1091_v32 = vmax.f32 %v1089_v17, %v1090_v30  ;;  %v723_v30 = vadd.f32 %v4519_v16, %v722_v13 }
 0x201   : > { %v1094_v1 = vsel %vm894_vm2, %v4615_v31, -inf }
 0x202   : > { %v1095_v33 = vrot.slane %v1094_v1, 4  ;;  %v1092_v34 = vrot.slane %v1091_v32, 1 }
 0x204   : > { %v1096_v37 = vmax.f32 %v1094_v1, %v1095_v33  ;;  %v993_v4 = vpop.f32.mrf.mxu3  ;;  %v1093_v38 = vmax.f32 %v1091_v32, %v1092_v34 }
 0x205   : > { %v994_v5 = vadd.f32 %v4524_v18, %v993_v4 }
 0x206   : > { %1170 = vrot.lane.b32.xlu0 %v1093_v38, %s4143_s26  ;;  %v1097_v40 = vrot.slane %v1096_v37, 2 }
 0x207   : > { %v4631_v6 = vadd.f32 %v994_v5, %v714_v36  ;;  %v725_v36 = vpop.f32.mrf.mxu1 }
 0x208   : > { %v1098_v42 = vmax.f32 %v1096_v37, %v1097_v40  ;;  %v726_v5 = vadd.f32 %v4519_v16, %v725_v36 }
 0x209   : > { %v1101_v45 = vsel %vm894_vm2, %v4631_v6, -inf }
 0x20a   : > { %v1102_v8 = vrot.slane %v1101_v45, 4  ;;  %v1099_v46 = vrot.slane %v1098_v42, 1 }
 0x20c   : > { %v1103_v48 = vmax.f32 %v1101_v45, %v1102_v8  ;;  %v996_v49 = vpop.f32.mrf.mxu3  ;;  %v1100_v10 = vmax.f32 %v1098_v42, %v1099_v46 }
 0x20d   : > { %v997_v53 = vadd.f32 %v4524_v18, %v996_v49 }
 0x20e   : > { %1172 = vrot.lane.b32.xlu1 %v1100_v10, %s4143_s26  ;;  %v1104_v54 = vrot.slane %v1103_v48, 2 }
 0x20f   : > { %v4653_v19 = vadd.f32 %v997_v53, %v717_v9 }
 0x210   : > { %v1105_v56 = vmax.f32 %v1103_v48, %v1104_v54 }
 0x211   : > { %v1108_v22 = vsel %vm894_vm2, %v4653_v19, -inf }
 0x212   : > { %v1109_v58 = vrot.slane %v1108_v22, 4  ;;  %v1106_v60 = vrot.slane %v1105_v56, 1 }
 0x214   : > { %v1110_v23 = vmax.f32 %v1108_v22, %v1109_v58  ;;  %v999_v63 = vpop.f32.mrf.mxu3  ;;  %v1107_v0 = vmax.f32 %v1105_v56, %v1106_v60 }
 0x215   : > { %v1000_v12 = vadd.f32 %v4524_v18, %v999_v63 }
 0x216   : > { %1174 = vrot.lane.b32.xlu2 %v1107_v0, %s4143_s26  ;;  %v1111_v14 = vrot.slane %v1110_v23, 2 }
 0x217   : > { %v4666_v17 = vadd.f32 %v1000_v12, %v720_v61  ;;  %v1374_v12 = vld [vmem:[%s5693_s11 + $0x8] sm:$0xff] }
 0x218   : > { %v1112_v21 = vmax.f32 %v1110_v23, %v1111_v14  ;;  %1443 = vmatpush.msrb.mxu1 %v1374_v12 }
 0x219   : > { %v1115_v26 = vsel %vm894_vm2, %v4666_v17, -inf }
 0x21a   : > { %v1116_v27 = vrot.slane %v1115_v26, 4  ;;  %v1113_v29 = vrot.slane %v1112_v21, 1 }
 0x21c   : > { %v1117_v32 = vmax.f32 %v1115_v26, %v1116_v27  ;;  %v1002_v1 = vpop.f32.mrf.mxu3  ;;  %v1114_v33 = vmax.f32 %v1112_v21, %v1113_v29 }
 0x21d   : > { %v1003_v34 = vadd.f32 %v4524_v18, %v1002_v1 }
 0x21e   : > { %1176 = vrot.lane.b32.xlu0 %v1114_v33, %s4143_s26  ;;  %v1118_v2 = vrot.slane %v1117_v32, 2 }
 0x21f   : > { %v4673_v35 = vadd.f32 %v1003_v34, %v723_v30 }
 0x220   : > { %v1119_v37 = vmax.f32 %v1117_v32, %v1118_v2 }
 0x221   : > { %v1122_v4 = vsel %vm894_vm2, %v4673_v35, -inf }
 0x222   : > { %v1123_v38 = vrot.slane %v1122_v4, 4  ;;  %v1120_v39 = vrot.slane %v1119_v37, 1 }
 0x224   : > { %v1124_v40 = vmax.f32 %v1122_v4, %v1123_v38  ;;  %v1005_v41 = vpop.f32.mrf.mxu3  ;;  %v1121_v42 = vmax.f32 %v1119_v37, %v1120_v39 }
 0x225   : > { %v1006_v7 = vadd.f32 %v4524_v18, %v1005_v41 }
 0x226   : > { %1178 = vrot.lane.b32.xlu1 %v1121_v42, %s4143_s26  ;;  %v1125_v45 = vrot.slane %v1124_v40, 2 }
 0x227   : > { %v4680_v8 = vadd.f32 %v1006_v7, %v726_v5 }
 0x228   : > { %v1126_v46 = vmax.f32 %v1124_v40, %v1125_v45 }
 0x229   : > { %v1129_v47 = vsel %vm894_vm2, %v4680_v8, -inf }
 0x22a   : > { %v1130_v9 = vrot.slane %v1129_v47, 4  ;;  %v1127_v48 = vrot.slane %v1126_v46, 1 }
 0x22c   : > { %v1131_v49 = vmax.f32 %v1129_v47, %v1130_v9  ;;  %v1128_v10 = vmax.f32 %v1126_v46, %v1127_v48 }
 0x22e   : > { %1180 = vrot.lane.b32.xlu2 %v1128_v10, %s4143_s26  ;;  %v1132_v16 = vrot.slane %v1131_v49, 2 }
 0x230   : > { %v1153_v50 = vpop.permute.xlu0 %1152  ;;  %v1133_v11 = vmax.f32 %v1131_v49, %v1132_v16 }
 0x231   : > { %v1200_v18 = vsel %vm894_vm2, %v4531_v28, %v1153_v50 }
 0x232   : > { %v1216_v52 = vmax.f32 %v1200_v18, 0.0  ;;  %3786 = vmatmul.msk.f32.vlgmr.msrb.gmra.mxu3 %vm756_vm1, %v1200_v18  ;;  %v1134_v53 = vrot.slane %v1133_v11, 1 }
 0x234   : > { %3754 = vmatmul.msk.f32.vlgmr.msrb.gmra.mxu0 %vm756_vm1, %v1216_v52  ;;  %v1135_v54 = vmax.f32 %v1133_v11, %v1134_v53 }
 0x236   : > { %1182 = vrot.lane.b32.xlu0 %v1135_v54, %s4143_s26 }
 0x238   : > { %v1155_v56 = vpop.permute.xlu0 %1154  ;;  %v1161_v63 = vpop.permute.xlu2 %1160 }
 0x239   : > { %v1201_v57 = vsel %vm894_vm2, %v4537_v25, %v1155_v56  ;;  %v1204_v0 = vsel %vm894_vm2, %v4564_v59, %v1161_v63 }
 0x23a   : > { %v1217_v22 = vmax.f32 %v1201_v57, 0.0  ;;  %3787 = vmatmul.msk.f32.gmra.mxu3 %vm756_vm1, %v1201_v57  ;;  %v1220_v24 = vmax.f32 %v1204_v0, 0.0 }
 0x23c   : > { %3755 = vmatmul.msk.f32.gmra.mxu0 %vm756_vm1, %v1217_v22 }
 0x240   : > { %v1157_v28 = vpop.permute.xlu1 %1156 }
 0x241   : > { %v1202_v58 = vsel %vm894_vm2, %v4547_v43, %v1157_v28  ;;  %v1163_v43 = vpop.permute.xlu2 %1162 }
 0x242   : > { %v1218_v60 = vmax.f32 %v1202_v58, 0.0  ;;  %3788 = vmatmul.msk.f32.gmra.mxu3 %vm756_vm1, %v1202_v58 }
 0x244   : > { %3756 = vmatmul.msk.f32.gmra.mxu0 %vm756_vm1, %v1218_v60 }
 0x248   : > { %v1159_v61 = vpop.permute.xlu1 %1158 }
 0x249   : > { %v1203_v23 = vsel %vm894_vm2, %v4554_v51, %v1159_v61  ;;  %v1205_v51 = vsel %vm894_vm2, %v4571_v20, %v1163_v43 }
 0x24a   : > { %v1219_v25 = vmax.f32 %v1203_v23, 0.0  ;;  %3789 = vmatmul.msk.f32.gmra.mxu3 %vm756_vm1, %v1203_v23  ;;  %v1221_v13 = vmax.f32 %v1205_v51, 0.0 }
 0x24c   : > { %3757 = vmatmul.msk.f32.gmra.mxu0 %vm756_vm1, %v1219_v25 }
 0x252   : > { %3790 = vmatmul.msk.f32.gmra.mxu3 %vm756_vm1, %v1204_v0 }
 0x254   : > { %3758 = vmatmul.msk.f32.gmra.mxu0 %vm756_vm1, %v1220_v24 }
 0x258   : > { %v1169_v20 = vpop.permute.xlu2 %1168 }
 0x259   : > { %v1208_v30 = vsel %vm894_vm2, %v4598_v15, %v1169_v20 }
 0x25a   : > { %3791 = vmatmul.msk.f32.gmra.mxu3 %vm756_vm1, %v1205_v51  ;;  %v1224_v32 = vmax.f32 %v1208_v30, 0.0 }
 0x25c   : > { %3759 = vmatmul.msk.f32.gmra.mxu0 %vm756_vm1, %v1221_v13 }
 0x260   : > { %v1165_v59 = vpop.permute.xlu0 %1164 }
 0x261   : > { %v1206_v14 = vsel %vm894_vm2, %v4581_v3, %v1165_v59  ;;  %v1373_v3 = vld [vmem:[%s5693_s11] sm:$0xff] }
 0x262   : > { %v1222_v21 = vmax.f32 %v1206_v14, 0.0  ;;  %3792 = vmatmul.msk.f32.gmra.mxu3 %vm756_vm1, %v1206_v14  ;;  %1444 = vmatpush.msrb.mxu1 %v1373_v3 }
 0x264   : > { %3760 = vmatmul.msk.f32.gmra.mxu0 %vm756_vm1, %v1222_v21 }
 0x268   : > { %v1167_v26 = vpop.permute.xlu1 %1166 }
 0x269   : > { %v1207_v27 = vsel %vm894_vm2, %v4588_v44, %v1167_v26 }
 0x26a   : > { %v1223_v29 = vmax.f32 %v1207_v27, 0.0  ;;  %3793 = vmatmul.msk.f32.gmra.mxu3 %vm756_vm1, %v1207_v27 }
 0x26c   : > { %3761 = vmatmul.msk.f32.gmra.mxu0 %vm756_vm1, %v1223_v29 }
 0x270   : > { %v1175_v36 = vpop.permute.xlu2 %1174 }
 0x271   : > { %v1211_v37 = vsel %vm894_vm2, %v4631_v6, %v1175_v36 }
 0x272   : > { %3794 = vmatmul.msk.f32.gmra.mxu3 %vm756_vm1, %v1208_v30  ;;  %v1227_v4 = vmax.f32 %v1211_v37, 0.0 }
 0x274   : > { %3762 = vmatmul.msk.f32.gmra.mxu0 %vm756_vm1, %v1224_v32 }
 0x278   : > { %v1171_v44 = vpop.permute.xlu0 %1170 }
 0x279   : > { %v1209_v1 = vsel %vm894_vm2, %v4605_v62, %v1171_v44 }
 0x27a   : > { %v1225_v33 = vmax.f32 %v1209_v1, 0.0  ;;  %3795 = vmatmul.msk.f32.gmra.mxu3 %vm756_vm1, %v1209_v1 }
 0x27c   : > { %3763 = vmatmul.msk.f32.gmra.mxu0 %vm756_vm1, %v1225_v33 }
 0x280   : > { %v1173_v15 = vpop.permute.xlu1 %1172 }
 0x281   : > { %v1210_v34 = vsel %vm894_vm2, %v4615_v31, %v1173_v15 }
 0x282   : > { %v1226_v2 = vmax.f32 %v1210_v34, 0.0  ;;  %3796 = vmatmul.msk.f32.gmra.mxu3 %vm756_vm1, %v1210_v34  ;;  %v3809_v34 = vld [vmem:[%s5691_s9 + $0x78] sm:$0xff] }
 0x283   : > { %1893 = vmatpush.msrb.mxu2 %v3809_v34 }
 0x284   : > { %3764 = vmatmul.msk.f32.gmra.mxu0 %vm756_vm1, %v1226_v2 }
 0x288   : > { %v1181_v6 = vpop.permute.xlu2 %1180 }
 0x289   : > { %v1214_v41 = vsel %vm894_vm2, %v4673_v35, %v1181_v6 }
 0x28a   : > { %3797 = vmatmul.msk.f32.gmra.mxu3 %vm756_vm1, %v1211_v37  ;;  %v1230_v42 = vmax.f32 %v1214_v41, 0.0 }
 0x28c   : > { %3765 = vmatmul.msk.f32.gmra.mxu0 %vm756_vm1, %v1227_v4 }
 0x290   : > { %v1177_v62 = vpop.permute.xlu0 %1176 }
 0x291   : > { %v1212_v38 = vsel %vm894_vm2, %v4653_v19, %v1177_v62 }
 0x292   : > { %v1228_v39 = vmax.f32 %v1212_v38, 0.0  ;;  %3798 = vmatmul.msk.f32.gmra.mxu3 %vm756_vm1, %v1212_v38  ;;  %v4802_v38 = vld [vmem:[%s5694_s12] ss:$0 sm:$0xff] }
 0x294   : > { %3766 = vmatmul.msk.f32.gmra.mxu0 %vm756_vm1, %v1228_v39 }
 0x298   : > { %v1179_v31 = vpop.permute.xlu1 %1178 }
 0x299   : > { %v1213_v5 = vsel %vm894_vm2, %v4666_v17, %v1179_v31  ;;  %v4762_v17 = vld [vmem:[%s5692_s10] ss:$0 sm:$0xff]  ;;  %v3808_v31 = vld [vmem:[%s5691_s9 + $0x70] sm:$0xff] }
 0x29a   : > { %v1229_v40 = vmax.f32 %v1213_v5, 0.0  ;;  %3799 = vmatmul.msk.f32.gmra.mxu3 %vm756_vm1, %v1213_v5  ;;  %1894 = vmatpush.msrb.mxu2 %v3808_v31 }
 0x29c   : > { %3767 = vmatmul.msk.f32.gmra.mxu0 %vm756_vm1, %v1229_v40 }
 0x2a2   : > { %3800 = vmatmul.msk.f32.gmra.mxu3 %vm756_vm1, %v1214_v41 }
 0x2a4   : > { %3768 = vmatmul.msk.f32.gmra.mxu0 %vm756_vm1, %v1230_v42 }
 0x2a8   : > { %v1183_v19 = vpop.permute.xlu0 %1182 }
 0x2a9   : > { %v1215_v7 = vsel %vm894_vm2, %v4680_v8, %v1183_v19 }
 0x2aa   : > { %v1231_v45 = vmax.f32 %v1215_v7, 0.0  ;;  %3801 = vmatmul.msk.f32.gmra.mxu3 %vm756_vm1, %v1215_v7 }
 0x2ac   : > { %3769 = vmatmul.msk.f32.gmra.mxu0 %vm756_vm1, %v1231_v45 }
 0x2b1   : > { %v1309_v35 = vpop.f32.mrf.mxu0 }
 0x2b2   : > { %v1310_v46 = vadd.f32 %v4762_v17, %v1309_v35 }
 0x2b4   : > { %v1357_v47 = vmax.f32 %v1310_v46, 0.0 }
 0x2b5   : > { %v1567_v30 = vpop.f32.mrf.mxu3 }
 0x2b6   : > { %3770 = vmatmul.msk.f32.vlgmr.msrb.gmra.mxu1 %vm894_vm2, %v1357_v47 }
 0x2b9   : > { %v1312_v9 = vpop.f32.mrf.mxu0 }
 0x2ba   : > { %v1313_v48 = vadd.f32 %v4762_v17, %v1312_v9 }
 0x2bc   : > { %v1358_v8 = vmax.f32 %v1313_v48, 0.0 }
 0x2bd   : > { %v1570_v1 = vpop.f32.mrf.mxu3 }
 0x2be   : > { %3771 = vmatmul.msk.f32.gmra.mxu1 %vm894_vm2, %v1358_v8 }
 0x2c1   : > { %v1315_v49 = vpop.f32.mrf.mxu0 }
 0x2c2   : > { %v1316_v10 = vadd.f32 %v4762_v17, %v1315_v49 }
 0x2c4   : > { %v1359_v16 = vmax.f32 %v1316_v10, 0.0 }
 0x2c5   : > { %v1573_v4 = vpop.f32.mrf.mxu3 }
 0x2c6   : > { %3772 = vmatmul.msk.f32.gmra.mxu1 %vm894_vm2, %v1359_v16 }
 0x2c9   : > { %v1318_v50 = vpop.f32.mrf.mxu0 }
 0x2ca   : > { %v1319_v11 = vadd.f32 %v4762_v17, %v1318_v50  ;;  %v3807_v50 = vld [vmem:[%s5691_s9 + $0x68] sm:$0xff] }
 0x2cb   : > { %1895 = vmatpush.msrb.mxu2 %v3807_v50 }
 0x2cc   : > { %v1360_v18 = vmax.f32 %v1319_v11, 0.0 }
 0x2cd   : > { %v1576_v40 = vpop.f32.mrf.mxu3 }
 0x2ce   : > { %3773 = vmatmul.msk.f32.gmra.mxu1 %vm894_vm2, %v1360_v18 }
 0x2d1   : > { %v1321_v52 = vpop.f32.mrf.mxu0 }
 0x2d2   : > { %v1322_v53 = vadd.f32 %v4762_v17, %v1321_v52 }
 0x2d4   : > { %v1361_v54 = vmax.f32 %v1322_v53, 0.0 }
 0x2d5   : > { %v1579_v46 = vpop.f32.mrf.mxu3 }
 0x2d6   : > { %3774 = vmatmul.msk.f32.gmra.mxu1 %vm894_vm2, %v1361_v54 }
 0x2d9   : > { %v1324_v55 = vpop.f32.mrf.mxu0 }
 0x2da   : > { %v1325_v56 = vadd.f32 %v4762_v17, %v1324_v55 }
 0x2dc   : > { %v1362_v57 = vmax.f32 %v1325_v56, 0.0 }
 0x2dd   : > { %v1582_v55 = vpop.f32.mrf.mxu3 }
 0x2de   : > { %3775 = vmatmul.msk.f32.gmra.mxu1 %vm894_vm2, %v1362_v57 }
 0x2e1   : > { %v1327_v22 = vpop.f32.mrf.mxu0 }
 0x2e2   : > { %v1328_v28 = vadd.f32 %v4762_v17, %v1327_v22 }
 0x2e4   : > { %v1363_v58 = vmax.f32 %v1328_v28, 0.0 }
 0x2e6   : > { %3776 = vmatmul.msk.f32.gmra.mxu1 %vm894_vm2, %v1363_v58 }
 0x2e9   : > { %v1330_v60 = vpop.f32.mrf.mxu0 }
 0x2ea   : > { %v1331_v61 = vadd.f32 %v4762_v17, %v1330_v60 }
 0x2ec   : > { %v1364_v23 = vmax.f32 %v1331_v61, 0.0 }
 0x2ee   : > { %3777 = vmatmul.msk.f32.gmra.mxu1 %vm894_vm2, %v1364_v23 }
 0x2f1   : > { %v1333_v63 = vpop.f32.mrf.mxu0 }
 0x2f2   : > { %v1334_v25 = vadd.f32 %v4762_v17, %v1333_v63 }
 0x2f4   : > { %v1365_v0 = vmax.f32 %v1334_v25, 0.0 }
 0x2f6   : > { %3778 = vmatmul.msk.f32.gmra.mxu1 %vm894_vm2, %v1365_v0 }
 0x2f9   : > { %v1336_v24 = vpop.f32.mrf.mxu0 }
 0x2fa   : > { %v1337_v43 = vadd.f32 %v4762_v17, %v1336_v24 }
 0x2fc   : > { %v1366_v12 = vmax.f32 %v1337_v43, 0.0  ;;  %v1585_v43 = vpop.f32.mrf.mxu3 }
 0x2fe   : > { %3779 = vmatmul.msk.f32.gmra.mxu1 %vm894_vm2, %v1366_v12 }
 0x301   : > { %v1339_v51 = vpop.f32.mrf.mxu0 }
 0x302   : > { %v1340_v13 = vadd.f32 %v4762_v17, %v1339_v51 }
 0x304   : > { %v1367_v59 = vmax.f32 %v1340_v13, 0.0 }
 0x306   : > { %3780 = vmatmul.msk.f32.gmra.mxu1 %vm894_vm2, %v1367_v59  ;;  %v3806_v59 = vld [vmem:[%s5691_s9 + $0x60] sm:$0xff] }
 0x307   : > { %1896 = vmatpush.msrb.mxu2 %v3806_v59 }
 0x309   : > { %v1342_v14 = vpop.f32.mrf.mxu0 }
 0x30a   : > { %v1343_v21 = vadd.f32 %v4762_v17, %v1342_v14 }
 0x30c   : > { %v1368_v26 = vmax.f32 %v1343_v21, 0.0 }
 0x30e   : > { %3781 = vmatmul.msk.f32.gmra.mxu1 %vm894_vm2, %v1368_v26 }
 0x311   : > { %v1345_v27 = vpop.f32.mrf.mxu0 }
 0x312   : > { %v1346_v29 = vadd.f32 %v4762_v17, %v1345_v27 }
 0x314   : > { %v1369_v20 = vmax.f32 %v1346_v29, 0.0 }
 0x316   : > { %3782 = vmatmul.msk.f32.gmra.mxu1 %vm894_vm2, %v1369_v20 }
 0x319   : > { %v1348_v32 = vpop.f32.mrf.mxu0 }
 0x31a   : > { %v1349_v3 = vadd.f32 %v4762_v17, %v1348_v32 }
 0x31c   : > { %v1370_v44 = vmax.f32 %v1349_v3, 0.0 }
 0x31e   : > { %3783 = vmatmul.msk.f32.gmra.mxu1 %vm894_vm2, %v1370_v44 }
 0x321   : > { %v1351_v33 = vpop.f32.mrf.mxu0 }
 0x322   : > { %v1352_v15 = vadd.f32 %v4762_v17, %v1351_v33  ;;  %v1588_v33 = vpop.f32.mrf.mxu3 }
 0x324   : > { %v1371_v2 = vmax.f32 %v1352_v15, 0.0 }
 0x326   : > { %3784 = vmatmul.msk.f32.gmra.mxu1 %vm894_vm2, %v1371_v2 }
 0x329   : > { %v1354_v36 = vpop.f32.mrf.mxu0 }
 0x32a   : > { %v1355_v37 = vadd.f32 %v4762_v17, %v1354_v36 }
 0x32c   : > { %v1372_v62 = vmax.f32 %v1355_v37, 0.0 }
 0x32e   : > { %3785 = vmatmul.msk.f32.gmra.mxu1 %vm894_vm2, %v1372_v62 }
 0x333   : > { %v1446_v39 = vpop.f32.mrf.mxu1 }
 0x334   : > { %v1447_v5 = vadd.f32 %v4802_v38, %v1446_v39 }
 0x336   : > { %v4808_v6 = vadd.f32 %v1567_v30, %v1447_v5  ;;  %v3805_v5 = vld [vmem:[%s5691_s9 + $0x58] sm:$0xff] }
 0x337   : > { %1897 = vmatpush.msrb.mxu2 %v3805_v5 }
 0x338   : > { %v1615_v41 = vsel %vm894_vm2, %v4808_v6, -inf }
 0x339   : > { %v1616_v42 = vrot.slane %v1615_v41, 4 }
 0x33b   : > { %v1617_v19 = vmax.f32 %v1615_v41, %v1616_v42  ;;  %v1449_v7 = vpop.f32.mrf.mxu1 }
 0x33c   : > { %v1450_v45 = vadd.f32 %v4802_v38, %v1449_v7 }
 0x33d   : > { %v1618_v17 = vrot.slane %v1617_v19, 2 }
 0x33e   : > { %v4813_v35 = vadd.f32 %v1570_v1, %v1450_v45 }
 0x33f   : > { %v1619_v47 = vmax.f32 %v1617_v19, %v1618_v17  ;;  %v1591_v19 = vpop.f32.mrf.mxu3 }
 0x340   : > { %v1622_v9 = vsel %vm894_vm2, %v4813_v35, -inf }
 0x341   : > { %v1623_v48 = vrot.slane %v1622_v9, 4  ;;  %v1620_v8 = vrot.slane %v1619_v47, 1 }
 0x343   : > { %v1624_v49 = vmax.f32 %v1622_v9, %v1623_v48  ;;  %v1452_v10 = vpop.f32.mrf.mxu1  ;;  %v1621_v16 = vmax.f32 %v1619_v47, %v1620_v8 }
 0x344   : > { %v1453_v11 = vadd.f32 %v4802_v38, %v1452_v10 }
 0x345   : > { %1743 = vrot.lane.b32.xlu1 %v1621_v16, %s4143_s26  ;;  %v1625_v18 = vrot.slane %v1624_v49, 2 }
 0x346   : > { %v4822_v52 = vadd.f32 %v1573_v4, %v1453_v11 }
 0x347   : > { %v1626_v53 = vmax.f32 %v1624_v49, %v1625_v18  ;;  %v1594_v11 = vpop.f32.mrf.mxu3 }
 0x348   : > { %v1629_v54 = vsel %vm894_vm2, %v4822_v52, -inf }
 0x349   : > { %v1630_v56 = vrot.slane %v1629_v54, 4  ;;  %v1627_v57 = vrot.slane %v1626_v53, 1 }
 0x34b   : > { %v1631_v22 = vmax.f32 %v1629_v54, %v1630_v56  ;;  %v1455_v28 = vpop.f32.mrf.mxu1  ;;  %v1628_v58 = vmax.f32 %v1626_v53, %v1627_v57  ;;  %v3804_v57 = vld [vmem:[%s5691_s9 + $0x50] sm:$0xff] }
 0x34c   : > { %v1456_v60 = vadd.f32 %v4802_v38, %v1455_v28  ;;  %1898 = vmatpush.msrb.mxu2 %v3804_v57 }
 0x34d   : > { %1745 = vrot.lane.b32.xlu2 %v1628_v58, %s4143_s26  ;;  %v1632_v61 = vrot.slane %v1631_v22, 2 }
 0x34e   : > { %v4828_v23 = vadd.f32 %v1576_v40, %v1456_v60 }
 0x34f   : > { %v1633_v63 = vmax.f32 %v1631_v22, %v1632_v61 }
 0x350   : > { %v1636_v25 = vsel %vm894_vm2, %v4828_v23, -inf }
 0x351   : > { %v1637_v0 = vrot.slane %v1636_v25, 4  ;;  %v1634_v24 = vrot.slane %v1633_v63, 1 }
 0x353   : > { %v1638_v12 = vmax.f32 %v1636_v25, %v1637_v0  ;;  %v1458_v51 = vpop.f32.mrf.mxu1  ;;  %v1635_v13 = vmax.f32 %v1633_v63, %v1634_v24  ;;  %v1597_v0 = vpop.f32.mrf.mxu3 }
 0x354   : > { %v1459_v14 = vadd.f32 %v4802_v38, %v1458_v51 }
 0x355   : > { %1747 = vrot.lane.b32.xlu0 %v1635_v13, %s4143_s26  ;;  %v1639_v21 = vrot.slane %v1638_v12, 2 }
 0x356   : > { %v4837_v26 = vadd.f32 %v1579_v46, %v1459_v14 }
 0x357   : > { %v1640_v27 = vmax.f32 %v1638_v12, %v1639_v21 }
 0x358   : > { %v1643_v29 = vsel %vm894_vm2, %v4837_v26, -inf }
 0x359   : > { %v1644_v20 = vrot.slane %v1643_v29, 4  ;;  %v1641_v30 = vrot.slane %v1640_v27, 1 }
 0x35b   : > { %v1645_v32 = vmax.f32 %v1643_v29, %v1644_v20  ;;  %v1461_v3 = vpop.f32.mrf.mxu1  ;;  %v1642_v44 = vmax.f32 %v1640_v27, %v1641_v30 }
 0x35c   : > { %v1462_v1 = vadd.f32 %v4802_v38, %v1461_v3  ;;  %v3803_v3 = vld [vmem:[%s5691_s9 + $0x48] sm:$0xff] }
 0x35d   : > { %1749 = vrot.lane.b32.xlu1 %v1642_v44, %s4143_s26  ;;  %v1646_v15 = vrot.slane %v1645_v32, 2  ;;  %1899 = vmatpush.msrb.mxu2 %v3803_v3 }
 0x35e   : > { %v4843_v34 = vadd.f32 %v1582_v55, %v1462_v1  ;;  %v1600_v1 = vpop.f32.mrf.mxu3 }
 0x35f   : > { %v1647_v2 = vmax.f32 %v1645_v32, %v1646_v15 }
 0x360   : > { %v1650_v36 = vsel %vm894_vm2, %v4843_v34, -inf }
 0x361   : > { %v1651_v37 = vrot.slane %v1650_v36, 4  ;;  %v1648_v4 = vrot.slane %v1647_v2, 1 }
 0x363   : > { %v1652_v62 = vmax.f32 %v1650_v36, %v1651_v37  ;;  %v1464_v39 = vpop.f32.mrf.mxu1  ;;  %v1649_v31 = vmax.f32 %v1647_v2, %v1648_v4 }
 0x364   : > { %v1465_v40 = vadd.f32 %v4802_v38, %v1464_v39 }
 0x365   : > { %1751 = vrot.lane.b32.xlu2 %v1649_v31, %s4143_s26  ;;  %v1653_v41 = vrot.slane %v1652_v62, 2 }
 0x366   : > { %v4852_v42 = vadd.f32 %v1585_v43, %v1465_v40  ;;  %v3854_v40 = vld [vmem:[%s5695_s13 + $0x70] sm:$0xff] }
 0x367   : > { %v1654_v7 = vmax.f32 %v1652_v62, %v1653_v41  ;;  %v3855_v62 = vld [vmem:[%s5695_s13 + $0x78] sm:$0xff] }
 0x368   : > { %v1657_v45 = vsel %vm894_vm2, %v4852_v42, -inf  ;;  %2154 = vmatpush.msra.mxu1 %v3855_v62 }
 0x369   : > { %v1658_v17 = vrot.slane %v1657_v45, 4  ;;  %v1655_v46 = vrot.slane %v1654_v7, 1 }
 0x36a   : > { %2155 = vmatpush.msra.mxu1 %v3854_v40 }
 0x36b   : > { %v1659_v47 = vmax.f32 %v1657_v45, %v1658_v17  ;;  %v1467_v9 = vpop.f32.mrf.mxu1  ;;  %v1656_v48 = vmax.f32 %v1654_v7, %v1655_v46  ;;  %v3853_v7 = vld [vmem:[%s5695_s13 + $0x68] sm:$0xff]  ;;  %v1603_v17 = vpop.f32.mrf.mxu3 }
 0x36c   : > { %v1468_v8 = vadd.f32 %v4802_v38, %v1467_v9  ;;  %2156 = vmatpush.msra.mxu1 %v3853_v7 }
 0x36d   : > { %1753 = vrot.lane.b32.xlu0 %v1656_v48, %s4143_s26  ;;  %v1660_v49 = vrot.slane %v1659_v47, 2 }
 0x36e   : > { %v4858_v10 = vadd.f32 %v1588_v33, %v1468_v8 }
 0x36f   : > { %v1661_v16 = vmax.f32 %v1659_v47, %v1660_v49  ;;  %v3852_v47 = vld [vmem:[%s5695_s13 + $0x60] sm:$0xff]  ;;  %v3851_v49 = vld [vmem:[%s5695_s13 + $0x58] sm:$0xff] }
 0x370   : > { %v1664_v50 = vsel %vm894_vm2, %v4858_v10, -inf  ;;  %2157 = vmatpush.msra.mxu1 %v3852_v47 }
 0x371   : > { %v1665_v18 = vrot.slane %v1664_v50, 4  ;;  %v1662_v53 = vrot.slane %v1661_v16, 1 }
 0x372   : > { %2158 = vmatpush.msra.mxu1 %v3851_v49 }
 0x373   : > { %v1666_v54 = vmax.f32 %v1664_v50, %v1665_v18  ;;  %v1470_v55 = vpop.f32.mrf.mxu1  ;;  %v1663_v56 = vmax.f32 %v1661_v16, %v1662_v53  ;;  %v3802_v18 = vld [vmem:[%s5691_s9 + $0x40] sm:$0xff]  ;;  %v3850_v53 = vld [vmem:[%s5695_s13 + $0x50] sm:$0xff] }
 0x374   : > { %v1471_v22 = vadd.f32 %v4802_v38, %v1470_v55  ;;  %1900 = vmatpush.msrb.mxu2 %v3802_v18  ;;  %2159 = vmatpush.msra.mxu1 %v3850_v53 }
 0x375   : > { %1755 = vrot.lane.b32.xlu1 %v1663_v56, %s4143_s26  ;;  %v1667_v28 = vrot.slane %v1666_v54, 2  ;;  %v3849_v56 = vld [vmem:[%s5695_s13 + $0x48] sm:$0xff] }
 0x376   : > { %v4867_v58 = vadd.f32 %v1591_v19, %v1471_v22  ;;  %2160 = vmatpush.msra.mxu1 %v3849_v56 }
 0x377   : > { %v1668_v60 = vmax.f32 %v1666_v54, %v1667_v28  ;;  %v3848_v28 = vld [vmem:[%s5695_s13 + $0x40] sm:$0xff] }
 0x378   : > { %v1671_v61 = vsel %vm894_vm2, %v4867_v58, -inf  ;;  %2161 = vmatpush.msra.mxu1 %v3848_v28 }
 0x379   : > { %v1672_v63 = vrot.slane %v1671_v61, 4  ;;  %v1669_v25 = vrot.slane %v1668_v60, 1 }
 0x37b   : > { %v1673_v24 = vmax.f32 %v1671_v61, %v1672_v63  ;;  %v1473_v43 = vpop.f32.mrf.mxu1  ;;  %v1670_v12 = vmax.f32 %v1668_v60, %v1669_v25  ;;  %v1606_v61 = vpop.f32.mrf.mxu3 }
 0x37c   : > { %v1474_v51 = vadd.f32 %v4802_v38, %v1473_v43 }
 0x37d   : > { %1757 = vrot.lane.b32.xlu2 %v1670_v12, %s4143_s26  ;;  %v1674_v13 = vrot.slane %v1673_v24, 2 }
 0x37e   : > { %v4873_v59 = vadd.f32 %v1594_v11, %v1474_v51 }
 0x37f   : > { %v1675_v14 = vmax.f32 %v1673_v24, %v1674_v13 }
 0x380   : > { %v1678_v21 = vsel %vm894_vm2, %v4873_v59, -inf }
 0x381   : > { %v1679_v27 = vrot.slane %v1678_v21, 4  ;;  %v1676_v29 = vrot.slane %v1675_v14, 1 }
 0x383   : > { %v1680_v20 = vmax.f32 %v1678_v21, %v1679_v27  ;;  %v1476_v30 = vpop.f32.mrf.mxu1  ;;  %v1677_v32 = vmax.f32 %v1675_v14, %v1676_v29 }
 0x384   : > { %v1477_v44 = vadd.f32 %v4802_v38, %v1476_v30 }
 0x385   : > { %1759 = vrot.lane.b32.xlu0 %v1677_v32, %s4143_s26  ;;  %v1681_v33 = vrot.slane %v1680_v20, 2 }
 0x386   : > { %v4882_v15 = vadd.f32 %v1597_v0, %v1477_v44  ;;  %v3830_v44 = vld [vmem:[%s5693_s11 + $0x38] sm:$0xff] }
 0x387   : > { %v1682_v2 = vmax.f32 %v1680_v20, %v1681_v33  ;;  %v1609_v20 = vpop.f32.mrf.mxu3  ;;  %2036 = vmatpush.msra.mxu0 %v3830_v44  ;;  %v3827_v44 = vld [vmem:[%s5693_s11 + $0x20] sm:$0xff] }
 0x388   : > { %v1685_v36 = vsel %vm894_vm2, %v4882_v15, -inf }
 0x389   : > { %v1686_v37 = vrot.slane %v1685_v36, 4  ;;  %v1683_v4 = vrot.slane %v1682_v2, 1 }
 0x38b   : > { %v1687_v39 = vmax.f32 %v1685_v36, %v1686_v37  ;;  %v1479_v31 = vpop.f32.mrf.mxu1  ;;  %v1684_v5 = vmax.f32 %v1682_v2, %v1683_v4 }
 0x38c   : > { %v1480_v41 = vadd.f32 %v4802_v38, %v1479_v31 }
 0x38d   : > { %1761 = vrot.lane.b32.xlu1 %v1684_v5, %s4143_s26  ;;  %v1688_v19 = vrot.slane %v1687_v39, 2 }
 0x38e   : > { %v4897_v45 = vadd.f32 %v1600_v1, %v1480_v41 }
 0x38f   : > { %v1689_v46 = vmax.f32 %v1687_v39, %v1688_v19  ;;  %v1612_v41 = vpop.f32.mrf.mxu3 }
 0x390   : > { %v1692_v9 = vsel %vm894_vm2, %v4897_v45, -inf }
 0x391   : > { %v1693_v48 = vrot.slane %v1692_v9, 4  ;;  %v1690_v8 = vrot.slane %v1689_v46, 1 }
 0x393   : > { %v1694_v16 = vmax.f32 %v1692_v9, %v1693_v48  ;;  %v1482_v50 = vpop.f32.mrf.mxu1  ;;  %v1691_v11 = vmax.f32 %v1689_v46, %v1690_v8 }
 0x394   : > { %v1483_v54 = vadd.f32 %v4802_v38, %v1482_v50 }
 0x395   : > { %1763 = vrot.lane.b32.xlu2 %v1691_v11, %s4143_s26  ;;  %v1695_v55 = vrot.slane %v1694_v16, 2 }
 0x396   : > { %v4918_v57 = vadd.f32 %v1603_v17, %v1483_v54 }
 0x397   : > { %v1696_v22 = vmax.f32 %v1694_v16, %v1695_v55 }
 0x398   : > { %v1699_v60 = vsel %vm894_vm2, %v4918_v57, -inf }
 0x399   : > { %v1700_v63 = vrot.slane %v1699_v60, 4  ;;  %v1697_v25 = vrot.slane %v1696_v22, 1 }
 0x39b   : > { %v1701_v0 = vmax.f32 %v1699_v60, %v1700_v63  ;;  %v1485_v24 = vpop.f32.mrf.mxu1  ;;  %v1698_v43 = vmax.f32 %v1696_v22, %v1697_v25 }
 0x39c   : > { %v1486_v12 = vadd.f32 %v4802_v38, %v1485_v24 }
 0x39d   : > { %1765 = vrot.lane.b32.xlu0 %v1698_v43, %s4143_s26  ;;  %v1702_v51 = vrot.slane %v1701_v0, 2 }
 0x39e   : > { %v4927_v13 = vadd.f32 %v1606_v61, %v1486_v12 }
 0x39f   : > { %v1703_v14 = vmax.f32 %v1701_v0, %v1702_v51 }
 0x3a0   : > { %v1706_v21 = vsel %vm894_vm2, %v4927_v13, -inf }
 0x3a1   : > { %v1707_v27 = vrot.slane %v1706_v21, 4  ;;  %v1704_v29 = vrot.slane %v1703_v14, 1 }
 0x3a3   : > { %v1708_v30 = vmax.f32 %v1706_v21, %v1707_v27  ;;  %v1488_v32 = vpop.f32.mrf.mxu1  ;;  %v1705_v3 = vmax.f32 %v1703_v14, %v1704_v29 }
 0x3a4   : > { %v1489_v1 = vadd.f32 %v4802_v38, %v1488_v32 }
 0x3a5   : > { %1767 = vrot.lane.b32.xlu1 %v1705_v3, %s4143_s26  ;;  %v1709_v33 = vrot.slane %v1708_v30, 2 }
 0x3a6   : > { %v4936_v2 = vadd.f32 %v1609_v20, %v1489_v1 }
 0x3a7   : > { %v1710_v36 = vmax.f32 %v1708_v30, %v1709_v33  ;;  %v1746_v53 = vpop.permute.xlu2 %1745 }
 0x3a8   : > { %v1713_v37 = vsel %vm894_vm2, %v4936_v2, -inf  ;;  %v1792_v55 = vsel %vm894_vm2, %v4813_v35, %v1746_v53 }
 0x3a9   : > { %v1714_v4 = vrot.slane %v1713_v37, 4  ;;  %v1711_v62 = vrot.slane %v1710_v36, 1  ;;  %v1808_v56 = vmax.f32 %v1792_v55, 0.0 }
 0x3ab   : > { %v1715_v39 = vmax.f32 %v1713_v37, %v1714_v4  ;;  %v1491_v31 = vpop.f32.mrf.mxu1  ;;  %v1712_v5 = vmax.f32 %v1710_v36, %v1711_v62 }
 0x3ac   : > { %v1492_v40 = vadd.f32 %v4802_v38, %v1491_v31 }
 0x3ad   : > { %1769 = vrot.lane.b32.xlu2 %v1712_v5, %s4143_s26  ;;  %v1716_v19 = vrot.slane %v1715_v39, 2 }
 0x3ae   : > { %v4942_v7 = vadd.f32 %v1612_v41, %v1492_v40 }
 0x3af   : > { %v1717_v17 = vmax.f32 %v1715_v39, %v1716_v19 }
 0x3b0   : > { %v1720_v46 = vsel %vm894_vm2, %v4942_v7, -inf }
 0x3b1   : > { %v1721_v47 = vrot.slane %v1720_v46, 4  ;;  %v1718_v9 = vrot.slane %v1717_v17, 1 }
 0x3b3   : > { %v1722_v48 = vmax.f32 %v1720_v46, %v1721_v47  ;;  %v1719_v8 = vmax.f32 %v1717_v17, %v1718_v9 }
 0x3b5   : > { %1771 = vrot.lane.b32.xlu0 %v1719_v8, %s4143_s26  ;;  %v1723_v49 = vrot.slane %v1722_v48, 2 }
 0x3b7   : > { %v1744_v16 = vpop.permute.xlu1 %1743  ;;  %v1724_v50 = vmax.f32 %v1722_v48, %v1723_v49 }
 0x3b8   : > { %v1791_v38 = vsel %vm894_vm2, %v4808_v6, %v1744_v16  ;;  %v3829_v6 = vld [vmem:[%s5693_s11 + $0x30] sm:$0xff] }
 0x3b9   : > { %v1807_v11 = vmax.f32 %v1791_v38, 0.0  ;;  %3856 = vmatmul.msk.f32.vlgmr.msra.gmra.mxu1 %vm756_vm1, %v1791_v38  ;;  %v1725_v18 = vrot.slane %v1724_v50, 1  ;;  %2037 = vmatpush.msra.mxu0 %v3829_v6 }
 0x3bb   : > { %3811 = vmatmul.msk.f32.vlgmr.msrb.gmra.mxu2 %vm756_vm1, %v1807_v11  ;;  %v1726_v54 = vmax.f32 %v1724_v50, %v1725_v18 }
 0x3bd   : > { %1773 = vrot.lane.b32.xlu1 %v1726_v54, %s4143_s26 }
 0x3bf   : > { %v1752_v25 = vpop.permute.xlu2 %1751 }
 0x3c0   : > { %v1795_v0 = vsel %vm894_vm2, %v4837_v26, %v1752_v25 }
 0x3c1   : > { %3857 = vmatmul.msk.f32.gmra.mxu1 %vm756_vm1, %v1792_v55  ;;  %v1811_v24 = vmax.f32 %v1795_v0, 0.0 }
 0x3c3   : > { %3812 = vmatmul.msk.f32.gmra.mxu2 %vm756_vm1, %v1808_v56 }
 0x3c7   : > { %v1748_v22 = vpop.permute.xlu0 %1747 }
 0x3c8   : > { %v1793_v28 = vsel %vm894_vm2, %v4822_v52, %v1748_v22 }
 0x3c9   : > { %v1809_v60 = vmax.f32 %v1793_v28, 0.0  ;;  %3858 = vmatmul.msk.f32.gmra.mxu1 %vm756_vm1, %v1793_v28 }
 0x3cb   : > { %3813 = vmatmul.msk.f32.gmra.mxu2 %vm756_vm1, %v1809_v60 }
 0x3cf   : > { %v1750_v35 = vpop.permute.xlu1 %1749 }
 0x3d0   : > { %v1794_v61 = vsel %vm894_vm2, %v4828_v23, %v1750_v35  ;;  %v3828_v23 = vld [vmem:[%s5693_s11 + $0x28] sm:$0xff] }
 0x3d1   : > { %v1810_v63 = vmax.f32 %v1794_v61, 0.0  ;;  %3859 = vmatmul.msk.f32.gmra.mxu1 %vm756_vm1, %v1794_v61  ;;  %2038 = vmatpush.msra.mxu0 %v3828_v23 }
 0x3d3   : > { %3814 = vmatmul.msk.f32.gmra.mxu2 %vm756_vm1, %v1810_v63  ;;  %2039 = vmatpush.msra.mxu0 %v3827_v44 }
 0x3d7   : > { %v1758_v21 = vpop.permute.xlu2 %1757 }
 0x3d9   : > { %3860 = vmatmul.msk.f32.gmra.mxu1 %vm756_vm1, %v1795_v0 }
 0x3db   : > { %3815 = vmatmul.msk.f32.gmra.mxu2 %vm756_vm1, %v1811_v24 }
 0x3df   : > { %v1754_v52 = vpop.permute.xlu0 %1753 }
 0x3e0   : > { %v1796_v43 = vsel %vm894_vm2, %v4843_v34, %v1754_v52  ;;  %v1798_v34 = vsel %vm894_vm2, %v4858_v10, %v1758_v21 }
 0x3e1   : > { %v1812_v12 = vmax.f32 %v1796_v43, 0.0  ;;  %3861 = vmatmul.msk.f32.gmra.mxu1 %vm756_vm1, %v1796_v43  ;;  %v1814_v27 = vmax.f32 %v1798_v34, 0.0 }
 0x3e3   : > { %3816 = vmatmul.msk.f32.gmra.mxu2 %vm756_vm1, %v1812_v12 }
 0x3e7   : > { %v1756_v26 = vpop.permute.xlu1 %1755 }
 0x3e8   : > { %v1797_v51 = vsel %vm894_vm2, %v4852_v42, %v1756_v26 }
 0x3e9   : > { %v1813_v14 = vmax.f32 %v1797_v51, 0.0  ;;  %3862 = vmatmul.msk.f32.gmra.mxu1 %vm756_vm1, %v1797_v51 }
 0x3eb   : > { %3817 = vmatmul.msk.f32.gmra.mxu2 %vm756_vm1, %v1813_v14 }
 0x3ef   : > { %v1764_v10 = vpop.permute.xlu2 %1763 }
 0x3f1   : > { %3863 = vmatmul.msk.f32.gmra.mxu1 %vm756_vm1, %v1798_v34 }
 0x3f3   : > { %3818 = vmatmul.msk.f32.gmra.mxu2 %vm756_vm1, %v1814_v27 }
 0x3f7   : > { %v1760_v29 = vpop.permute.xlu0 %1759 }
 0x3f8   : > { %v1799_v20 = vsel %vm894_vm2, %v4867_v58, %v1760_v29  ;;  %v1801_v58 = vsel %vm894_vm2, %v4882_v15, %v1764_v10 }
 0x3f9   : > { %v1815_v30 = vmax.f32 %v1799_v20, 0.0  ;;  %3864 = vmatmul.msk.f32.gmra.mxu1 %vm756_vm1, %v1799_v20  ;;  %v1817_v1 = vmax.f32 %v1801_v58, 0.0 }
 0x3fb   : > { %3819 = vmatmul.msk.f32.gmra.mxu2 %vm756_vm1, %v1815_v30 }
 0x3ff   : > { %v1762_v42 = vpop.permute.xlu1 %1761 }
 0x400   : > { %v1800_v32 = vsel %vm894_vm2, %v4873_v59, %v1762_v42 }
 0x401   : > { %v1816_v3 = vmax.f32 %v1800_v32, 0.0  ;;  %3865 = vmatmul.msk.f32.gmra.mxu1 %vm756_vm1, %v1800_v32 }
 0x403   : > { %3820 = vmatmul.msk.f32.gmra.mxu2 %vm756_vm1, %v1816_v3 }
 0x407   : > { %v1770_v15 = vpop.permute.xlu2 %1769 }
 0x408   : > { %v1804_v39 = vsel %vm894_vm2, %v4927_v13, %v1770_v15  ;;  %v5024_v13 = vld [vmem:[%s5692_s10 + $0x1] ss:$0 sm:$0xff]  ;;  %v3878_v15 = vld [vmem:[%s5691_s9 + $0xb0] sm:$0xff] }
 0x409   : > { %3866 = vmatmul.msk.f32.gmra.mxu1 %vm756_vm1, %v1801_v58  ;;  %v1820_v31 = vmax.f32 %v1804_v39, 0.0  ;;  %v3879_v58 = vld [vmem:[%s5691_s9 + $0xb8] sm:$0xff] }
 0x40a   : > { %2489 = vmatpush.msra.mxu3 %v3879_v58 }
 0x40b   : > { %3821 = vmatmul.msk.f32.gmra.mxu2 %vm756_vm1, %v1817_v1 }
 0x40c   : > { %2490 = vmatpush.msra.mxu3 %v3878_v15 }
 0x40f   : > { %v1766_v59 = vpop.permute.xlu0 %1765 }
 0x410   : > { %v1802_v33 = vsel %vm894_vm2, %v4897_v45, %v1766_v59 }
 0x411   : > { %v1818_v36 = vmax.f32 %v1802_v33, 0.0  ;;  %3867 = vmatmul.msk.f32.gmra.mxu1 %vm756_vm1, %v1802_v33 }
 0x413   : > { %3822 = vmatmul.msk.f32.gmra.mxu2 %vm756_vm1, %v1818_v36 }
 0x417   : > { %v1768_v37 = vpop.permute.xlu1 %1767 }
 0x418   : > { %v1803_v4 = vsel %vm894_vm2, %v4918_v57, %v1768_v37 }
 0x419   : > { %v1819_v62 = vmax.f32 %v1803_v4, 0.0  ;;  %3868 = vmatmul.msk.f32.gmra.mxu1 %vm756_vm1, %v1803_v4  ;;  %v5064_v4 = vld [vmem:[%s5694_s12 + $0x1] ss:$0 sm:$0xff] }
 0x41b   : > { %3823 = vmatmul.msk.f32.gmra.mxu2 %vm756_vm1, %v1819_v62 }
 0x421   : > { %3869 = vmatmul.msk.f32.gmra.mxu1 %vm756_vm1, %v1804_v39 }
 0x423   : > { %3824 = vmatmul.msk.f32.gmra.mxu2 %vm756_vm1, %v1820_v31 }
 0x427   : > { %v1772_v45 = vpop.permute.xlu0 %1771 }
 0x428   : > { %v1805_v5 = vsel %vm894_vm2, %v4936_v2, %v1772_v45 }
 0x429   : > { %v1821_v40 = vmax.f32 %v1805_v5, 0.0  ;;  %3870 = vmatmul.msk.f32.gmra.mxu1 %vm756_vm1, %v1805_v5 }
 0x42b   : > { %3825 = vmatmul.msk.f32.gmra.mxu2 %vm756_vm1, %v1821_v40 }
 0x42f   : > { %v1774_v57 = vpop.permute.xlu1 %1773 }
 0x430   : > { %v1806_v41 = vsel %vm894_vm2, %v4942_v7, %v1774_v57 }
 0x431   : > { %v1822_v19 = vmax.f32 %v1806_v41, 0.0  ;;  %3871 = vmatmul.msk.f32.gmra.mxu1 %vm756_vm1, %v1806_v41 }
 0x433   : > { %3826 = vmatmul.msk.f32.gmra.mxu2 %vm756_vm1, %v1822_v19 }
 0x436   : > { %v2163_v20 = vpop.f32.mrf.mxu1 }
 0x43e   : > { %v1902_v2 = vpop.f32.mrf.mxu2  ;;  %v2166_v3 = vpop.f32.mrf.mxu1 }
 0x43f   : > { %v1903_v17 = vadd.f32 %v5024_v13, %v1902_v2 }
 0x441   : > { %v1950_v46 = vmax.f32 %v1903_v17, 0.0 }
 0x443   : > { %3832 = vmatmul.msk.f32.vlgmr.msra.gmra.mxu0 %vm894_vm2, %v1950_v46 }
 0x446   : > { %v1905_v47 = vpop.f32.mrf.mxu2  ;;  %v2169_v36 = vpop.f32.mrf.mxu1 }
 0x447   : > { %v1906_v9 = vadd.f32 %v5024_v13, %v1905_v47 }
 0x449   : > { %v1951_v7 = vmax.f32 %v1906_v9, 0.0 }
 0x44b   : > { %3833 = vmatmul.msk.f32.gmra.mxu0 %vm894_vm2, %v1951_v7 }
 0x44e   : > { %v1908_v48 = vpop.f32.mrf.mxu2  ;;  %v2172_v31 = vpop.f32.mrf.mxu1 }
 0x44f   : > { %v1909_v8 = vadd.f32 %v5024_v13, %v1908_v48 }
 0x451   : > { %v1952_v49 = vmax.f32 %v1909_v8, 0.0 }
 0x453   : > { %3834 = vmatmul.msk.f32.gmra.mxu0 %vm894_vm2, %v1952_v49 }
 0x456   : > { %v1911_v16 = vpop.f32.mrf.mxu2  ;;  %v2175_v17 = vpop.f32.mrf.mxu1 }
 0x457   : > { %v1912_v50 = vadd.f32 %v5024_v13, %v1911_v16  ;;  %v3877_v16 = vld [vmem:[%s5691_s9 + $0xa8] sm:$0xff] }
 0x458   : > { %2491 = vmatpush.msra.mxu3 %v3877_v16 }
 0x459   : > { %v1953_v38 = vmax.f32 %v1912_v50, 0.0 }
 0x45b   : > { %3835 = vmatmul.msk.f32.gmra.mxu0 %vm894_vm2, %v1953_v38 }
 0x45e   : > { %v1914_v11 = vpop.f32.mrf.mxu2 }
 0x45f   : > { %v1915_v18 = vadd.f32 %v5024_v13, %v1914_v11 }
 0x461   : > { %v1954_v53 = vmax.f32 %v1915_v18, 0.0 }
 0x463   : > { %3836 = vmatmul.msk.f32.gmra.mxu0 %vm894_vm2, %v1954_v53 }
 0x466   : > { %v1917_v54 = vpop.f32.mrf.mxu2 }
 0x467   : > { %v1918_v55 = vadd.f32 %v5024_v13, %v1917_v54  ;;  %v2178_v54 = vpop.f32.mrf.mxu1 }
 0x469   : > { %v1955_v56 = vmax.f32 %v1918_v55, 0.0 }
 0x46b   : > { %3837 = vmatmul.msk.f32.gmra.mxu0 %vm894_vm2, %v1955_v56 }
 0x46e   : > { %v1920_v6 = vpop.f32.mrf.mxu2 }
 0x46f   : > { %v1921_v22 = vadd.f32 %v5024_v13, %v1920_v6 }
 0x471   : > { %v1956_v28 = vmax.f32 %v1921_v22, 0.0 }
 0x473   : > { %3838 = vmatmul.msk.f32.gmra.mxu0 %vm894_vm2, %v1956_v28 }
 0x476   : > { %v1923_v60 = vpop.f32.mrf.mxu2 }
 0x477   : > { %v1924_v35 = vadd.f32 %v5024_v13, %v1923_v60 }
 0x479   : > { %v1957_v61 = vmax.f32 %v1924_v35, 0.0 }
 0x47b   : > { %3839 = vmatmul.msk.f32.gmra.mxu0 %vm894_vm2, %v1957_v61 }
 0x47e   : > { %v1926_v63 = vpop.f32.mrf.mxu2 }
 0x47f   : > { %v1927_v25 = vadd.f32 %v5024_v13, %v1926_v63 }
 0x481   : > { %v1958_v0 = vmax.f32 %v1927_v25, 0.0 }
 0x483   : > { %3840 = vmatmul.msk.f32.gmra.mxu0 %vm894_vm2, %v1958_v0 }
 0x486   : > { %v1929_v24 = vpop.f32.mrf.mxu2 }
 0x487   : > { %v1930_v52 = vadd.f32 %v5024_v13, %v1929_v24 }
 0x489   : > { %v1959_v43 = vmax.f32 %v1930_v52, 0.0  ;;  %v2181_v52 = vpop.f32.mrf.mxu1 }
 0x48b   : > { %3841 = vmatmul.msk.f32.gmra.mxu0 %vm894_vm2, %v1959_v43 }
 0x48e   : > { %v1932_v12 = vpop.f32.mrf.mxu2 }
 0x48f   : > { %v1933_v23 = vadd.f32 %v5024_v13, %v1932_v12 }
 0x491   : > { %v1960_v26 = vmax.f32 %v1933_v23, 0.0 }
 0x493   : > { %3842 = vmatmul.msk.f32.gmra.mxu0 %vm894_vm2, %v1960_v26  ;;  %v3876_v26 = vld [vmem:[%s5691_s9 + $0xa0] sm:$0xff] }
 0x494   : > { %2492 = vmatpush.msra.mxu3 %v3876_v26 }
 0x496   : > { %v1935_v51 = vpop.f32.mrf.mxu2 }
 0x497   : > { %v1936_v14 = vadd.f32 %v5024_v13, %v1935_v51 }
 0x499   : > { %v1961_v21 = vmax.f32 %v1936_v14, 0.0 }
 0x49b   : > { %3843 = vmatmul.msk.f32.gmra.mxu0 %vm894_vm2, %v1961_v21 }
 0x49e   : > { %v1938_v34 = vpop.f32.mrf.mxu2 }
 0x49f   : > { %v1939_v27 = vadd.f32 %v5024_v13, %v1938_v34 }
 0x4a1   : > { %v1962_v29 = vmax.f32 %v1939_v27, 0.0 }
 0x4a3   : > { %3844 = vmatmul.msk.f32.gmra.mxu0 %vm894_vm2, %v1962_v29 }
 0x4a6   : > { %v1941_v30 = vpop.f32.mrf.mxu2 }
 0x4a7   : > { %v1942_v42 = vadd.f32 %v5024_v13, %v1941_v30 }
 0x4a9   : > { %v1963_v32 = vmax.f32 %v1942_v42, 0.0 }
 0x4ab   : > { %3845 = vmatmul.msk.f32.gmra.mxu0 %vm894_vm2, %v1963_v32 }
 0x4ae   : > { %v1944_v10 = vpop.f32.mrf.mxu2 }
 0x4af   : > { %v1945_v44 = vadd.f32 %v5024_v13, %v1944_v10  ;;  %v2184_v10 = vpop.f32.mrf.mxu1 }
 0x4b1   : > { %v1964_v1 = vmax.f32 %v1945_v44, 0.0 }
 0x4b3   : > { %3846 = vmatmul.msk.f32.gmra.mxu0 %vm894_vm2, %v1964_v1 }
 0x4b6   : > { %v1947_v59 = vpop.f32.mrf.mxu2 }
 0x4b7   : > { %v1948_v33 = vadd.f32 %v5024_v13, %v1947_v59 }
 0x4b9   : > { %v1965_v37 = vmax.f32 %v1948_v33, 0.0 }
 0x4bb   : > { %3847 = vmatmul.msk.f32.gmra.mxu0 %vm894_vm2, %v1965_v37 }
 0x4c0   : > { %v2041_v62 = vpop.f32.mrf.mxu0 }
 0x4c1   : > { %v2042_v39 = vadd.f32 %v5064_v4, %v2041_v62 }
 0x4c3   : > { %v5070_v45 = vadd.f32 %v2163_v20, %v2042_v39 }
 0x4c5   : > { %v2211_v5 = vsel %vm894_vm2, %v5070_v45, -inf }
 0x4c6   : > { %v2212_v40 = vrot.slane %v2211_v5, 4 }
 0x4c8   : > { %v2213_v57 = vmax.f32 %v2211_v5, %v2212_v40  ;;  %v2044_v41 = vpop.f32.mrf.mxu0  ;;  %v3875_v5 = vld [vmem:[%s5691_s9 + $0x98] sm:$0xff] }
 0x4c9   : > { %v2045_v19 = vadd.f32 %v5064_v4, %v2044_v41  ;;  %2493 = vmatpush.msra.mxu3 %v3875_v5 }
 0x4ca   : > { %v2214_v13 = vrot.slane %v2213_v57, 2 }
 0x4cb   : > { %v5075_v2 = vadd.f32 %v2166_v3, %v2045_v19 }
 0x4cc   : > { %v2215_v46 = vmax.f32 %v2213_v57, %v2214_v13  ;;  %v2187_v57 = vpop.f32.mrf.mxu1 }
 0x4cd   : > { %v2218_v47 = vsel %vm894_vm2, %v5075_v2, -inf }
 0x4ce   : > { %v2219_v9 = vrot.slane %v2218_v47, 4  ;;  %v2216_v7 = vrot.slane %v2215_v46, 1 }
 0x4d0   : > { %v2220_v48 = vmax.f32 %v2218_v47, %v2219_v9  ;;  %v2047_v8 = vpop.f32.mrf.mxu0  ;;  %v2217_v49 = vmax.f32 %v2215_v46, %v2216_v7 }
 0x4d1   : > { %v2048_v50 = vadd.f32 %v5064_v4, %v2047_v8 }
 0x4d2   : > { %2339 = vrot.lane.b32.xlu2 %v2217_v49, %s4143_s26  ;;  %v2221_v38 = vrot.slane %v2220_v48, 2 }
 0x4d3   : > { %v5084_v11 = vadd.f32 %v2169_v36, %v2048_v50 }
 0x4d4   : > { %v2222_v18 = vmax.f32 %v2220_v48, %v2221_v38  ;;  %v2190_v50 = vpop.f32.mrf.mxu1 }
 0x4d5   : > { %v2225_v53 = vsel %vm894_vm2, %v5084_v11, -inf }
 0x4d6   : > { %v2226_v55 = vrot.slane %v2225_v53, 4  ;;  %v2223_v56 = vrot.slane %v2222_v18, 1 }
 0x4d8   : > { %v2227_v6 = vmax.f32 %v2225_v53, %v2226_v55  ;;  %v2050_v22 = vpop.f32.mrf.mxu0  ;;  %v2224_v28 = vmax.f32 %v2222_v18, %v2223_v56  ;;  %v3925_v53 = vld [vmem:[%s5695_s13 + $0xb8] sm:$0xff] }
 0x4d9   : > { %v2051_v60 = vadd.f32 %v5064_v4, %v2050_v22  ;;  %2750 = vmatpush.msrb.mxu0 %v3925_v53 }
 0x4da   : > { %2341 = vrot.lane.b32.xlu0 %v2224_v28, %s4143_s26  ;;  %v2228_v35 = vrot.slane %v2227_v6, 2 }
 0x4db   : > { %v5090_v61 = vadd.f32 %v2172_v31, %v2051_v60  ;;  %v3874_v60 = vld [vmem:[%s5691_s9 + $0x90] sm:$0xff] }
 0x4dc   : > { %v2229_v63 = vmax.f32 %v2227_v6, %v2228_v35  ;;  %v3924_v6 = vld [vmem:[%s5695_s13 + $0xb0] sm:$0xff]  ;;  %v3923_v35 = vld [vmem:[%s5695_s13 + $0xa8] sm:$0xff]  ;;  %2494 = vmatpush.msra.mxu3 %v3874_v60 }
 0x4dd   : > { %v2232_v25 = vsel %vm894_vm2, %v5090_v61, -inf  ;;  %2751 = vmatpush.msrb.mxu0 %v3924_v6 }
 0x4de   : > { %v2233_v0 = vrot.slane %v2232_v25, 4  ;;  %v2230_v24 = vrot.slane %v2229_v63, 1 }
 0x4df   : > { %2752 = vmatpush.msrb.mxu0 %v3923_v35 }
 0x4e0   : > { %v2234_v43 = vmax.f32 %v2232_v25, %v2233_v0  ;;  %v2053_v12 = vpop.f32.mrf.mxu0  ;;  %v2231_v23 = vmax.f32 %v2229_v63, %v2230_v24  ;;  %v3922_v0 = vld [vmem:[%s5695_s13 + $0xa0] sm:$0xff] }
 0x4e1   : > { %v2054_v51 = vadd.f32 %v5064_v4, %v2053_v12  ;;  %2753 = vmatpush.msrb.mxu0 %v3922_v0  ;;  %v3921_v12 = vld [vmem:[%s5695_s13 + $0x98] sm:$0xff] }
 0x4e2   : > { %2343 = vrot.lane.b32.xlu1 %v2231_v23, %s4143_s26  ;;  %v2235_v14 = vrot.slane %v2234_v43, 2  ;;  %v2193_v23 = vpop.f32.mrf.mxu1 }
 0x4e3   : > { %v5099_v21 = vadd.f32 %v2175_v17, %v2054_v51  ;;  %2754 = vmatpush.msrb.mxu0 %v3921_v12 }
 0x4e4   : > { %v2236_v34 = vmax.f32 %v2234_v43, %v2235_v14 }
 0x4e5   : > { %v2239_v27 = vsel %vm894_vm2, %v5099_v21, -inf }
 0x4e6   : > { %v2240_v29 = vrot.slane %v2239_v27, 4  ;;  %v2237_v20 = vrot.slane %v2236_v34, 1 }
 0x4e8   : > { %v2241_v30 = vmax.f32 %v2239_v27, %v2240_v29  ;;  %v2056_v42 = vpop.f32.mrf.mxu0  ;;  %v2238_v32 = vmax.f32 %v2236_v34, %v2237_v20  ;;  %v3920_v34 = vld [vmem:[%s5695_s13 + $0x90] sm:$0xff]  ;;  %v3919_v20 = vld [vmem:[%s5695_s13 + $0x88] sm:$0xff] }
 0x4e9   : > { %v2057_v3 = vadd.f32 %v5064_v4, %v2056_v42  ;;  %2755 = vmatpush.msrb.mxu0 %v3920_v34 }
 0x4ea   : > { %2345 = vrot.lane.b32.xlu2 %v2238_v32, %s4143_s26  ;;  %v2242_v44 = vrot.slane %v2241_v30, 2  ;;  %v3873_v32 = vld [vmem:[%s5691_s9 + $0x88] sm:$0xff] }
 0x4eb   : > { %v5105_v58 = vadd.f32 %v2178_v54, %v2057_v3  ;;  %2756 = vmatpush.msrb.mxu0 %v3919_v20  ;;  %v3918_v3 = vld [vmem:[%s5695_s13 + $0x80] sm:$0xff]  ;;  %2495 = vmatpush.msra.mxu3 %v3873_v32 }
 0x4ec   : > { %v2243_v1 = vmax.f32 %v2241_v30, %v2242_v44 }
 0x4ed   : > { %v2246_v59 = vsel %vm894_vm2, %v5105_v58, -inf  ;;  %2757 = vmatpush.msrb.mxu0 %v3918_v3 }
 0x4ee   : > { %v2247_v33 = vrot.slane %v2246_v59, 4  ;;  %v2244_v36 = vrot.slane %v2243_v1, 1 }
 0x4f0   : > { %v2248_v37 = vmax.f32 %v2246_v59, %v2247_v33  ;;  %v2059_v62 = vpop.f32.mrf.mxu0  ;;  %v2245_v15 = vmax.f32 %v2243_v1, %v2244_v36  ;;  %v3872_v59 = vld [vmem:[%s5691_s9 + $0x80] sm:$0xff] }
 0x4f1   : > { %v2060_v39 = vadd.f32 %v5064_v4, %v2059_v62  ;;  %2496 = vmatpush.msra.mxu3 %v3872_v59 }
 0x4f2   : > { %2347 = vrot.lane.b32.xlu0 %v2245_v15, %s4143_s26  ;;  %v2249_v31 = vrot.slane %v2248_v37, 2  ;;  %v2196_v15 = vpop.f32.mrf.mxu1 }
 0x4f3   : > { %v5114_v40 = vadd.f32 %v2181_v52, %v2060_v39 }
 0x4f4   : > { %v2250_v41 = vmax.f32 %v2248_v37, %v2249_v31 }
 0x4f5   : > { %v2253_v19 = vsel %vm894_vm2, %v5114_v40, -inf }
 0x4f6   : > { %v2254_v13 = vrot.slane %v2253_v19, 4  ;;  %v2251_v17 = vrot.slane %v2250_v41, 1 }
 0x4f8   : > { %v2255_v46 = vmax.f32 %v2253_v19, %v2254_v13  ;;  %v2062_v47 = vpop.f32.mrf.mxu0  ;;  %v2252_v9 = vmax.f32 %v2250_v41, %v2251_v17 }
 0x4f9   : > { %v2063_v7 = vadd.f32 %v5064_v4, %v2062_v47 }
 0x4fa   : > { %2349 = vrot.lane.b32.xlu1 %v2252_v9, %s4143_s26  ;;  %v2256_v48 = vrot.slane %v2255_v46, 2 }
 0x4fb   : > { %v5120_v8 = vadd.f32 %v2184_v10, %v2063_v7 }
 0x4fc   : > { %v2257_v49 = vmax.f32 %v2255_v46, %v2256_v48  ;;  %v2199_v48 = vpop.f32.mrf.mxu1 }
 0x4fd   : > { %v2260_v16 = vsel %vm894_vm2, %v5120_v8, -inf }
 0x4fe   : > { %v2261_v38 = vrot.slane %v2260_v16, 4  ;;  %v2258_v18 = vrot.slane %v2257_v49, 1 }
 0x500   : > { %v2262_v54 = vmax.f32 %v2260_v16, %v2261_v38  ;;  %v2065_v55 = vpop.f32.mrf.mxu0  ;;  %v2259_v56 = vmax.f32 %v2257_v49, %v2258_v18 }
 0x501   : > { %v2066_v22 = vadd.f32 %v5064_v4, %v2065_v55 }
 0x502   : > { %2351 = vrot.lane.b32.xlu2 %v2259_v56, %s4143_s26  ;;  %v2263_v28 = vrot.slane %v2262_v54, 2 }
 0x503   : > { %v5138_v63 = vadd.f32 %v2187_v57, %v2066_v22 }
 0x504   : > { %v2264_v25 = vmax.f32 %v2262_v54, %v2263_v28  ;;  %v2202_v60 = vpop.f32.mrf.mxu1 }
 0x505   : > { %v2267_v24 = vsel %vm894_vm2, %v5138_v63, -inf }
 0x506   : > { %v2268_v52 = vrot.slane %v2267_v24, 4  ;;  %v2265_v43 = vrot.slane %v2264_v25, 1 }
 0x508   : > { %v2269_v26 = vmax.f32 %v2267_v24, %v2268_v52  ;;  %v2068_v51 = vpop.f32.mrf.mxu0  ;;  %v2266_v14 = vmax.f32 %v2264_v25, %v2265_v43 }
 0x509   : > { %v2069_v27 = vadd.f32 %v5064_v4, %v2068_v51 }
 0x50a   : > { %2353 = vrot.lane.b32.xlu0 %v2266_v14, %s4143_s26  ;;  %v2270_v29 = vrot.slane %v2269_v26, 2 }
 0x50b   : > { %v5156_v30 = vadd.f32 %v2190_v50, %v2069_v27 }
 0x50c   : > { %v2271_v42 = vmax.f32 %v2269_v26, %v2270_v29 }
 0x50d   : > { %v2274_v10 = vsel %vm894_vm2, %v5156_v30, -inf }
 0x50e   : > { %v2275_v44 = vrot.slane %v2274_v10, 4  ;;  %v2272_v1 = vrot.slane %v2271_v42, 1 }
 0x510   : > { %v2276_v33 = vmax.f32 %v2274_v10, %v2275_v44  ;;  %v2071_v36 = vpop.f32.mrf.mxu0  ;;  %v2273_v37 = vmax.f32 %v2271_v42, %v2272_v1  ;;  %v2205_v42 = vpop.f32.mrf.mxu1  ;;  %v3900_v44 = vld [vmem:[%s5693_s11 + $0x58] sm:$0xff] }
 0x511   : > { %v2072_v62 = vadd.f32 %v5064_v4, %v2071_v36  ;;  %2632 = vmatpush.msra.mxu2 %v3900_v44 }
 0x512   : > { %v2277_v39 = vrot.slane %v2276_v33, 2  ;;  %2355 = vrot.lane.b32.xlu1 %v2273_v37, %s4143_s26 }
 0x513   : > { %v5171_v31 = vadd.f32 %v2193_v23, %v2072_v62 }
 0x514   : > { %v2278_v5 = vmax.f32 %v2276_v33, %v2277_v39 }
 0x515   : > { %v2281_v57 = vsel %vm894_vm2, %v5171_v31, -inf }
 0x516   : > { %v2282_v41 = vrot.slane %v2281_v57, 4  ;;  %v2279_v19 = vrot.slane %v2278_v5, 1 }
 0x518   : > { %v2283_v13 = vmax.f32 %v2281_v57, %v2282_v41  ;;  %v2074_v17 = vpop.f32.mrf.mxu0  ;;  %v2280_v46 = vmax.f32 %v2278_v5, %v2279_v19  ;;  %v2208_v41 = vpop.f32.mrf.mxu1 }
 0x519   : > { %v2075_v47 = vadd.f32 %v5064_v4, %v2074_v17 }
 0x51a   : > { %v2284_v9 = vrot.slane %v2283_v13, 2  ;;  %2357 = vrot.lane.b32.xlu2 %v2280_v46, %s4143_s26 }
 0x51b   : > { %v5177_v7 = vadd.f32 %v2196_v15, %v2075_v47 }
 0x51c   : > { %v2285_v49 = vmax.f32 %v2283_v13, %v2284_v9 }
 0x51d   : > { %v2288_v16 = vsel %vm894_vm2, %v5177_v7, -inf }
 0x51e   : > { %v2289_v50 = vrot.slane %v2288_v16, 4  ;;  %v2286_v38 = vrot.slane %v2285_v49, 1 }
 0x520   : > { %v2290_v18 = vmax.f32 %v2288_v16, %v2289_v50  ;;  %v2077_v53 = vpop.f32.mrf.mxu0  ;;  %v2287_v54 = vmax.f32 %v2285_v49, %v2286_v38 }
 0x521   : > { %v2078_v55 = vadd.f32 %v5064_v4, %v2077_v53 }
 0x522   : > { %v2291_v56 = vrot.slane %v2290_v18, 2  ;;  %2359 = vrot.lane.b32.xlu0 %v2287_v54, %s4143_s26 }
 0x523   : > { %v5183_v6 = vadd.f32 %v2199_v48, %v2078_v55  ;;  %v3899_v55 = vld [vmem:[%s5693_s11 + $0x50] sm:$0xff] }
 0x524   : > { %v2292_v22 = vmax.f32 %v2290_v18, %v2291_v56  ;;  %2633 = vmatpush.msra.mxu2 %v3899_v55 }
 0x525   : > { %v2295_v28 = vsel %vm894_vm2, %v5183_v6, -inf }
 0x526   : > { %v2296_v35 = vrot.slane %v2295_v28, 4  ;;  %v2293_v25 = vrot.slane %v2292_v22, 1 }
 0x528   : > { %v2297_v0 = vmax.f32 %v2295_v28, %v2296_v35  ;;  %v2080_v24 = vpop.f32.mrf.mxu0  ;;  %v2294_v52 = vmax.f32 %v2292_v22, %v2293_v25 }
 0x529   : > { %v2081_v43 = vadd.f32 %v5064_v4, %v2080_v24 }
 0x52a   : > { %v2298_v12 = vrot.slane %v2297_v0, 2  ;;  %2361 = vrot.lane.b32.xlu1 %v2294_v52, %s4143_s26 }
 0x52b   : > { %v5189_v23 = vadd.f32 %v2202_v60, %v2081_v43 }
 0x52c   : > { %v2340_v26 = vpop.permute.xlu2 %2339  ;;  %v2299_v51 = vmax.f32 %v2297_v0, %v2298_v12  ;;  %v3898_v12 = vld [vmem:[%s5693_s11 + $0x48] sm:$0xff] }
 0x52d   : > { %v2302_v14 = vsel %vm894_vm2, %v5189_v23, -inf  ;;  %v2387_v34 = vsel %vm894_vm2, %v5070_v45, %v2340_v26  ;;  %2634 = vmatpush.msra.mxu2 %v3898_v12 }
 0x52e   : > { %v2303_v27 = vrot.slane %v2302_v14, 4  ;;  %v2403_v29 = vmax.f32 %v2387_v34, 0.0  ;;  %3926 = vmatmul.msk.f32.vlgmr.msrb.gmra.mxu0 %vm756_vm1, %v2387_v34  ;;  %v2300_v20 = vrot.slane %v2299_v51, 1 }
 0x530   : > { %v2304_v32 = vmax.f32 %v2302_v14, %v2303_v27  ;;  %v2083_v3 = vpop.f32.mrf.mxu0  ;;  %3881 = vmatmul.msk.f32.vlgmr.msra.gmra.mxu3 %vm756_vm1, %v2403_v29  ;;  %v2301_v10 = vmax.f32 %v2299_v51, %v2300_v20 }
 0x531   : > { %v2084_v1 = vadd.f32 %v5064_v4, %v2083_v3 }
 0x532   : > { %v2305_v59 = vrot.slane %v2304_v32, 2  ;;  %2363 = vrot.lane.b32.xlu2 %v2301_v10, %s4143_s26 }
 0x533   : > { %v5202_v45 = vadd.f32 %v2205_v42, %v2084_v1 }
 0x534   : > { %v2306_v33 = vmax.f32 %v2304_v32, %v2305_v59 }
 0x535   : > { %v2309_v36 = vsel %vm894_vm2, %v5202_v45, -inf }
 0x536   : > { %v2310_v37 = vrot.slane %v2309_v36, 4  ;;  %v2307_v62 = vrot.slane %v2306_v33, 1 }
 0x538   : > { %v2311_v15 = vmax.f32 %v2309_v36, %v2310_v37  ;;  %v2086_v39 = vpop.f32.mrf.mxu0  ;;  %v2308_v5 = vmax.f32 %v2306_v33, %v2307_v62 }
 0x539   : > { %v2087_v57 = vadd.f32 %v5064_v4, %v2086_v39 }
 0x53a   : > { %v2312_v19 = vrot.slane %v2311_v15, 2  ;;  %2365 = vrot.lane.b32.xlu0 %v2308_v5, %s4143_s26 }
 0x53b   : > { %v5208_v13 = vadd.f32 %v2208_v41, %v2087_v57 }
 0x53c   : > { %v2313_v17 = vmax.f32 %v2311_v15, %v2312_v19 }
 0x53d   : > { %v2316_v46 = vsel %vm894_vm2, %v5208_v13, -inf }
 0x53e   : > { %v2317_v47 = vrot.slane %v2316_v46, 4  ;;  %v2314_v9 = vrot.slane %v2313_v17, 1 }
 0x540   : > { %v2318_v48 = vmax.f32 %v2316_v46, %v2317_v47  ;;  %v2315_v49 = vmax.f32 %v2313_v17, %v2314_v9 }
 0x542   : > { %v2319_v16 = vrot.slane %v2318_v48, 2  ;;  %2367 = vrot.lane.b32.xlu1 %v2315_v49, %s4143_s26 }
 0x544   : > { %v2320_v50 = vmax.f32 %v2318_v48, %v2319_v16  ;;  %v2346_v60 = vpop.permute.xlu2 %2345 }
 0x546   : > { %v2321_v38 = vrot.slane %v2320_v50, 1 }
 0x548   : > { %v2322_v4 = vmax.f32 %v2320_v50, %v2321_v38 }
 0x54a   : > { %2369 = vrot.lane.b32.xlu2 %v2322_v4, %s4143_s26 }
 0x54c   : > { %v2342_v18 = vpop.permute.xlu0 %2341 }
 0x54d   : > { %v2388_v53 = vsel %vm894_vm2, %v5075_v2, %v2342_v18  ;;  %v2390_v2 = vsel %vm894_vm2, %v5090_v61, %v2346_v60 }
 0x54e   : > { %v2404_v54 = vmax.f32 %v2388_v53, 0.0  ;;  %3927 = vmatmul.msk.f32.gmra.mxu0 %vm756_vm1, %v2388_v53  ;;  %v2406_v35 = vmax.f32 %v2390_v2, 0.0 }
 0x550   : > { %3882 = vmatmul.msk.f32.gmra.mxu3 %vm756_vm1, %v2404_v54 }
 0x554   : > { %v2344_v56 = vpop.permute.xlu1 %2343 }
 0x555   : > { %v2389_v22 = vsel %vm894_vm2, %v5084_v11, %v2344_v56 }
 0x556   : > { %v2405_v28 = vmax.f32 %v2389_v22, 0.0  ;;  %3928 = vmatmul.msk.f32.gmra.mxu0 %vm756_vm1, %v2389_v22 }
 0x558   : > { %3883 = vmatmul.msk.f32.gmra.mxu3 %vm756_vm1, %v2405_v28 }
 0x55c   : > { %v2352_v61 = vpop.permute.xlu2 %2351 }
 0x55e   : > { %3929 = vmatmul.msk.f32.gmra.mxu0 %vm756_vm1, %v2390_v2 }
 0x560   : > { %3884 = vmatmul.msk.f32.gmra.mxu3 %vm756_vm1, %v2406_v35 }
 0x564   : > { %v2348_v25 = vpop.permute.xlu0 %2347 }
 0x565   : > { %v2391_v0 = vsel %vm894_vm2, %v5099_v21, %v2348_v25  ;;  %v2393_v21 = vsel %vm894_vm2, %v5114_v40, %v2352_v61 }
 0x566   : > { %v2407_v24 = vmax.f32 %v2391_v0, 0.0  ;;  %3930 = vmatmul.msk.f32.gmra.mxu0 %vm756_vm1, %v2391_v0  ;;  %v2409_v26 = vmax.f32 %v2393_v21, 0.0 }
 0x568   : > { %3885 = vmatmul.msk.f32.gmra.mxu3 %vm756_vm1, %v2407_v24 }
 0x56c   : > { %v2350_v11 = vpop.permute.xlu1 %2349 }
 0x56d   : > { %v2392_v52 = vsel %vm894_vm2, %v5105_v58, %v2350_v11 }
 0x56e   : > { %v2408_v43 = vmax.f32 %v2392_v52, 0.0  ;;  %3931 = vmatmul.msk.f32.gmra.mxu0 %vm756_vm1, %v2392_v52 }
 0x570   : > { %3886 = vmatmul.msk.f32.gmra.mxu3 %vm756_vm1, %v2408_v43 }
 0x574   : > { %v2358_v40 = vpop.permute.xlu2 %2357 }
 0x575   : > { %v2396_v20 = vsel %vm894_vm2, %v5156_v30, %v2358_v40 }
 0x576   : > { %3932 = vmatmul.msk.f32.gmra.mxu0 %vm756_vm1, %v2393_v21  ;;  %v2412_v42 = vmax.f32 %v2396_v20, 0.0 }
 0x578   : > { %3887 = vmatmul.msk.f32.gmra.mxu3 %vm756_vm1, %v2409_v26 }
 0x57c   : > { %v2354_v58 = vpop.permute.xlu0 %2353 }
 0x57d   : > { %v2394_v51 = vsel %vm894_vm2, %v5120_v8, %v2354_v58  ;;  %v3897_v8 = vld [vmem:[%s5693_s11 + $0x40] sm:$0xff] }
 0x57e   : > { %v2410_v14 = vmax.f32 %v2394_v51, 0.0  ;;  %3933 = vmatmul.msk.f32.gmra.mxu0 %vm756_vm1, %v2394_v51  ;;  %2635 = vmatpush.msra.mxu2 %v3897_v8 }
 0x580   : > { %3888 = vmatmul.msk.f32.gmra.mxu3 %vm756_vm1, %v2410_v14 }
 0x584   : > { %v2356_v34 = vpop.permute.xlu1 %2355 }
 0x585   : > { %v2395_v27 = vsel %vm894_vm2, %v5138_v63, %v2356_v34 }
 0x586   : > { %v2411_v29 = vmax.f32 %v2395_v27, 0.0  ;;  %3934 = vmatmul.msk.f32.gmra.mxu0 %vm756_vm1, %v2395_v27 }
 0x588   : > { %3889 = vmatmul.msk.f32.gmra.mxu3 %vm756_vm1, %v2411_v29 }
 0x58c   : > { %v2364_v1 = vpop.permute.xlu2 %2363 }
 0x58d   : > { %v2399_v59 = vsel %vm894_vm2, %v5183_v6, %v2364_v1 }
 0x58e   : > { %3935 = vmatmul.msk.f32.gmra.mxu0 %vm756_vm1, %v2396_v20  ;;  %v2415_v33 = vmax.f32 %v2399_v59, 0.0  ;;  %v5319_v20 = vld [vmem:[%s5694_s12 + $0x2] ss:$0 sm:$0xff] }
 0x590   : > { %3890 = vmatmul.msk.f32.gmra.mxu3 %vm756_vm1, %v2412_v42 }
 0x594   : > { %v2360_v63 = vpop.permute.xlu0 %2359 }
 0x595   : > { %v2397_v32 = vsel %vm894_vm2, %v5171_v31, %v2360_v63 }
 0x596   : > { %v2413_v3 = vmax.f32 %v2397_v32, 0.0  ;;  %3936 = vmatmul.msk.f32.gmra.mxu0 %vm756_vm1, %v2397_v32 }
 0x598   : > { %3891 = vmatmul.msk.f32.gmra.mxu3 %vm756_vm1, %v2413_v3 }
 0x59c   : > { %v2362_v30 = vpop.permute.xlu1 %2361 }
 0x59d   : > { %v2398_v10 = vsel %vm894_vm2, %v5177_v7, %v2362_v30  ;;  %v5278_v7 = vld [vmem:[%s5692_s10 + $0x2] ss:$0 sm:$0xff] }
 0x59e   : > { %v2414_v44 = vmax.f32 %v2398_v10, 0.0  ;;  %3937 = vmatmul.msk.f32.gmra.mxu0 %vm756_vm1, %v2398_v10 }
 0x5a0   : > { %3892 = vmatmul.msk.f32.gmra.mxu3 %vm756_vm1, %v2414_v44 }
 0x5a6   : > { %3938 = vmatmul.msk.f32.gmra.mxu0 %vm756_vm1, %v2399_v59 }
 0x5a8   : > { %3893 = vmatmul.msk.f32.gmra.mxu3 %vm756_vm1, %v2415_v33 }
 0x5ab   : > { %v2759_v42 = vpop.f32.mrf.mxu0 }
 0x5ac   : > { %v2366_v31 = vpop.permute.xlu0 %2365 }
 0x5ad   : > { %v2400_v36 = vsel %vm894_vm2, %v5189_v23, %v2366_v31  ;;  %v2370_v23 = vpop.permute.xlu2 %2369 }
 0x5ae   : > { %v2416_v37 = vmax.f32 %v2400_v36, 0.0  ;;  %3939 = vmatmul.msk.f32.gmra.mxu0 %vm756_vm1, %v2400_v36  ;;  %v2402_v41 = vsel %vm894_vm2, %v5208_v13, %v2370_v23  ;;  %v3949_v36 = vld [vmem:[%s5691_s9 + $0xf8] sm:$0xff]  ;;  %v3948_v23 = vld [vmem:[%s5691_s9 + $0xf0] sm:$0xff] }
 0x5af   : > { %v2418_v19 = vmax.f32 %v2402_v41, 0.0  ;;  %3085 = vmatpush.msrb.mxu1 %v3949_v36 }
 0x5b0   : > { %3894 = vmatmul.msk.f32.gmra.mxu3 %vm756_vm1, %v2416_v37 }
 0x5b1   : > { %3086 = vmatpush.msrb.mxu1 %v3948_v23 }
 0x5b3   : > { %v2498_v6 = vpop.f32.mrf.mxu3 }
 0x5b4   : > { %v2499_v62 = vadd.f32 %v5278_v7, %v2498_v6  ;;  %v2368_v15 = vpop.permute.xlu1 %2367 }
 0x5b5   : > { %v2401_v39 = vsel %vm894_vm2, %v5202_v45, %v2368_v15 }
 0x5b6   : > { %v2546_v5 = vmax.f32 %v2499_v62, 0.0  ;;  %v2417_v57 = vmax.f32 %v2401_v39, 0.0  ;;  %3940 = vmatmul.msk.f32.gmra.mxu0 %vm756_vm1, %v2401_v39 }
 0x5b8   : > { %3895 = vmatmul.msk.f32.gmra.mxu3 %vm756_vm1, %v2417_v57  ;;  %3902 = vmatmul.msk.f32.vlgmr.msra.gmra.mxu2 %vm894_vm2, %v2546_v5 }
 0x5be   : > { %3941 = vmatmul.msk.f32.gmra.mxu0 %vm756_vm1, %v2402_v41 }
 0x5c0   : > { %3896 = vmatmul.msk.f32.gmra.mxu3 %vm756_vm1, %v2418_v19 }
 0x5cb   : > { %v2762_v1 = vpop.f32.mrf.mxu0 }
 0x5d3   : > { %v2501_v17 = vpop.f32.mrf.mxu3  ;;  %v2765_v5 = vpop.f32.mrf.mxu0 }
 0x5d4   : > { %v2502_v45 = vadd.f32 %v5278_v7, %v2501_v17 }
 0x5d6   : > { %v2547_v46 = vmax.f32 %v2502_v45, 0.0 }
 0x5d8   : > { %3903 = vmatmul.msk.f32.gmra.mxu2 %vm894_vm2, %v2547_v46 }
 0x5db   : > { %v2504_v47 = vpop.f32.mrf.mxu3  ;;  %v2768_v41 = vpop.f32.mrf.mxu0 }
 0x5dc   : > { %v2505_v9 = vadd.f32 %v5278_v7, %v2504_v47 }
 0x5de   : > { %v2548_v48 = vmax.f32 %v2505_v9, 0.0 }
 0x5e0   : > { %3904 = vmatmul.msk.f32.gmra.mxu2 %vm894_vm2, %v2548_v48 }
 0x5e3   : > { %v2507_v49 = vpop.f32.mrf.mxu3  ;;  %v2771_v45 = vpop.f32.mrf.mxu0 }
 0x5e4   : > { %v2508_v13 = vadd.f32 %v5278_v7, %v2507_v49  ;;  %v3947_v49 = vld [vmem:[%s5691_s9 + $0xe8] sm:$0xff] }
 0x5e5   : > { %3087 = vmatpush.msrb.mxu1 %v3947_v49 }
 0x5e6   : > { %v2549_v16 = vmax.f32 %v2508_v13, 0.0 }
 0x5e8   : > { %3905 = vmatmul.msk.f32.gmra.mxu2 %vm894_vm2, %v2549_v16 }
 0x5eb   : > { %v2510_v50 = vpop.f32.mrf.mxu3 }
 0x5ec   : > { %v2511_v38 = vadd.f32 %v5278_v7, %v2510_v50 }
 0x5ee   : > { %v2550_v4 = vmax.f32 %v2511_v38, 0.0 }
 0x5f0   : > { %3906 = vmatmul.msk.f32.gmra.mxu2 %vm894_vm2, %v2550_v4 }
 0x5f3   : > { %v2513_v18 = vpop.f32.mrf.mxu3 }
 0x5f4   : > { %v2514_v53 = vadd.f32 %v5278_v7, %v2513_v18  ;;  %v2774_v18 = vpop.f32.mrf.mxu0 }
 0x5f6   : > { %v2551_v54 = vmax.f32 %v2514_v53, 0.0 }
 0x5f8   : > { %3907 = vmatmul.msk.f32.gmra.mxu2 %vm894_vm2, %v2551_v54 }
 0x5fb   : > { %v2516_v55 = vpop.f32.mrf.mxu3 }
 0x5fc   : > { %v2517_v56 = vadd.f32 %v5278_v7, %v2516_v55 }
 0x5fe   : > { %v2552_v22 = vmax.f32 %v2517_v56, 0.0 }
 0x600   : > { %3908 = vmatmul.msk.f32.gmra.mxu2 %vm894_vm2, %v2552_v22 }
 0x603   : > { %v2519_v28 = vpop.f32.mrf.mxu3 }
 0x604   : > { %v2520_v60 = vadd.f32 %v5278_v7, %v2519_v28 }
 0x606   : > { %v2553_v2 = vmax.f32 %v2520_v60, 0.0 }
 0x608   : > { %3909 = vmatmul.msk.f32.gmra.mxu2 %vm894_vm2, %v2553_v2 }
 0x60b   : > { %v2522_v35 = vpop.f32.mrf.mxu3 }
 0x60c   : > { %v2523_v25 = vadd.f32 %v5278_v7, %v2522_v35 }
 0x60e   : > { %v2554_v0 = vmax.f32 %v2523_v25, 0.0 }
 0x610   : > { %3910 = vmatmul.msk.f32.gmra.mxu2 %vm894_vm2, %v2554_v0 }
 0x613   : > { %v2525_v24 = vpop.f32.mrf.mxu3 }
 0x614   : > { %v2526_v11 = vadd.f32 %v5278_v7, %v2525_v24 }
 0x616   : > { %v2555_v52 = vmax.f32 %v2526_v11, 0.0  ;;  %v2777_v11 = vpop.f32.mrf.mxu0 }
 0x618   : > { %3911 = vmatmul.msk.f32.gmra.mxu2 %vm894_vm2, %v2555_v52 }
 0x61b   : > { %v2528_v43 = vpop.f32.mrf.mxu3 }
 0x61c   : > { %v2529_v61 = vadd.f32 %v5278_v7, %v2528_v43 }
 0x61e   : > { %v2556_v12 = vmax.f32 %v2529_v61, 0.0 }
 0x620   : > { %3912 = vmatmul.msk.f32.gmra.mxu2 %vm894_vm2, %v2556_v12  ;;  %v3946_v12 = vld [vmem:[%s5691_s9 + $0xe0] sm:$0xff] }
 0x621   : > { %3088 = vmatpush.msrb.mxu1 %v3946_v12 }
 0x623   : > { %v2531_v21 = vpop.f32.mrf.mxu3 }
 0x624   : > { %v2532_v26 = vadd.f32 %v5278_v7, %v2531_v21 }
 0x626   : > { %v2557_v58 = vmax.f32 %v2532_v26, 0.0 }
 0x628   : > { %3913 = vmatmul.msk.f32.gmra.mxu2 %vm894_vm2, %v2557_v58 }
 0x62b   : > { %v2534_v51 = vpop.f32.mrf.mxu3 }
 0x62c   : > { %v2535_v14 = vadd.f32 %v5278_v7, %v2534_v51 }
 0x62e   : > { %v2558_v34 = vmax.f32 %v2535_v14, 0.0 }
 0x630   : > { %3914 = vmatmul.msk.f32.gmra.mxu2 %vm894_vm2, %v2558_v34 }
 0x633   : > { %v2537_v27 = vpop.f32.mrf.mxu3 }
 0x634   : > { %v2538_v29 = vadd.f32 %v5278_v7, %v2537_v27 }
 0x636   : > { %v2559_v40 = vmax.f32 %v2538_v29, 0.0 }
 0x638   : > { %3915 = vmatmul.msk.f32.gmra.mxu2 %vm894_vm2, %v2559_v40 }
 0x63b   : > { %v2540_v8 = vpop.f32.mrf.mxu3  ;;  %v2637_v63 = vpop.f32.mrf.mxu2 }
 0x63c   : > { %v2541_v32 = vadd.f32 %v5278_v7, %v2540_v8  ;;  %v2638_v3 = vadd.f32 %v5319_v20, %v2637_v63  ;;  %v2780_v63 = vpop.f32.mrf.mxu0 }
 0x63e   : > { %v2560_v30 = vmax.f32 %v2541_v32, 0.0  ;;  %v5323_v10 = vadd.f32 %v2759_v42, %v2638_v3 }
 0x640   : > { %v2807_v44 = vsel %vm894_vm2, %v5323_v10, -inf  ;;  %3916 = vmatmul.msk.f32.gmra.mxu2 %vm894_vm2, %v2560_v30 }
 0x641   : > { %v2808_v59 = vrot.slane %v2807_v44, 4 }
 0x643   : > { %v2809_v33 = vmax.f32 %v2807_v44, %v2808_v59  ;;  %v2543_v31 = vpop.f32.mrf.mxu3 }
 0x644   : > { %v2544_v37 = vadd.f32 %v5278_v7, %v2543_v31 }
 0x645   : > { %v2810_v6 = vrot.slane %v2809_v33, 2 }
 0x646   : > { %v2561_v62 = vmax.f32 %v2544_v37, 0.0 }
 0x647   : > { %v2811_v15 = vmax.f32 %v2809_v33, %v2810_v6 }
 0x648   : > { %3917 = vmatmul.msk.f32.gmra.mxu2 %vm894_vm2, %v2561_v62  ;;  %v3945_v62 = vld [vmem:[%s5691_s9 + $0xd8] sm:$0xff] }
 0x649   : > { %v2812_v39 = vrot.slane %v2811_v15, 1  ;;  %3089 = vmatpush.msrb.mxu1 %v3945_v62 }
 0x64b   : > { %v2813_v57 = vmax.f32 %v2811_v15, %v2812_v39  ;;  %v2783_v39 = vpop.f32.mrf.mxu0 }
 0x64d   : > { %2935 = vrot.lane.b32.xlu0 %v2813_v57, %s4143_s26 }
 0x65b   : > { %v2640_v19 = vpop.f32.mrf.mxu2 }
 0x65c   : > { %v2641_v7 = vadd.f32 %v5319_v20, %v2640_v19 }
 0x65e   : > { %v5338_v17 = vadd.f32 %v2762_v1, %v2641_v7 }
 0x660   : > { %v2814_v46 = vsel %vm894_vm2, %v5338_v17, -inf }
 0x661   : > { %v2815_v47 = vrot.slane %v2814_v46, 4 }
 0x663   : > { %v2816_v9 = vmax.f32 %v2814_v46, %v2815_v47  ;;  %v2643_v48 = vpop.f32.mrf.mxu2 }
 0x664   : > { %v2644_v13 = vadd.f32 %v5319_v20, %v2643_v48 }
 0x665   : > { %v2817_v16 = vrot.slane %v2816_v9, 2 }
 0x666   : > { %v5346_v50 = vadd.f32 %v2765_v5, %v2644_v13  ;;  %v2786_v13 = vpop.f32.mrf.mxu0 }
 0x667   : > { %v2818_v38 = vmax.f32 %v2816_v9, %v2817_v16 }
 0x668   : > { %v2821_v4 = vsel %vm894_vm2, %v5346_v50, -inf }
 0x669   : > { %v2822_v53 = vrot.slane %v2821_v4, 4  ;;  %v2819_v54 = vrot.slane %v2818_v38, 1 }
 0x66b   : > { %v2823_v55 = vmax.f32 %v2821_v4, %v2822_v53  ;;  %v2646_v56 = vpop.f32.mrf.mxu2  ;;  %v2820_v22 = vmax.f32 %v2818_v38, %v2819_v54  ;;  %v3995_v4 = vld [vmem:[%s5695_s13 + $0xf8] sm:$0xff] }
 0x66c   : > { %v2647_v28 = vadd.f32 %v5319_v20, %v2646_v56  ;;  %3346 = vmatpush.msrb.mxu2 %v3995_v4  ;;  %v3994_v56 = vld [vmem:[%s5695_s13 + $0xf0] sm:$0xff] }
 0x66d   : > { %2937 = vrot.lane.b32.xlu1 %v2820_v22, %s4143_s26  ;;  %v2824_v60 = vrot.slane %v2823_v55, 2 }
 0x66e   : > { %v5352_v2 = vadd.f32 %v2768_v41, %v2647_v28  ;;  %v3944_v28 = vld [vmem:[%s5691_s9 + $0xd0] sm:$0xff]  ;;  %3347 = vmatpush.msrb.mxu2 %v3994_v56 }
 0x66f   : > { %v2825_v35 = vmax.f32 %v2823_v55, %v2824_v60  ;;  %3090 = vmatpush.msrb.mxu1 %v3944_v28 }
 0x670   : > { %v2828_v25 = vsel %vm894_vm2, %v5352_v2, -inf }
 0x671   : > { %v2829_v0 = vrot.slane %v2828_v25, 4  ;;  %v2826_v24 = vrot.slane %v2825_v35, 1 }
 0x673   : > { %v2830_v52 = vmax.f32 %v2828_v25, %v2829_v0  ;;  %v2649_v43 = vpop.f32.mrf.mxu2  ;;  %v2827_v61 = vmax.f32 %v2825_v35, %v2826_v24  ;;  %v3993_v35 = vld [vmem:[%s5695_s13 + $0xe8] sm:$0xff]  ;;  %v3992_v24 = vld [vmem:[%s5695_s13 + $0xe0] sm:$0xff] }
 0x674   : > { %v2650_v21 = vadd.f32 %v5319_v20, %v2649_v43  ;;  %3348 = vmatpush.msrb.mxu2 %v3993_v35  ;;  %v3991_v43 = vld [vmem:[%s5695_s13 + $0xd8] sm:$0xff] }
 0x675   : > { %2939 = vrot.lane.b32.xlu2 %v2827_v61, %s4143_s26  ;;  %v2831_v26 = vrot.slane %v2830_v52, 2  ;;  %v2789_v61 = vpop.f32.mrf.mxu0 }
 0x676   : > { %v5361_v58 = vadd.f32 %v2771_v45, %v2650_v21  ;;  %3349 = vmatpush.msrb.mxu2 %v3992_v24 }
 0x677   : > { %v2832_v51 = vmax.f32 %v2830_v52, %v2831_v26 }
 0x678   : > { %v2835_v14 = vsel %vm894_vm2, %v5361_v58, -inf  ;;  %3350 = vmatpush.msrb.mxu2 %v3991_v43 }
 0x679   : > { %v2836_v34 = vrot.slane %v2835_v14, 4  ;;  %v2833_v27 = vrot.slane %v2832_v51, 1 }
 0x67b   : > { %v2837_v29 = vmax.f32 %v2835_v14, %v2836_v34  ;;  %v2652_v40 = vpop.f32.mrf.mxu2  ;;  %v2834_v42 = vmax.f32 %v2832_v51, %v2833_v27  ;;  %v3990_v14 = vld [vmem:[%s5695_s13 + $0xd0] sm:$0xff] }
 0x67c   : > { %v2653_v8 = vadd.f32 %v5319_v20, %v2652_v40  ;;  %3351 = vmatpush.msrb.mxu2 %v3990_v14 }
 0x67d   : > { %2941 = vrot.lane.b32.xlu0 %v2834_v42, %s4143_s26  ;;  %v2838_v32 = vrot.slane %v2837_v29, 2 }
 0x67e   : > { %v5367_v3 = vadd.f32 %v2774_v18, %v2653_v8  ;;  %v3943_v8 = vld [vmem:[%s5691_s9 + $0xc8] sm:$0xff] }
 0x67f   : > { %v2839_v30 = vmax.f32 %v2837_v29, %v2838_v32  ;;  %v3989_v29 = vld [vmem:[%s5695_s13 + $0xc8] sm:$0xff]  ;;  %3091 = vmatpush.msrb.mxu1 %v3943_v8 }
 0x680   : > { %v2842_v44 = vsel %vm894_vm2, %v5367_v3, -inf  ;;  %3352 = vmatpush.msrb.mxu2 %v3989_v29 }
 0x681   : > { %v2843_v1 = vrot.slane %v2842_v44, 4  ;;  %v2840_v59 = vrot.slane %v2839_v30, 1 }
 0x683   : > { %v2844_v33 = vmax.f32 %v2842_v44, %v2843_v1  ;;  %v2655_v31 = vpop.f32.mrf.mxu2  ;;  %v2841_v36 = vmax.f32 %v2839_v30, %v2840_v59  ;;  %v3942_v44 = vld [vmem:[%s5691_s9 + $0xc0] sm:$0xff] }
 0x684   : > { %v2656_v37 = vadd.f32 %v5319_v20, %v2655_v31  ;;  %3092 = vmatpush.msrb.mxu1 %v3942_v44 }
 0x685   : > { %2943 = vrot.lane.b32.xlu1 %v2841_v36, %s4143_s26  ;;  %v2845_v6 = vrot.slane %v2844_v33, 2  ;;  %v2792_v36 = vpop.f32.mrf.mxu0 }
 0x686   : > { %v5376_v15 = vadd.f32 %v2777_v11, %v2656_v37 }
 0x687   : > { %v2846_v5 = vmax.f32 %v2844_v33, %v2845_v6 }
 0x688   : > { %v2849_v57 = vsel %vm894_vm2, %v5376_v15, -inf }
 0x689   : > { %v2850_v23 = vrot.slane %v2849_v57, 4  ;;  %v2847_v41 = vrot.slane %v2846_v5, 1 }
 0x68b   : > { %v2851_v19 = vmax.f32 %v2849_v57, %v2850_v23  ;;  %v2658_v7 = vpop.f32.mrf.mxu2  ;;  %v2848_v45 = vmax.f32 %v2846_v5, %v2847_v41 }
 0x68c   : > { %v2659_v46 = vadd.f32 %v5319_v20, %v2658_v7 }
 0x68d   : > { %2945 = vrot.lane.b32.xlu2 %v2848_v45, %s4143_s26  ;;  %v2852_v47 = vrot.slane %v2851_v19, 2 }
 0x68e   : > { %v5382_v9 = vadd.f32 %v2780_v63, %v2659_v46  ;;  %v3988_v63 = vld [vmem:[%s5695_s13 + $0xc0] sm:$0xff] }
 0x68f   : > { %v2853_v48 = vmax.f32 %v2851_v19, %v2852_v47  ;;  %3353 = vmatpush.msrb.mxu2 %v3988_v63  ;;  %v2795_v47 = vpop.f32.mrf.mxu0 }
 0x690   : > { %v2856_v49 = vsel %vm894_vm2, %v5382_v9, -inf }
 0x691   : > { %v2857_v16 = vrot.slane %v2856_v49, 4  ;;  %v2854_v38 = vrot.slane %v2853_v48, 1 }
 0x693   : > { %v2858_v18 = vmax.f32 %v2856_v49, %v2857_v16  ;;  %v2661_v53 = vpop.f32.mrf.mxu2  ;;  %v2855_v54 = vmax.f32 %v2853_v48, %v2854_v38 }
 0x694   : > { %v2662_v55 = vadd.f32 %v5319_v20, %v2661_v53 }
 0x695   : > { %2947 = vrot.lane.b32.xlu0 %v2855_v54, %s4143_s26  ;;  %v2859_v22 = vrot.slane %v2858_v18, 2 }
 0x696   : > { %v5397_v60 = vadd.f32 %v2783_v39, %v2662_v55  ;;  %v3970_v55 = vld [vmem:[%s5693_s11 + $0x78] sm:$0xff] }
 0x697   : > { %v2860_v25 = vmax.f32 %v2858_v18, %v2859_v22  ;;  %3228 = vmatpush.msrb.mxu3 %v3970_v55  ;;  %v2798_v35 = vpop.f32.mrf.mxu0 }
 0x698   : > { %v2863_v0 = vsel %vm894_vm2, %v5397_v60, -inf }
 0x699   : > { %v2864_v11 = vrot.slane %v2863_v0, 4  ;;  %v2861_v52 = vrot.slane %v2860_v25, 1 }
 0x69b   : > { %v2865_v12 = vmax.f32 %v2863_v0, %v2864_v11  ;;  %v2664_v21 = vpop.f32.mrf.mxu2  ;;  %v2862_v26 = vmax.f32 %v2860_v25, %v2861_v52 }
 0x69c   : > { %v2665_v51 = vadd.f32 %v5319_v20, %v2664_v21 }
 0x69d   : > { %v2866_v34 = vrot.slane %v2865_v12, 2  ;;  %2949 = vrot.lane.b32.xlu1 %v2862_v26, %s4143_s26 }
 0x69e   : > { %v5415_v27 = vadd.f32 %v2786_v13, %v2665_v51 }
 0x69f   : > { %v2867_v40 = vmax.f32 %v2865_v12, %v2866_v34 }
 0x6a0   : > { %v2870_v42 = vsel %vm894_vm2, %v5415_v27, -inf }
 0x6a1   : > { %v2871_v32 = vrot.slane %v2870_v42, 4  ;;  %v2868_v30 = vrot.slane %v2867_v40, 1 }
 0x6a3   : > { %v2872_v1 = vmax.f32 %v2870_v42, %v2871_v32  ;;  %v2667_v59 = vpop.f32.mrf.mxu2  ;;  %v2869_v33 = vmax.f32 %v2867_v40, %v2868_v30  ;;  %v2801_v42 = vpop.f32.mrf.mxu0 }
 0x6a4   : > { %v2668_v31 = vadd.f32 %v5319_v20, %v2667_v59 }
 0x6a5   : > { %v2873_v37 = vrot.slane %v2872_v1, 2  ;;  %2951 = vrot.lane.b32.xlu2 %v2869_v33, %s4143_s26 }
 0x6a6   : > { %v5433_v6 = vadd.f32 %v2789_v61, %v2668_v31 }
 0x6a7   : > { %v2874_v62 = vmax.f32 %v2872_v1, %v2873_v37 }
 0x6a8   : > { %v2877_v39 = vsel %vm894_vm2, %v5433_v6, -inf }
 0x6a9   : > { %v2878_v5 = vrot.slane %v2877_v39, 4  ;;  %v2875_v57 = vrot.slane %v2874_v62, 1 }
 0x6ab   : > { %v2879_v23 = vmax.f32 %v2877_v39, %v2878_v5  ;;  %v2670_v41 = vpop.f32.mrf.mxu2  ;;  %v2876_v19 = vmax.f32 %v2874_v62, %v2875_v57  ;;  %v2804_v5 = vpop.f32.mrf.mxu0 }
 0x6ac   : > { %v2671_v7 = vadd.f32 %v5319_v20, %v2670_v41 }
 0x6ad   : > { %v2880_v45 = vrot.slane %v2879_v23, 2  ;;  %2953 = vrot.lane.b32.xlu0 %v2876_v19, %s4143_s26 }
 0x6ae   : > { %v5439_v46 = vadd.f32 %v2792_v36, %v2671_v7 }
 0x6af   : > { %v2881_v48 = vmax.f32 %v2879_v23, %v2880_v45 }
 0x6b0   : > { %v2884_v49 = vsel %vm894_vm2, %v5439_v46, -inf }
 0x6b1   : > { %v2885_v13 = vrot.slane %v2884_v49, 4  ;;  %v2882_v16 = vrot.slane %v2881_v48, 1 }
 0x6b3   : > { %v2886_v38 = vmax.f32 %v2884_v49, %v2885_v13  ;;  %v2673_v4 = vpop.f32.mrf.mxu2  ;;  %v2883_v18 = vmax.f32 %v2881_v48, %v2882_v16 }
 0x6b4   : > { %v2674_v53 = vadd.f32 %v5319_v20, %v2673_v4 }
 0x6b5   : > { %v2887_v54 = vrot.slane %v2886_v38, 2  ;;  %2955 = vrot.lane.b32.xlu1 %v2883_v18, %s4143_s26 }
 0x6b6   : > { %v5448_v56 = vadd.f32 %v2795_v47, %v2674_v53 }
 0x6b7   : > { %v2888_v22 = vmax.f32 %v2886_v38, %v2887_v54  ;;  %v3969_v38 = vld [vmem:[%s5693_s11 + $0x70] sm:$0xff] }
 0x6b8   : > { %v2891_v28 = vsel %vm894_vm2, %v5448_v56, -inf  ;;  %3229 = vmatpush.msrb.mxu3 %v3969_v38 }
 0x6b9   : > { %v2892_v25 = vrot.slane %v2891_v28, 4  ;;  %v2889_v0 = vrot.slane %v2888_v22, 1 }
 0x6bb   : > { %v2893_v24 = vmax.f32 %v2891_v28, %v2892_v25  ;;  %v2676_v11 = vpop.f32.mrf.mxu2  ;;  %v2890_v52 = vmax.f32 %v2888_v22, %v2889_v0 }
 0x6bc   : > { %v2677_v43 = vadd.f32 %v5319_v20, %v2676_v11  ;;  %v3968_v11 = vld [vmem:[%s5693_s11 + $0x68] sm:$0xff] }
 0x6bd   : > { %v2894_v61 = vrot.slane %v2893_v24, 2  ;;  %2957 = vrot.lane.b32.xlu2 %v2890_v52, %s4143_s26  ;;  %3230 = vmatpush.msrb.mxu3 %v3968_v11 }
 0x6be   : > { %v5454_v12 = vadd.f32 %v2798_v35, %v2677_v43 }
 0x6bf   : > { %v2936_v21 = vpop.permute.xlu0 %2935  ;;  %v2895_v26 = vmax.f32 %v2893_v24, %v2894_v61 }
 0x6c0   : > { %v2898_v51 = vsel %vm894_vm2, %v5454_v12, -inf  ;;  %v2983_v14 = vsel %vm894_vm2, %v5323_v10, %v2936_v21 }
 0x6c1   : > { %v2899_v34 = vrot.slane %v2898_v51, 4  ;;  %v2999_v29 = vmax.f32 %v2983_v14, 0.0  ;;  %3996 = vmatmul.msk.f32.vlgmr.msrb.gmra.mxu2 %vm756_vm1, %v2983_v14  ;;  %v2896_v40 = vrot.slane %v2895_v26, 1 }
 0x6c3   : > { %v2900_v8 = vmax.f32 %v2898_v51, %v2899_v34  ;;  %v2679_v63 = vpop.f32.mrf.mxu2  ;;  %3951 = vmatmul.msk.f32.vlgmr.msrb.gmra.mxu1 %vm756_vm1, %v2999_v29  ;;  %v2897_v32 = vmax.f32 %v2895_v26, %v2896_v40 }
 0x6c4   : > { %v2680_v30 = vadd.f32 %v5319_v20, %v2679_v63 }
 0x6c5   : > { %v2901_v44 = vrot.slane %v2900_v8, 2  ;;  %2959 = vrot.lane.b32.xlu0 %v2897_v32, %s4143_s26 }
 0x6c6   : > { %v5464_v1 = vadd.f32 %v2801_v42, %v2680_v30 }
 0x6c7   : > { %v2902_v59 = vmax.f32 %v2900_v8, %v2901_v44 }
 0x6c8   : > { %v2905_v10 = vsel %vm894_vm2, %v5464_v1, -inf }
 0x6c9   : > { %v2906_v33 = vrot.slane %v2905_v10, 4  ;;  %v2903_v31 = vrot.slane %v2902_v59, 1 }
 0x6cb   : > { %v2907_v36 = vmax.f32 %v2905_v10, %v2906_v33  ;;  %v2682_v37 = vpop.f32.mrf.mxu2  ;;  %v2904_v62 = vmax.f32 %v2902_v59, %v2903_v31 }
 0x6cc   : > { %v2683_v39 = vadd.f32 %v5319_v20, %v2682_v37 }
 0x6cd   : > { %v2908_v57 = vrot.slane %v2907_v36, 2  ;;  %2961 = vrot.lane.b32.xlu1 %v2904_v62, %s4143_s26 }
 0x6ce   : > { %v5470_v23 = vadd.f32 %v2804_v5, %v2683_v39 }
 0x6cf   : > { %v2909_v41 = vmax.f32 %v2907_v36, %v2908_v57  ;;  %v2940_v54 = vpop.permute.xlu2 %2939 }
 0x6d0   : > { %v2912_v19 = vsel %vm894_vm2, %v5470_v23, -inf  ;;  %v2985_v55 = vsel %vm894_vm2, %v5346_v50, %v2940_v54 }
 0x6d1   : > { %v2913_v7 = vrot.slane %v2912_v19, 4  ;;  %v2910_v45 = vrot.slane %v2909_v41, 1  ;;  %v3001_v22 = vmax.f32 %v2985_v55, 0.0 }
 0x6d3   : > { %v2914_v47 = vmax.f32 %v2912_v19, %v2913_v7  ;;  %v2911_v48 = vmax.f32 %v2909_v41, %v2910_v45 }
 0x6d5   : > { %v2915_v49 = vrot.slane %v2914_v47, 2  ;;  %2963 = vrot.lane.b32.xlu2 %v2911_v48, %s4143_s26 }
 0x6d7   : > { %v2916_v13 = vmax.f32 %v2914_v47, %v2915_v49 }
 0x6d9   : > { %v2917_v16 = vrot.slane %v2916_v13, 1 }
 0x6db   : > { %v2918_v20 = vmax.f32 %v2916_v13, %v2917_v16 }
 0x6dd   : > { %2965 = vrot.lane.b32.xlu0 %v2918_v20, %s4143_s26  ;;  %s4095_s26 = scalar_lea.hbm %s4094_s3, 16 }
 0x6de   : > { %p4096_p11 = scmp.ne.s32.totalorder %s4094_s3, %s4095_s26  ;;  %p4101_p1 = scmp.lt.s32.totalorder %s4099_s27, %s4095_s26 }
 0x6df   : > { %v2938_v4 = vpop.permute.xlu1 %2937 }
 0x6e0   : > { %v2984_v18 = vsel %vm894_vm2, %v5338_v17, %v2938_v4  ;;  %p4097_p12 = pnand %p4096_p11, %p4266_p5  ;;  %p4102_p2 = por %p4101_p1, %p4100_p0 }
 0x6e1   : > { %v3000_v53 = vmax.f32 %v2984_v18, 0.0  ;;  %3997 = vmatmul.msk.f32.gmra.mxu2 %vm756_vm1, %v2984_v18 }
 0x6e2   : > { %p4098_p13 = pneg %p4097_p12 }
 0x6e3   : > { %3952 = vmatmul.msk.f32.gmra.mxu1 %vm756_vm1, %v3000_v53 }
 0x6e4   : > { %p4103_p3 = pnand %p4102_p2, %p4098_p13 }
 0x6e7   : > { %v2946_v50 = vpop.permute.xlu2 %2945 }
 0x6e9   : > { %3998 = vmatmul.msk.f32.gmra.mxu2 %vm756_vm1, %v2985_v55 }
 0x6eb   : > { %3953 = vmatmul.msk.f32.gmra.mxu1 %vm756_vm1, %v3001_v22 }
 0x6ef   : > { %v2942_v28 = vpop.permute.xlu0 %2941 }
 0x6f0   : > { %v2986_v35 = vsel %vm894_vm2, %v5352_v2, %v2942_v28  ;;  %v2988_v2 = vsel %vm894_vm2, %v5367_v3, %v2946_v50 }
 0x6f1   : > { %v3002_v25 = vmax.f32 %v2986_v35, 0.0  ;;  %3999 = vmatmul.msk.f32.gmra.mxu2 %vm756_vm1, %v2986_v35  ;;  %v3004_v52 = vmax.f32 %v2988_v2, 0.0 }
 0x6f3   : > { %3954 = vmatmul.msk.f32.gmra.mxu1 %vm756_vm1, %v3002_v25 }
 0x6f7   : > { %v2944_v17 = vpop.permute.xlu1 %2943 }
 0x6f8   : > { %v2987_v0 = vsel %vm894_vm2, %v5361_v58, %v2944_v17 }
 0x6f9   : > { %v3003_v24 = vmax.f32 %v2987_v0, 0.0  ;;  %4000 = vmatmul.msk.f32.gmra.mxu2 %vm756_vm1, %v2987_v0 }
 0x6fb   : > { %3955 = vmatmul.msk.f32.gmra.mxu1 %vm756_vm1, %v3003_v24 }
 0x6ff   : > { %v2952_v3 = vpop.permute.xlu2 %2951 }
 0x700   : > { %v2991_v14 = vsel %vm894_vm2, %v5397_v60, %v2952_v3 }
 0x701   : > { %4001 = vmatmul.msk.f32.gmra.mxu2 %vm756_vm1, %v2988_v2  ;;  %v3007_v34 = vmax.f32 %v2991_v14, 0.0 }
 0x703   : > { %3956 = vmatmul.msk.f32.gmra.mxu1 %vm756_vm1, %v3004_v52 }
 0x707   : > { %v2948_v58 = vpop.permute.xlu0 %2947 }
 0x708   : > { %v2989_v43 = vsel %vm894_vm2, %v5376_v15, %v2948_v58  ;;  %v3967_v15 = vld [vmem:[%s5693_s11 + $0x60] sm:$0xff] }
 0x709   : > { %v3005_v61 = vmax.f32 %v2989_v43, 0.0  ;;  %4002 = vmatmul.msk.f32.gmra.mxu2 %vm756_vm1, %v2989_v43  ;;  %3231 = vmatpush.msrb.mxu3 %v3967_v15 }
 0x70b   : > { %3957 = vmatmul.msk.f32.gmra.mxu1 %vm756_vm1, %v3005_v61 }
 0x70f   : > { %v2950_v21 = vpop.permute.xlu1 %2949 }
 0x710   : > { %v2990_v26 = vsel %vm894_vm2, %v5382_v9, %v2950_v21 }
 0x711   : > { %v3006_v51 = vmax.f32 %v2990_v26, 0.0  ;;  %4003 = vmatmul.msk.f32.gmra.mxu2 %vm756_vm1, %v2990_v26 }
 0x713   : > { %3958 = vmatmul.msk.f32.gmra.mxu1 %vm756_vm1, %v3006_v51 }
 0x717   : > { %v2958_v63 = vpop.permute.xlu2 %2957 }
 0x718   : > { %v2994_v32 = vsel %vm894_vm2, %v5439_v46, %v2958_v63 }
 0x719   : > { %4004 = vmatmul.msk.f32.gmra.mxu2 %vm756_vm1, %v2991_v14  ;;  %v3010_v30 = vmax.f32 %v2994_v32, 0.0 }
 0x71b   : > { %3959 = vmatmul.msk.f32.gmra.mxu1 %vm756_vm1, %v3007_v34 }
 0x71f   : > { %v2954_v9 = vpop.permute.xlu0 %2953 }
 0x720   : > { %v2992_v29 = vsel %vm894_vm2, %v5415_v27, %v2954_v9 }
 0x721   : > { %v3008_v40 = vmax.f32 %v2992_v29, 0.0  ;;  %4005 = vmatmul.msk.f32.gmra.mxu2 %vm756_vm1, %v2992_v29 }
 0x723   : > { %3960 = vmatmul.msk.f32.gmra.mxu1 %vm756_vm1, %v3008_v40 }
 0x727   : > { %v2956_v60 = vpop.permute.xlu1 %2955 }
 0x728   : > { %v2993_v42 = vsel %vm894_vm2, %v5433_v6, %v2956_v60  ;;  %v5536_v6 = vld [vmem:[%s5692_s10 + $0x3] ss:$0 sm:$0xff] }
 0x729   : > { %v3009_v8 = vmax.f32 %v2993_v42, 0.0  ;;  %4006 = vmatmul.msk.f32.gmra.mxu2 %vm756_vm1, %v2993_v42 }
 0x72b   : > { %3961 = vmatmul.msk.f32.gmra.mxu1 %vm756_vm1, %v3009_v8 }
 0x731   : > { %4007 = vmatmul.msk.f32.gmra.mxu2 %vm756_vm1, %v2994_v32 }
 0x733   : > { %3962 = vmatmul.msk.f32.gmra.mxu1 %vm756_vm1, %v3010_v30 }
 0x737   : > { %v2960_v27 = vpop.permute.xlu0 %2959 }
 0x738   : > { %v2995_v44 = vsel %vm894_vm2, %v5448_v56, %v2960_v27  ;;  %v2964_v56 = vpop.permute.xlu2 %2963  ;;  %v3534_v27 = vld [vmem:[%s5696_s14 + $0x18] sm:$0xff] }
 0x739   : > { %v3011_v59 = vmax.f32 %v2995_v44, 0.0  ;;  %4008 = vmatmul.msk.f32.gmra.mxu2 %vm756_vm1, %v2995_v44  ;;  %v2997_v62 = vsel %vm894_vm2, %v5464_v1, %v2964_v56  ;;  %3592 = vmatpush.msra.mxu0 %v3534_v27  ;;  %v5591_v56 = vld [vmem:[%s5694_s12 + $0x3] ss:$0 sm:$0xff] }
 0x73a   : > { %v3013_v39 = vmax.f32 %v2997_v62, 0.0  ;;  %4020 = vmatpush.msra.mxu1 %v3534_v27 }
 0x73b   : > { %3963 = vmatmul.msk.f32.gmra.mxu1 %vm756_vm1, %v3011_v59 }
 0x73f   : > { %v2962_v46 = vpop.permute.xlu1 %2961 }
 0x740   : > { %v2996_v10 = vsel %vm894_vm2, %v5454_v12, %v2962_v46  ;;  %v3094_v33 = vpop.f32.mrf.mxu1 }
 0x741   : > { %v3012_v31 = vmax.f32 %v2996_v10, 0.0  ;;  %v3095_v36 = vadd.f32 %v5536_v6, %v3094_v33  ;;  %4009 = vmatmul.msk.f32.gmra.mxu2 %vm756_vm1, %v2996_v10 }
 0x743   : > { %v3142_v37 = vmax.f32 %v3095_v36, 0.0  ;;  %3964 = vmatmul.msk.f32.gmra.mxu1 %vm756_vm1, %v3012_v31 }
 0x744   : > { %v3355_v9 = vpop.f32.mrf.mxu2 }
 0x745   : > { %3972 = vmatmul.msk.f32.vlgmr.msrb.gmra.mxu3 %vm894_vm2, %v3142_v37 }
 0x749   : > { %4010 = vmatmul.msk.f32.gmra.mxu2 %vm756_vm1, %v2997_v62 }
 0x74b   : > { %3965 = vmatmul.msk.f32.gmra.mxu1 %vm756_vm1, %v3013_v39 }
 0x74f   : > { %v2966_v12 = vpop.permute.xlu0 %2965 }
 0x750   : > { %v2998_v5 = vsel %vm894_vm2, %v5470_v23, %v2966_v12 }
 0x751   : > { %v3014_v57 = vmax.f32 %v2998_v5, 0.0  ;;  %4011 = vmatmul.msk.f32.gmra.mxu2 %vm756_vm1, %v2998_v5 }
 0x753   : > { %3966 = vmatmul.msk.f32.gmra.mxu1 %vm756_vm1, %v3014_v57 }
 0x760   : > { %v3097_v41 = vpop.f32.mrf.mxu1 }
 0x761   : > { %v3098_v19 = vadd.f32 %v5536_v6, %v3097_v41 }
 0x763   : > { %v3143_v7 = vmax.f32 %v3098_v19, 0.0 }
 0x764   : > { %v3358_v42 = vpop.f32.mrf.mxu2 }
 0x765   : > { %3973 = vmatmul.msk.f32.gmra.mxu3 %vm894_vm2, %v3143_v7 }
 0x768   : > { %v3100_v1 = vpop.f32.mrf.mxu1 }
 0x769   : > { %v3101_v45 = vadd.f32 %v5536_v6, %v3100_v1 }
 0x76b   : > { %v3144_v47 = vmax.f32 %v3101_v45, 0.0 }
 0x76c   : > { %v3361_v30 = vpop.f32.mrf.mxu2 }
 0x76d   : > { %3974 = vmatmul.msk.f32.gmra.mxu3 %vm894_vm2, %v3144_v47 }
 0x770   : > { %v3103_v48 = vpop.f32.mrf.mxu1 }
 0x771   : > { %v3104_v23 = vadd.f32 %v5536_v6, %v3103_v48 }
 0x773   : > { %v3145_v49 = vmax.f32 %v3104_v23, 0.0 }
 0x774   : > { %v3364_v59 = vpop.f32.mrf.mxu2 }
 0x775   : > { %3975 = vmatmul.msk.f32.gmra.mxu3 %vm894_vm2, %v3145_v49 }
 0x778   : > { %v3106_v13 = vpop.f32.mrf.mxu1 }
 0x779   : > { %v3107_v16 = vadd.f32 %v5536_v6, %v3106_v13 }
 0x77b   : > { %v3146_v20 = vmax.f32 %v3107_v16, 0.0 }
 0x77c   : > { %v3367_v10 = vpop.f32.mrf.mxu2 }
 0x77d   : > { %3976 = vmatmul.msk.f32.gmra.mxu3 %vm894_vm2, %v3146_v20 }
 0x780   : > { %v3109_v38 = vpop.f32.mrf.mxu1 }
 0x781   : > { %v3110_v4 = vadd.f32 %v5536_v6, %v3109_v38 }
 0x783   : > { %v3147_v18 = vmax.f32 %v3110_v4, 0.0 }
 0x784   : > { %v3370_v31 = vpop.f32.mrf.mxu2 }
 0x785   : > { %3977 = vmatmul.msk.f32.gmra.mxu3 %vm894_vm2, %v3147_v18 }
 0x788   : > { %v3112_v53 = vpop.f32.mrf.mxu1 }
 0x789   : > { %v3113_v54 = vadd.f32 %v5536_v6, %v3112_v53  ;;  %v3532_v53 = vld [vmem:[%s5696_s14 + $0x8] sm:$0xff] }
 0x78b   : > { %v3148_v55 = vmax.f32 %v3113_v54, 0.0 }
 0x78c   : > { %v3373_v62 = vpop.f32.mrf.mxu2 }
 0x78d   : > { %3978 = vmatmul.msk.f32.gmra.mxu3 %vm894_vm2, %v3148_v55 }
 0x790   : > { %v3115_v22 = vpop.f32.mrf.mxu1 }
 0x791   : > { %v3116_v28 = vadd.f32 %v5536_v6, %v3115_v22 }
 0x793   : > { %v3149_v35 = vmax.f32 %v3116_v28, 0.0 }
 0x794   : > { %v3376_v38 = vpop.f32.mrf.mxu2 }
 0x795   : > { %3979 = vmatmul.msk.f32.gmra.mxu3 %vm894_vm2, %v3149_v35  ;;  %v3531_v35 = vld [vmem:[%s5696_s14] sm:$0xff] }
 0x798   : > { %v3118_v25 = vpop.f32.mrf.mxu1 }
 0x799   : > { %v3119_v17 = vadd.f32 %v5536_v6, %v3118_v25 }
 0x79b   : > { %v3150_v0 = vmax.f32 %v3119_v17, 0.0 }
 0x79d   : > { %3980 = vmatmul.msk.f32.gmra.mxu3 %vm894_vm2, %v3150_v0 }
 0x7a0   : > { %v3121_v24 = vpop.f32.mrf.mxu1 }
 0x7a1   : > { %v3122_v50 = vadd.f32 %v5536_v6, %v3121_v24 }
 0x7a3   : > { %v3151_v11 = vmax.f32 %v3122_v50, 0.0 }
 0x7a5   : > { %3981 = vmatmul.msk.f32.gmra.mxu3 %vm894_vm2, %v3151_v11 }
 0x7a8   : > { %v3124_v2 = vpop.f32.mrf.mxu1 }
 0x7a9   : > { %v3125_v52 = vadd.f32 %v5536_v6, %v3124_v2 }
 0x7ab   : > { %v3152_v58 = vmax.f32 %v3125_v52, 0.0 }
 0x7ad   : > { %3982 = vmatmul.msk.f32.gmra.mxu3 %vm894_vm2, %v3152_v58 }
 0x7b0   : > { %v3127_v43 = vpop.f32.mrf.mxu1 }
 0x7b1   : > { %v3128_v61 = vadd.f32 %v5536_v6, %v3127_v43 }
 0x7b3   : > { %v3153_v21 = vmax.f32 %v3128_v61, 0.0 }
 0x7b5   : > { %3983 = vmatmul.msk.f32.gmra.mxu3 %vm894_vm2, %v3153_v21 }
 0x7b8   : > { %v3130_v26 = vpop.f32.mrf.mxu1 }
 0x7b9   : > { %v3131_v51 = vadd.f32 %v5536_v6, %v3130_v26 }
 0x7bb   : > { %v3154_v3 = vmax.f32 %v3131_v51, 0.0 }
 0x7bd   : > { %3984 = vmatmul.msk.f32.gmra.mxu3 %vm894_vm2, %v3154_v3  ;;  %v3379_v3 = vpop.f32.mrf.mxu2 }
 0x7c0   : > { %v3133_v14 = vpop.f32.mrf.mxu1 }
 0x7c1   : > { %v3134_v34 = vadd.f32 %v5536_v6, %v3133_v14 }
 0x7c3   : > { %v3155_v15 = vmax.f32 %v3134_v34, 0.0 }
 0x7c5   : > { %3985 = vmatmul.msk.f32.gmra.mxu3 %vm894_vm2, %v3155_v15 }
 0x7c8   : > { %v3136_v29 = vpop.f32.mrf.mxu1  ;;  %v3233_v44 = vpop.f32.mrf.mxu3 }
 0x7c9   : > { %v3137_v40 = vadd.f32 %v5536_v6, %v3136_v29  ;;  %v3234_v5 = vadd.f32 %v5591_v56, %v3233_v44 }
 0x7cb   : > { %v3156_v60 = vmax.f32 %v3137_v40, 0.0  ;;  %v3356_v1 = vadd.f32 %v3355_v9, %v3234_v5 }
 0x7cd   : > { %3986 = vmatmul.msk.f32.gmra.mxu3 %vm894_vm2, %v3156_v60  ;;  %v3403_v13 = vsel %vm894_vm2, %v3356_v1, -inf }
 0x7ce   : > { %v3404_v22 = vrot.slane %v3403_v13, 4 }
 0x7d0   : > { %v3139_v8 = vpop.f32.mrf.mxu1  ;;  %v3405_v11 = vmax.f32 %v3403_v13, %v3404_v22 }
 0x7d1   : > { %v3140_v63 = vadd.f32 %v5536_v6, %v3139_v8  ;;  %v3533_v6 = vld [vmem:[%s5696_s14 + $0x10] sm:$0xff] }
 0x7d2   : > { %3593 = vmatpush.msra.mxu0 %v3533_v6  ;;  %4021 = vmatpush.msra.mxu1 %v3533_v6  ;;  %v3406_v14 = vrot.slane %v3405_v11, 2 }
 0x7d3   : > { %v3157_v32 = vmax.f32 %v3140_v63, 0.0 }
 0x7d4   : > { %3594 = vmatpush.msra.mxu0 %v3532_v53  ;;  %4022 = vmatpush.msra.mxu1 %v3532_v53  ;;  %v3407_v8 = vmax.f32 %v3405_v11, %v3406_v14 }
 0x7d5   : > { %3987 = vmatmul.msk.f32.gmra.mxu3 %vm894_vm2, %v3157_v32 }
 0x7d6   : > { %3595 = vmatpush.msra.mxu0 %v3531_v35  ;;  %4023 = vmatpush.msra.mxu1 %v3531_v35 }
 0x7e8   : > { %v3236_v46 = vpop.f32.mrf.mxu3 }
 0x7e9   : > { %v3237_v37 = vadd.f32 %v5591_v56, %v3236_v46 }
 0x7eb   : > { %v3359_v19 = vadd.f32 %v3358_v42, %v3237_v37 }
 0x7ed   : > { %v3410_v48 = vsel %vm894_vm2, %v3359_v19, -inf }
 0x7ee   : > { %v3411_v4 = vrot.slane %v3410_v48, 4 }
 0x7f0   : > { %v3239_v33 = vpop.f32.mrf.mxu3  ;;  %v3412_v0 = vmax.f32 %v3410_v48, %v3411_v4 }
 0x7f1   : > { %v3240_v39 = vadd.f32 %v5591_v56, %v3239_v33 }
 0x7f2   : > { %v3413_v61 = vrot.slane %v3412_v0, 2 }
 0x7f3   : > { %v3362_v7 = vadd.f32 %v3361_v30, %v3240_v39 }
 0x7f4   : > { %v3414_v29 = vmax.f32 %v3412_v0, %v3413_v61 }
 0x7f5   : > { %v3417_v23 = vsel %vm894_vm2, %v3362_v7, -inf }
 0x7f6   : > { %v3418_v54 = vrot.slane %v3417_v23, 4 }
 0x7f8   : > { %v3242_v36 = vpop.f32.mrf.mxu3  ;;  %v3419_v50 = vmax.f32 %v3417_v23, %v3418_v54 }
 0x7f9   : > { %v3243_v57 = vadd.f32 %v5591_v56, %v3242_v36  ;;  %v3408_v36 = vrot.slane %v3407_v8, 1 }
 0x7fa   : > { %v3420_v26 = vrot.slane %v3419_v50, 2 }
 0x7fb   : > { %v3365_v45 = vadd.f32 %v3364_v59, %v3243_v57  ;;  %v3415_v59 = vrot.slane %v3414_v29, 1  ;;  %v3409_v1 = vmax.f32 %v3407_v8, %v3408_v36 }
 0x7fc   : > { %v3421_v42 = vmax.f32 %v3419_v50, %v3420_v26 }
 0x7fd   : > { %v3424_v16 = vsel %vm894_vm2, %v3365_v45, -inf  ;;  %v3416_v5 = vmax.f32 %v3414_v29, %v3415_v59  ;;  %v3515_v53 = vmax.f32 %v3409_v1, 0.0 }
 0x7fe   : > { %v3425_v28 = vrot.slane %v3424_v16, 4  ;;  %v3422_v33 = vrot.slane %v3421_v42, 1 }
 0x7ff   : > { %v3516_v13 = vmax.f32 %v3416_v5, 0.0 }
 0x800   : > { %v3245_v12 = vpop.f32.mrf.mxu3  ;;  %v3426_v2 = vmax.f32 %v3424_v16, %v3425_v28  ;;  %v3423_v19 = vmax.f32 %v3421_v42, %v3422_v33 }
 0x801   : > { %v3246_v41 = vadd.f32 %v5591_v56, %v3245_v12  ;;  %v3382_v12 = vpop.f32.mrf.mxu2  ;;  %v3556_v28 = vsel %vm3555_vm3, %v3516_v13, %v3515_v53 }
 0x802   : > { %v3427_v34 = vrot.slane %v3426_v2, 2 }
 0x803   : > { %v3368_v47 = vadd.f32 %v3367_v10, %v3246_v41 }
 0x804   : > { %v3428_v63 = vmax.f32 %v3426_v2, %v3427_v34 }
 0x805   : > { %v3431_v18 = vsel %vm894_vm2, %v3368_v47, -inf }
 0x806   : > { %v3432_v25 = vrot.slane %v3431_v18, 4  ;;  %v3429_v6 = vrot.slane %v3428_v63, 1 }
 0x808   : > { %v3248_v49 = vpop.f32.mrf.mxu3  ;;  %v3433_v58 = vmax.f32 %v3431_v18, %v3432_v25  ;;  %v3430_v45 = vmax.f32 %v3428_v63, %v3429_v6 }
 0x809   : > { %v3249_v20 = vadd.f32 %v5591_v56, %v3248_v49  ;;  %v3385_v50 = vpop.f32.mrf.mxu2 }
 0x80a   : > { %v3434_v15 = vrot.slane %v3433_v58, 2  ;;  %v3518_v54 = vmax.f32 %v3430_v45, 0.0 }
 0x80b   : > { %v3371_v55 = vadd.f32 %v3370_v31, %v3249_v20 }
 0x80c   : > { %v3435_v27 = vmax.f32 %v3433_v58, %v3434_v15 }
 0x80d   : > { %v3438_v17 = vsel %vm894_vm2, %v3371_v55, -inf }
 0x80e   : > { %v3439_v24 = vrot.slane %v3438_v17, 4 }
 0x810   : > { %v3251_v52 = vpop.f32.mrf.mxu3  ;;  %v3440_v21 = vmax.f32 %v3438_v17, %v3439_v24 }
 0x811   : > { %v3252_v43 = vadd.f32 %v5591_v56, %v3251_v52  ;;  %v3388_v8 = vpop.f32.mrf.mxu2 }
 0x812   : > { %v3441_v40 = vrot.slane %v3440_v21, 2 }
 0x813   : > { %v3374_v51 = vadd.f32 %v3373_v62, %v3252_v43  ;;  %v3436_v62 = vrot.slane %v3435_v27, 1 }
 0x814   : > { %v3442_v46 = vmax.f32 %v3440_v21, %v3441_v40 }
 0x815   : > { %v3445_v9 = vsel %vm894_vm2, %v3374_v51, -inf  ;;  %v3437_v23 = vmax.f32 %v3435_v27, %v3436_v62 }
 0x816   : > { %v3446_v60 = vrot.slane %v3445_v9, 4  ;;  %v3443_v57 = vrot.slane %v3442_v46, 1 }
 0x817   : > { %v3519_v22 = vmax.f32 %v3437_v23, 0.0 }
 0x818   : > { %v3447_v32 = vmax.f32 %v3445_v9, %v3446_v60  ;;  %v3254_v30 = vpop.f32.mrf.mxu3  ;;  %v3444_v16 = vmax.f32 %v3442_v46, %v3443_v57 }
 0x819   : > { %v3255_v44 = vadd.f32 %v5591_v56, %v3254_v30 }
 0x81a   : > { %v3448_v10 = vrot.slane %v3447_v32, 2  ;;  %v3520_v35 = vmax.f32 %v3444_v16, 0.0 }
 0x81b   : > { %v3377_v31 = vadd.f32 %v3376_v38, %v3255_v44  ;;  %v3517_v38 = vmax.f32 %v3423_v19, 0.0 }
 0x81c   : > { %v3449_v37 = vmax.f32 %v3447_v32, %v3448_v10 }
 0x81d   : > { %v3452_v39 = vsel %vm894_vm2, %v3377_v31, -inf  ;;  %v3558_v0 = vsel %vm3557_vm4, %v3517_v38, %v3556_v28 }
 0x81e   : > { %v3453_v41 = vrot.slane %v3452_v39, 4  ;;  %v3450_v7 = vrot.slane %v3449_v37, 1  ;;  %v3560_v11 = vsel %vm3559_vm5, %v3518_v54, %v3558_v0 }
 0x81f   : > { %v3562_v58 = vsel %vm3561_vm6, %v3519_v22, %v3560_v11 }
 0x820   : > { %v3454_v47 = vmax.f32 %v3452_v39, %v3453_v41  ;;  %v3257_v48 = vpop.f32.mrf.mxu3  ;;  %v3451_v4 = vmax.f32 %v3449_v37, %v3450_v7  ;;  %v3564_v26 = vsel %vm3563_vm7, %v3520_v35, %v3562_v58  ;;  %v3391_v39 = vpop.f32.mrf.mxu2 }
 0x821   : > { %v3258_v49 = vadd.f32 %v5591_v56, %v3257_v48 }
 0x822   : > { %v3455_v20 = vrot.slane %v3454_v47, 2  ;;  %v3521_v24 = vmax.f32 %v3451_v4, 0.0 }
 0x823   : > { %v3380_v18 = vadd.f32 %v3379_v3, %v3258_v49 }
 0x824   : > { %v3456_v55 = vmax.f32 %v3454_v47, %v3455_v20  ;;  %v3566_v3 = vsel %vm3565_vm8, %v3521_v24, %v3564_v26 }
 0x825   : > { %v3459_v17 = vsel %vm894_vm2, %v3380_v18, -inf }
 0x826   : > { %v3457_v25 = vrot.slane %v3456_v55, 1  ;;  %v3460_v43 = vrot.slane %v3459_v17, 4 }
 0x828   : > { %v3458_v2 = vmax.f32 %v3456_v55, %v3457_v25  ;;  %v3260_v52 = vpop.f32.mrf.mxu3  ;;  %v3461_v34 = vmax.f32 %v3459_v17, %v3460_v43  ;;  %v3394_v53 = vpop.f32.mrf.mxu2 }
 0x829   : > { %v3261_v61 = vadd.f32 %v5591_v56, %v3260_v52 }
 0x82a   : > { %v3522_v21 = vmax.f32 %v3458_v2, 0.0  ;;  %v3462_v60 = vrot.slane %v3461_v34, 2 }
 0x82b   : > { %v3383_v51 = vadd.f32 %v3382_v12, %v3261_v61 }
 0x82c   : > { %v3568_v14 = vsel %vm3567_vm9, %v3522_v21, %v3566_v3  ;;  %v3463_v27 = vmax.f32 %v3461_v34, %v3462_v60 }
 0x82d   : > { %v3466_v15 = vsel %vm894_vm2, %v3383_v51, -inf  ;;  %4012 = vmatmul.msk.f32.vlgmr.msra.gmra.mxu0 %vm894_vm2, %v3568_v14 }
 0x82e   : > { %v3467_v9 = vrot.slane %v3466_v15, 4  ;;  %v3464_v31 = vrot.slane %v3463_v27, 1 }
 0x830   : > { %v3468_v29 = vmax.f32 %v3466_v15, %v3467_v9  ;;  %v3263_v40 = vpop.f32.mrf.mxu3  ;;  %v3465_v5 = vmax.f32 %v3463_v27, %v3464_v31  ;;  %v3397_v43 = vpop.f32.mrf.mxu2 }
 0x831   : > { %v3264_v42 = vadd.f32 %v5591_v56, %v3263_v40 }
 0x832   : > { %v3469_v63 = vrot.slane %v3468_v29, 2  ;;  %v3523_v48 = vmax.f32 %v3465_v5, 0.0 }
 0x833   : > { %v3386_v32 = vadd.f32 %v3385_v50, %v3264_v42 }
 0x834   : > { %v3470_v30 = vmax.f32 %v3468_v29, %v3469_v63 }
 0x835   : > { %v3473_v44 = vsel %vm894_vm2, %v3386_v32, -inf }
 0x836   : > { %v3474_v59 = vrot.slane %v3473_v44, 4  ;;  %v3471_v46 = vrot.slane %v3470_v30, 1 }
 0x838   : > { %v3475_v10 = vmax.f32 %v3473_v44, %v3474_v59  ;;  %v3266_v33 = vpop.f32.mrf.mxu3  ;;  %v3472_v37 = vmax.f32 %v3470_v30, %v3471_v46  ;;  %v3400_v30 = vpop.f32.mrf.mxu2 }
 0x839   : > { %v3267_v36 = vadd.f32 %v5591_v56, %v3266_v33 }
 0x83a   : > { %v3476_v6 = vrot.slane %v3475_v10, 2  ;;  %v3524_v7 = vmax.f32 %v3472_v37, 0.0 }
 0x83b   : > { %v3389_v62 = vadd.f32 %v3388_v8, %v3267_v36 }
 0x83c   : > { %v3477_v12 = vmax.f32 %v3475_v10, %v3476_v6  ;;  %v3569_v16 = vsel %vm3555_vm3, %v3524_v7, %v3523_v48  ;;  %v4078_v7 = vld [vmem:[%s5697_s15] ss:$0 sm:$0xff] }
 0x83d   : > { %v3480_v57 = vsel %vm894_vm2, %v3389_v62, -inf }
 0x83e   : > { %v3478_v41 = vrot.slane %v3477_v12, 1  ;;  %v3481_v19 = vrot.slane %v3480_v57, 4 }
 0x840   : > { %v3479_v1 = vmax.f32 %v3477_v12, %v3478_v41  ;;  %v3482_v45 = vmax.f32 %v3480_v57, %v3481_v19  ;;  %v3269_v47 = vpop.f32.mrf.mxu3 }
 0x841   : > { %v3270_v23 = vadd.f32 %v5591_v56, %v3269_v47 }
 0x842   : > { %v3525_v49 = vmax.f32 %v3479_v1, 0.0  ;;  %v3483_v13 = vrot.slane %v3482_v45, 2 }
 0x843   : > { %v3392_v20 = vadd.f32 %v3391_v39, %v3270_v23 }
 0x844   : > { %v3570_v38 = vsel %vm3557_vm4, %v3525_v49, %v3569_v16  ;;  %v3484_v4 = vmax.f32 %v3482_v45, %v3483_v13 }
 0x845   : > { %v3487_v18 = vsel %vm894_vm2, %v3392_v20, -inf }
 0x846   : > { %v3485_v54 = vrot.slane %v3484_v4, 1  ;;  %v3488_v55 = vrot.slane %v3487_v18, 4 }
 0x848   : > { %v3486_v22 = vmax.f32 %v3484_v4, %v3485_v54  ;;  %v3489_v28 = vmax.f32 %v3487_v18, %v3488_v55  ;;  %v3272_v35 = vpop.f32.mrf.mxu3 }
 0x849   : > { %v3273_v25 = vadd.f32 %v5591_v56, %v3272_v35 }
 0x84a   : > { %v3526_v17 = vmax.f32 %v3486_v22, 0.0  ;;  %v3490_v0 = vrot.slane %v3489_v28, 2 }
 0x84b   : > { %v3395_v24 = vadd.f32 %v3394_v53, %v3273_v25 }
 0x84c   : > { %v3571_v50 = vsel %vm3559_vm5, %v3526_v17, %v3570_v38  ;;  %v3491_v11 = vmax.f32 %v3489_v28, %v3490_v0 }
 0x84d   : > { %v3494_v2 = vsel %vm894_vm2, %v3395_v24, -inf }
 0x84e   : > { %v3492_v52 = vrot.slane %v3491_v11, 1  ;;  %v3495_v58 = vrot.slane %v3494_v2, 4 }
 0x850   : > { %v3493_v61 = vmax.f32 %v3491_v11, %v3492_v52  ;;  %v3496_v21 = vmax.f32 %v3494_v2, %v3495_v58  ;;  %v3275_v26 = vpop.f32.mrf.mxu3 }
 0x851   : > { %v3276_v51 = vadd.f32 %v5591_v56, %v3275_v26 }
 0x852   : > { %v3527_v3 = vmax.f32 %v3493_v61, 0.0  ;;  %v3497_v14 = vrot.slane %v3496_v21, 2 }
 0x853   : > { %v3398_v34 = vadd.f32 %v3397_v43, %v3276_v51 }
 0x854   : > { %v3572_v15 = vsel %vm3561_vm6, %v3527_v3, %v3571_v50  ;;  %v3498_v9 = vmax.f32 %v3496_v21, %v3497_v14 }
 0x855   : > { %v3501_v29 = vsel %vm894_vm2, %v3398_v34, -inf }
 0x856   : > { %v3499_v40 = vrot.slane %v3498_v9, 1  ;;  %v3502_v60 = vrot.slane %v3501_v29, 4 }
 0x858   : > { %v3500_v42 = vmax.f32 %v3498_v9, %v3499_v40  ;;  %v3503_v8 = vmax.f32 %v3501_v29, %v3502_v60  ;;  %v3278_v63 = vpop.f32.mrf.mxu3 }
 0x859   : > { %v3279_v32 = vadd.f32 %v5591_v56, %v3278_v63 }
 0x85a   : > { %v3528_v27 = vmax.f32 %v3500_v42, 0.0  ;;  %v3504_v44 = vrot.slane %v3503_v8, 2 }
 0x85b   : > { %v3401_v59 = vadd.f32 %v3400_v30, %v3279_v32 }
 0x85c   : > { %v3505_v46 = vmax.f32 %v3503_v8, %v3504_v44  ;;  %v3573_v10 = vsel %vm3563_vm7, %v3528_v27, %v3572_v15 }
 0x85d   : > { %v3508_v33 = vsel %vm894_vm2, %v3401_v59, -inf }
 0x85e   : > { %v3506_v31 = vrot.slane %v3505_v46, 1  ;;  %v3509_v36 = vrot.slane %v3508_v33, 4 }
 0x860   : > { %v3507_v6 = vmax.f32 %v3505_v46, %v3506_v31  ;;  %v3510_v37 = vmax.f32 %v3508_v33, %v3509_v36 }
 0x862   : > { %v3529_v62 = vmax.f32 %v3507_v6, 0.0  ;;  %v3511_v39 = vrot.slane %v3510_v37, 2 }
 0x864   : > { %v3512_v12 = vmax.f32 %v3510_v37, %v3511_v39  ;;  %v3574_v56 = vsel %vm3565_vm8, %v3529_v62, %v3573_v10 }
 0x866   : > { %v3513_v5 = vrot.slane %v3512_v12, 1 }
 0x868   : > { %v3514_v57 = vmax.f32 %v3512_v12, %v3513_v5 }
 0x86a   : > { %v3530_v41 = vmax.f32 %v3514_v57, 0.0 }
 0x86c   : > { %v3575_v19 = vsel %vm3567_vm9, %v3530_v41, %v3574_v56 }
 0x86d   : > { %4013 = vmatmul.msk.f32.vlgmr.msra.gmra.mxu1 %vm894_vm2, %v3575_v19 }
 0x8aa   : > { %v3597_v1 = vpop.f32.mrf.mxu0 }
 0x8ab   : > { %v3598_v45 = vadd.f32 %v4078_v7, %v3597_v1 }
 0x8ad   : > { %3603 = vst [vmem:[%s515_s25] sm:$0xff] %v3598_v45 }
 0x8ea   : > { %v3600_v47 = vpop.f32.mrf.mxu1 }
 0x8eb   : > { %v3601_v48 = vadd.f32 %v4078_v7, %v3600_v47 }
 0x8ed   : > { %3604 = vst [vmem:[%s515_s25 + $0x8] sm:$0xff] %v3601_v48 }
 0x8ee   : > { %4106 = shalt.err (!%p4103_p3)
}
 0x8ef   : > { %s4144_s28 = smov 128   ;;  %s4145_s25 = smov 8  }
 0x8f0   : > { %4024 = dma.vmem_to_hbm [thread:$0]  (%p4266_p5), %s3619_s19, 256, %s3621_s1, %s3606_s2, %s4144_s28, %s4144_s28, %s4145_s25  }
 0x8f1 PF: > { %p4030_p4 = scmp.ge.s32.totalorder %s4141_s24, 2  ;;  %s3635_s18 = sand.u32 1, %s4129_s21  }
 0x8f2   : > { %s3636_s29 = scalar_lea.sflag [#allocation3], %s3635_s18 }
 0x8f3   : > { %p4027_p7 = pnand %p4030_p4, %p4270_p6 }
 0x8f5   : > { %p4028_p8 = pneg %p4027_p7 }
 0x8f7   : > { %4124 = dma.done.wait (%p4028_p8), %s3636_s29, 256  }
 0x8f8   : > { %4126 = vsyncadd (%p4028_p8), %s3636_s29, 4294967040  ;;  %s5715_s24 = sld [smem:[#allocation6_spill]]  ;;  %s5718_s21 = smov %s4133_s22 }
 0x8f9   : > { %s5716_s3 = sld [smem:[#allocation5_spill]] }
 0x8fa   : > { %s5717_s23 = sld [smem:[#allocation7_spill]] }
 0x8fe   : > { %p26_p9 = scmp.ge.s32.totalorder %s5715_s24, 4  }
 0x8ff   : > { %s5719_s22 = smov %s5716_s3 }
 0x900   :  { %28 = sbr.rel (!%p26_p9) target bundleno = 8 (0x8), region = 134 }
 0x905   :  { %3642 = vsyncpa [#allocation3], 1 }
 0x906   :  { %3644 = vsyncpa [#allocation3 + $0x1], 1 }

</bundles_post_ra>
